<compile_context>
chip_gen: v7x
topology: tpu7x:2x2x1
jax: 0.10.0
libtpu: 0.0.40
codegen_flags: <defaults>
</compile_context>

<pallas_src>
import functools
import math

import jax
import jax.numpy as jnp
from jax.experimental import pallas as pl
from jax.experimental.pallas import tpu as pltpu

NHEAD = 8        # fixed by the PyTorch module (TransformerEncoderLayer(nhead=8))
NUM_LAYERS = 4   # fixed by the PyTorch module (num_layers=4)
LN_EPS = 1e-5    # torch.nn.LayerNorm default


# ----------------------------------------------------------------------------
# Fused forward kernel: single invocation, whole batch folded into one tile set.
# ----------------------------------------------------------------------------
def _fused_forward_kernel(spk_ref, vel_ref, pe_ref, wspk_ref, wvel_ref, in_b_ref,
                          wqkv_ref, bqkv_ref, wo_ref, w1_ref, b1_ref, w2_ref,
                          vec_ref, out_w_ref, out_b_ref,
                          bias_ref, repl_ref, hmask_ref, blk_ref,
                          o_ref, *, num_layers, nhead):
    D = wspk_ref.shape[1]
    Dh = D // nhead
    scale = 1.0 / math.sqrt(Dh)

    def layer_norm(xv, g, b):
        mu = jnp.mean(xv, axis=-1, keepdims=True)
        diff = xv - mu
        var = jnp.mean(diff * diff, axis=-1, keepdims=True)
        return diff * jax.lax.rsqrt(var + LN_EPS) * g + b

    # Loop-invariant constants, hoisted out of the (unrolled) layer loop.
    bias_big = bias_ref[...]       # (BT, BHT)  causal + cross-batch additive mask
    repl_kv = repl_ref[...]        # (BHT, BT)  batch/head row-replication matrix
    head_mask_kv = hmask_ref[...]  # (BHT, 2D)  block-diagonal head selector [K|V]
    blk = blk_ref[...]             # (BHT, BHT) per-(batch,head) block-sum matrix

    # Input projection (split spikes / velocities — no host-side concat) + PE.
    # NOTE: pe rows are indexed by the *batch* index (constant over time within a
    # sequence), faithfully reproducing the PyTorch batch_first PositionalEncoding
    # behaviour of the reference module.
    x = (jnp.dot(spk_ref[...], wspk_ref[...], preferred_element_type=jnp.float32)
         + jnp.dot(vel_ref[...], wvel_ref[...], preferred_element_type=jnp.float32)
         + in_b_ref[...] + pe_ref[...])                             # (BT, D)

    for l in range(num_layers):
        vecs = vec_ref[l]                                           # (6, D)
        ln1_g, ln1_b = vecs[0:1], vecs[1:2]
        ln2_g, ln2_b = vecs[2:3], vecs[3:4]
        bo, b2 = vecs[4:5], vecs[5:6]

        # ---- self-attention block (pre-norm), fused QKV projection ----
        h = layer_norm(x, ln1_g, ln1_b)
        qkv = (jnp.dot(h, wqkv_ref[l], preferred_element_type=jnp.float32)
               + bqkv_ref[l])                                       # (BT, 3D)
        q = qkv[:, :D]
        kv = qkv[:, D:]                                             # (BT, 2D) = [K|V]

        # Batch+head block-diagonal expansion of K and V in ONE matmul.
        kv_bd = jnp.dot(repl_kv, kv,
                        preferred_element_type=jnp.float32) * head_mask_kv
        k_bd = kv_bd[:, :D]                                         # (BHT, D)
        v_bd = kv_bd[:, D:]                                         # (BHT, D)

        # Scores (BT, BHT) = q @ k_bd^T.  The implied (128,32) operand transpose
        # is one small XLU push per layer and hides under MXU slack at this size.
        s = jax.lax.dot_general(q, k_bd, (((1,), (1,)), ((), ())),
                                preferred_element_type=jnp.float32)
        s = s * scale + bias_big
        # Row-global max is valid (per-block shift invariance).  Fully-masked
        # cross-batch blocks give exp == 0; +1e-30 below keeps the approximate
        # reciprocal finite and their contribution exactly zero.
        s = s - jnp.max(s, axis=-1, keepdims=True)
        p = jnp.exp(s)
        denom = jnp.dot(p, blk, preferred_element_type=jnp.float32)   # block sums
        p = p * pl.reciprocal(denom + 1e-30, approx=True)
        ctx = jnp.dot(p, v_bd, preferred_element_type=jnp.float32)    # (BT, D)

        x = x + jnp.dot(ctx, wo_ref[l], preferred_element_type=jnp.float32) + bo

        # ---- feed-forward block (pre-norm) ----
        h2 = layer_norm(x, ln2_g, ln2_b)
        f = jnp.maximum(
            jnp.dot(h2, w1_ref[l], preferred_element_type=jnp.float32) + b1_ref[l],
            0.0)
        x = x + jnp.dot(f, w2_ref[l], preferred_element_type=jnp.float32) + b2

    # Output projection, lane-dense (columns padded to a multiple of 128).
    o_ref[...] = (jnp.dot(x, out_w_ref[...], preferred_element_type=jnp.float32)
                  + out_b_ref[...])


# ----------------------------------------------------------------------------
# Parameter construction (deterministic; per-layer weights stacked).
# ----------------------------------------------------------------------------
def init_params(key, input_size, d_model, n_neurons, n_fr_bins, max_trial_length):
    dff = 4 * d_model
    keys = jax.random.split(key, 2 + NUM_LAYERS)

    def dense(k, fan_in, fan_out):
        k1, k2 = jax.random.split(k)
        lim = 1.0 / math.sqrt(fan_in)
        w = jax.random.uniform(k1, (fan_in, fan_out), jnp.float32, -lim, lim)
        b = jax.random.uniform(k2, (1, fan_out), jnp.float32, -lim, lim)
        return w, b

    params = {}
    in_w, params["in_b"] = dense(keys[0], input_size, d_model)
    params["in_w_spk"] = in_w[:n_neurons]            # (n_neurons, D)
    params["in_w_vel"] = in_w[n_neurons:]            # (vel_dim,   D)

    # Output projection padded to a lane-dense multiple of 128 columns.
    n_out = n_neurons * n_fr_bins
    n_out_pad = ((n_out + 127) // 128) * 128
    ow, ob = dense(keys[1], d_model, n_out)
    params["out_w"] = jnp.zeros((d_model, n_out_pad), jnp.float32).at[:, :n_out].set(ow)
    params["out_b"] = jnp.zeros((1, n_out_pad), jnp.float32).at[:, :n_out].set(ob)

    wqkv, bqkv, wo, w1, b1, w2, vecs = [], [], [], [], [], [], []
    for i in range(NUM_LAYERS):
        lk = jax.random.split(keys[2 + i], 6)
        wq, bq = dense(lk[0], d_model, d_model)
        wk, bk = dense(lk[1], d_model, d_model)
        wv, bv = dense(lk[2], d_model, d_model)
        wo_i, bo_i = dense(lk[3], d_model, d_model)
        w1_i, b1_i = dense(lk[4], d_model, dff)
        w2_i, b2_i = dense(lk[5], dff, d_model)
        wqkv.append(jnp.concatenate([wq, wk, wv], axis=1))   # (D, 3D) fused QKV
        bqkv.append(jnp.concatenate([bq, bk, bv], axis=1))   # (1, 3D)
        wo.append(wo_i)
        w1.append(w1_i)
        b1.append(b1_i)
        w2.append(w2_i)
        vecs.append(jnp.stack([                              # packed small vectors
            jnp.ones((d_model,), jnp.float32),               # ln1 gain
            jnp.zeros((d_model,), jnp.float32),              # ln1 bias
            jnp.ones((d_model,), jnp.float32),               # ln2 gain
            jnp.zeros((d_model,), jnp.float32),              # ln2 bias
            bo_i[0],                                         # attn out-proj bias
            b2_i[0],                                         # ffn second bias
        ], axis=0))                                          # (6, D)

    params["wqkv"] = jnp.stack(wqkv)
    params["bqkv"] = jnp.stack(bqkv)
    params["wo"] = jnp.stack(wo)
    params["w1"] = jnp.stack(w1)
    params["b1"] = jnp.stack(b1)
    params["w2"] = jnp.stack(w2)
    params["vecs"] = jnp.stack(vecs)

    # PositionalEncoding buffer pe[max_len, 1, d_model] — matches the module,
    # including its log(2*max_len) div_term.
    position = jnp.arange(max_trial_length, dtype=jnp.float32)[:, None]
    div_term = jnp.exp(jnp.arange(0, d_model, 2, dtype=jnp.float32)
                       * (-math.log(2 * max_trial_length) / d_model))
    pe = jnp.zeros((max_trial_length, 1, d_model), jnp.float32)
    pe = pe.at[:, 0, 0::2].set(jnp.sin(position * div_term))
    pe = pe.at[:, 0, 1::2].set(jnp.cos(position * div_term))
    params["pe"] = pe
    return params


# ----------------------------------------------------------------------------
# Constant helper matrices for the folded (batch+head) block-diagonal attention.
# Built ONCE (outside the jitted forward) and reused every call.
# ----------------------------------------------------------------------------
def build_constants(params, B, T):
    D = params["in_w_spk"].shape[1]
    H = NHEAD
    Dh = D // H
    BT = B * T
    BHT = B * H * T

    r = jnp.arange(BT)
    b_r, t_r = r // T, r % T
    c = jnp.arange(BHT)
    b_c, h_c, t_c = c // (H * T), (c % (H * T)) // T, c % T
    d = jnp.arange(D)

    # Additive score bias: 0 where same batch AND causal (t_key <= t_query),
    # else a large negative (f32-safe stand-in for the module's -inf mask).
    keep = (b_c[None, :] == b_r[:, None]) & (t_c[None, :] <= t_r[:, None])
    bias_big = jnp.where(keep, 0.0, -1e30).astype(jnp.float32)            # (BT, BHT)

    repl_kv = ((b_c[:, None] == b_r[None, :]) &
               (t_c[:, None] == t_r[None, :])).astype(jnp.float32)        # (BHT, BT)
    head_mask = (h_c[:, None] == (d[None, :] // Dh)).astype(jnp.float32)  # (BHT, D)
    head_mask_kv = jnp.concatenate([head_mask, head_mask], axis=1)        # (BHT, 2D)
    blk = ((b_c[:, None] == b_c[None, :]) &
           (h_c[:, None] == h_c[None, :])).astype(jnp.float32)            # (BHT, BHT)

    # pe row for flat row r = b*T + t is pe[b] (the module's batch-indexed add).
    pe_full = jnp.repeat(params["pe"][:B, 0, :], T, axis=0)               # (BT, D)

    return {"bias_big": bias_big, "repl_kv": repl_kv,
            "head_mask_kv": head_mask_kv, "blk": blk, "pe_full": pe_full}


# ----------------------------------------------------------------------------
# Forward pass wrapper: one pallas_call for the whole model, jitted end-to-end.
# ----------------------------------------------------------------------------
@functools.partial(jax.jit, static_argnames=("n_neurons", "n_fr_bins"))
def transformer_forward(params, consts, spikes, velocities, *, n_neurons, n_fr_bins):
    B, T, _ = spikes.shape
    BT = B * T
    n_out = n_neurons * n_fr_bins
    n_out_pad = params["out_w"].shape[1]

    # Pure reshapes (no copy); feature concat happens inside the kernel as two
    # matmuls against the split input-projection weight.
    spk = spikes.reshape(BT, -1)
    vel = velocities.reshape(BT, -1)

    kernel = functools.partial(_fused_forward_kernel,
                               num_layers=NUM_LAYERS, nhead=NHEAD)

    vmem = pl.BlockSpec(memory_space=pltpu.MemorySpace.VMEM)
    inputs = (spk, vel, consts["pe_full"],
              params["in_w_spk"], params["in_w_vel"], params["in_b"],
              params["wqkv"], params["bqkv"], params["wo"],
              params["w1"], params["b1"], params["w2"],
              params["vecs"], params["out_w"], params["out_b"],
              consts["bias_big"], consts["repl_kv"],
              consts["head_mask_kv"], consts["blk"])

    # Single kernel invocation (no grid): everything resident in VMEM (<1 MiB).
    # TODO(synk): if d_model / num_layers scale up, add an 'arbitrary' layer grid
    #             axis + pl.Buffered(1) weight specs to respect v7x's 64 MiB VMEM.
    y = pl.pallas_call(
        kernel,
        out_shape=jax.ShapeDtypeStruct((BT, n_out_pad), jnp.float32),
        in_specs=[vmem] * len(inputs),
        out_specs=vmem,
    )(*inputs)

    # Drop lane padding, then nn.Unflatten(2, (n_neurons, n_fr_bins)).
    return y[:, :n_out].reshape(B, T, n_neurons, n_fr_bins)


if __name__ == "__main__":
    # Small shapes consistent with the module's forward.
    B, T = 2, 8                       # batch, n_context_bins
    n_neurons, n_fr_bins = 12, 2
    vel_dim = 2
    input_size = n_neurons + vel_dim  # spikes ++ velocities along feature dim
    d_model = 32                      # nhead=8 -> head_dim=4
    max_trial_length = 16

    key = jax.random.PRNGKey(0)
    k_param, k_spk, k_vel = jax.random.split(key, 3)
    params = init_params(k_param, input_size, d_model, n_neurons, n_fr_bins,
                         max_trial_length)
    consts = build_constants(params, B, T)

    spikes = jax.random.normal(k_spk, (B, T, n_neurons), jnp.float32)
    velocities = jax.random.normal(k_vel, (B, T, vel_dim), jnp.float32)

    out = transformer_forward(params, consts, spikes, velocities,
                              n_neurons=n_neurons, n_fr_bins=n_fr_bins)
    out = jax.block_until_ready(out)
    assert out.shape == (B, T, n_neurons, n_fr_bins)
    assert bool(jnp.all(jnp.isfinite(out)))
    print("KERNEL_OK")
</pallas_src>

<mosaic_0001>
module attributes {stable_mosaic.version = 11 : i64} {
  func.func @_fused_forward_kernel(%arg0: memref<16x12xf32, #tpu.memory_space<vmem>>, %arg1: memref<16x2xf32, #tpu.memory_space<vmem>>, %arg2: memref<16x32xf32, #tpu.memory_space<vmem>>, %arg3: memref<12x32xf32, #tpu.memory_space<vmem>>, %arg4: memref<2x32xf32, #tpu.memory_space<vmem>>, %arg5: memref<1x32xf32, #tpu.memory_space<vmem>>, %arg6: memref<4x32x96xf32, #tpu.memory_space<vmem>>, %arg7: memref<4x1x96xf32, #tpu.memory_space<vmem>>, %arg8: memref<4x32x32xf32, #tpu.memory_space<vmem>>, %arg9: memref<4x32x128xf32, #tpu.memory_space<vmem>>, %arg10: memref<4x1x128xf32, #tpu.memory_space<vmem>>, %arg11: memref<4x128x32xf32, #tpu.memory_space<vmem>>, %arg12: memref<4x6x32xf32, #tpu.memory_space<vmem>>, %arg13: memref<32x128xf32, #tpu.memory_space<vmem>>, %arg14: memref<1x128xf32, #tpu.memory_space<vmem>>, %arg15: memref<16x128xf32, #tpu.memory_space<vmem>>, %arg16: memref<128x16xf32, #tpu.memory_space<vmem>>, %arg17: memref<128x64xf32, #tpu.memory_space<vmem>>, %arg18: memref<128x128xf32, #tpu.memory_space<vmem>>, %arg19: memref<16x128xf32, #tpu.memory_space<vmem>>) attributes {dimension_semantics = [], scalar_prefetch = 0 : i64, scratch_operands = 0 : i64, tpu.core_type = #tpu.core_type<tc>} {
    %c0 = arith.constant 0 : index
    %c0_0 = arith.constant 0 : index
    %0 = vector.load %arg15[%c0, %c0_0] : memref<16x128xf32, #tpu.memory_space<vmem>>, vector<16x128xf32>
    %c0_1 = arith.constant 0 : index
    %c0_2 = arith.constant 0 : index
    %1 = vector.load %arg16[%c0_1, %c0_2] : memref<128x16xf32, #tpu.memory_space<vmem>>, vector<128x16xf32>
    %c0_3 = arith.constant 0 : index
    %c0_4 = arith.constant 0 : index
    %2 = vector.load %arg17[%c0_3, %c0_4] : memref<128x64xf32, #tpu.memory_space<vmem>>, vector<128x64xf32>
    %c0_5 = arith.constant 0 : index
    %c0_6 = arith.constant 0 : index
    %3 = vector.load %arg18[%c0_5, %c0_6] : memref<128x128xf32, #tpu.memory_space<vmem>>, vector<128x128xf32>
    %c0_7 = arith.constant 0 : index
    %c0_8 = arith.constant 0 : index
    %4 = vector.load %arg0[%c0_7, %c0_8] : memref<16x12xf32, #tpu.memory_space<vmem>>, vector<16x12xf32>
    %c0_9 = arith.constant 0 : index
    %c0_10 = arith.constant 0 : index
    %5 = vector.load %arg3[%c0_9, %c0_10] : memref<12x32xf32, #tpu.memory_space<vmem>>, vector<12x32xf32>
    %cst = arith.constant dense<0.000000e+00> : vector<16x32xf32>
    %6 = tpu.matmul %4, %5, %cst {dimension_numbers = #tpu.dot_dimension_numbers<[1], [0], [0], [1], [0, 0, 1, 1], [], []>} : vector<16x12xf32>, vector<12x32xf32>, vector<16x32xf32> -> vector<16x32xf32>
    %c0_11 = arith.constant 0 : index
    %c0_12 = arith.constant 0 : index
    %7 = vector.load %arg1[%c0_11, %c0_12] : memref<16x2xf32, #tpu.memory_space<vmem>>, vector<16x2xf32>
    %c0_13 = arith.constant 0 : index
    %c0_14 = arith.constant 0 : index
    %8 = vector.load %arg4[%c0_13, %c0_14] : memref<2x32xf32, #tpu.memory_space<vmem>>, vector<2x32xf32>
    %cst_15 = arith.constant dense<0.000000e+00> : vector<16x32xf32>
    %9 = tpu.matmul %7, %8, %cst_15 {dimension_numbers = #tpu.dot_dimension_numbers<[1], [0], [0], [1], [0, 0, 1, 1], [], []>} : vector<16x2xf32>, vector<2x32xf32>, vector<16x32xf32> -> vector<16x32xf32>
    %10 = arith.addf %6, %9 : vector<16x32xf32>
    %c0_16 = arith.constant 0 : index
    %c0_17 = arith.constant 0 : index
    %11 = vector.load %arg5[%c0_16, %c0_17] : memref<1x32xf32, #tpu.memory_space<vmem>>, vector<1x32xf32>
    %12 = vector.broadcast %11 : vector<1x32xf32> to vector<16x32xf32>
    %13 = arith.addf %10, %12 : vector<16x32xf32>
    %c0_18 = arith.constant 0 : index
    %c0_19 = arith.constant 0 : index
    %14 = vector.load %arg2[%c0_18, %c0_19] : memref<16x32xf32, #tpu.memory_space<vmem>>, vector<16x32xf32>
    %15 = arith.addf %13, %14 : vector<16x32xf32>
    %c0_20 = arith.constant 0 : index
    %c0_21 = arith.constant 0 : index
    %c0_22 = arith.constant 0 : index
    %16 = vector.load %arg12[%c0_20, %c0_21, %c0_22] : memref<4x6x32xf32, #tpu.memory_space<vmem>>, vector<1x6x32xf32>
    %17 = vector.shape_cast %16 : vector<1x6x32xf32> to vector<6x32xf32>
    %18 = vector.extract_strided_slice %17 {offsets = [0, 0], sizes = [1, 32], strides = [1, 1]} : vector<6x32xf32> to vector<1x32xf32>
    %19 = vector.extract_strided_slice %17 {offsets = [1, 0], sizes = [1, 32], strides = [1, 1]} : vector<6x32xf32> to vector<1x32xf32>
    %20 = vector.extract_strided_slice %17 {offsets = [2, 0], sizes = [1, 32], strides = [1, 1]} : vector<6x32xf32> to vector<1x32xf32>
    %21 = vector.extract_strided_slice %17 {offsets = [3, 0], sizes = [1, 32], strides = [1, 1]} : vector<6x32xf32> to vector<1x32xf32>
    %22 = vector.extract_strided_slice %17 {offsets = [4, 0], sizes = [1, 32], strides = [1, 1]} : vector<6x32xf32> to vector<1x32xf32>
    %23 = vector.extract_strided_slice %17 {offsets = [5, 0], sizes = [1, 32], strides = [1, 1]} : vector<6x32xf32> to vector<1x32xf32>
    %cst_23 = arith.constant dense<0.000000e+00> : vector<16xf32>
    %24 = vector.multi_reduction <add>, %15, %cst_23 [1] : vector<16x32xf32> to vector<16xf32>
    %25 = vector.shape_cast %24 : vector<16xf32> to vector<16x1xf32>
    %cst_24 = arith.constant 3.200000e+01 : f32
    %26 = vector.broadcast %cst_24 : f32 to vector<16x1xf32>
    %27 = arith.divf %25, %26 : vector<16x1xf32>
    %28 = vector.broadcast %27 : vector<16x1xf32> to vector<16x32xf32>
    %29 = arith.subf %15, %28 : vector<16x32xf32>
    %30 = arith.mulf %29, %29 : vector<16x32xf32>
    %cst_25 = arith.constant dense<0.000000e+00> : vector<16xf32>
    %31 = vector.multi_reduction <add>, %30, %cst_25 [1] : vector<16x32xf32> to vector<16xf32>
    %32 = vector.shape_cast %31 : vector<16xf32> to vector<16x1xf32>
    %cst_26 = arith.constant 3.200000e+01 : f32
    %33 = vector.broadcast %cst_26 : f32 to vector<16x1xf32>
    %34 = arith.divf %32, %33 : vector<16x1xf32>
    %cst_27 = arith.constant 9.99999974E-6 : f32
    %35 = vector.broadcast %cst_27 : f32 to vector<16x1xf32>
    %36 = arith.addf %34, %35 : vector<16x1xf32>
    %37 = math.rsqrt %36 : vector<16x1xf32>
    %38 = vector.broadcast %37 : vector<16x1xf32> to vector<16x32xf32>
    %39 = arith.mulf %29, %38 : vector<16x32xf32>
    %40 = vector.broadcast %18 : vector<1x32xf32> to vector<16x32xf32>
    %41 = arith.mulf %39, %40 : vector<16x32xf32>
    %42 = vector.broadcast %19 : vector<1x32xf32> to vector<16x32xf32>
    %43 = arith.addf %41, %42 : vector<16x32xf32>
    %c0_28 = arith.constant 0 : index
    %c0_29 = arith.constant 0 : index
    %c0_30 = arith.constant 0 : index
    %44 = vector.load %arg6[%c0_28, %c0_29, %c0_30] : memref<4x32x96xf32, #tpu.memory_space<vmem>>, vector<1x32x96xf32>
    %45 = vector.shape_cast %44 : vector<1x32x96xf32> to vector<32x96xf32>
    %cst_31 = arith.constant dense<0.000000e+00> : vector<16x96xf32>
    %46 = tpu.matmul %43, %45, %cst_31 {dimension_numbers = #tpu.dot_dimension_numbers<[1], [0], [0], [1], [0, 0, 1, 1], [], []>} : vector<16x32xf32>, vector<32x96xf32>, vector<16x96xf32> -> vector<16x96xf32>
    %c0_32 = arith.constant 0 : index
    %c0_33 = arith.constant 0 : index
    %c0_34 = arith.constant 0 : index
    %47 = vector.load %arg7[%c0_32, %c0_33, %c0_34] : memref<4x1x96xf32, #tpu.memory_space<vmem>>, vector<1x1x96xf32>
    %48 = vector.shape_cast %47 : vector<1x1x96xf32> to vector<1x96xf32>
    %49 = vector.broadcast %48 : vector<1x96xf32> to vector<16x96xf32>
    %50 = arith.addf %46, %49 : vector<16x96xf32>
    %51 = vector.extract_strided_slice %50 {offsets = [0, 0], sizes = [16, 32], strides = [1, 1]} : vector<16x96xf32> to vector<16x32xf32>
    %52 = vector.extract_strided_slice %50 {offsets = [0, 32], sizes = [16, 64], strides = [1, 1]} : vector<16x96xf32> to vector<16x64xf32>
    %cst_35 = arith.constant dense<0.000000e+00> : vector<128x64xf32>
    %53 = tpu.matmul %1, %52, %cst_35 {dimension_numbers = #tpu.dot_dimension_numbers<[1], [0], [0], [1], [0, 0, 1, 1], [], []>} : vector<128x16xf32>, vector<16x64xf32>, vector<128x64xf32> -> vector<128x64xf32>
    %54 = arith.mulf %53, %2 : vector<128x64xf32>
    %55 = vector.extract_strided_slice %54 {offsets = [0, 0], sizes = [128, 32], strides = [1, 1]} : vector<128x64xf32> to vector<128x32xf32>
    %56 = vector.extract_strided_slice %54 {offsets = [0, 32], sizes = [128, 32], strides = [1, 1]} : vector<128x64xf32> to vector<128x32xf32>
    %cst_36 = arith.constant dense<0.000000e+00> : vector<16x128xf32>
    %57 = tpu.matmul %51, %55, %cst_36 {dimension_numbers = #tpu.dot_dimension_numbers<[1], [1], [0], [0], [0, 0, 1, 0], [], []>} : vector<16x32xf32>, vector<128x32xf32>, vector<16x128xf32> -> vector<16x128xf32>
    %cst_37 = arith.constant 5.000000e-01 : f32
    %58 = vector.broadcast %cst_37 : f32 to vector<16x128xf32>
    %59 = arith.mulf %57, %58 : vector<16x128xf32>
    %60 = arith.addf %59, %0 : vector<16x128xf32>
    %cst_38 = arith.constant dense<0xFF800000> : vector<16xf32>
    %61 = vector.multi_reduction <maximumf>, %60, %cst_38 [1] : vector<16x128xf32> to vector<16xf32>
    %62 = vector.shape_cast %61 : vector<16xf32> to vector<16x1xf32>
    %63 = vector.broadcast %62 : vector<16x1xf32> to vector<16x128xf32>
    %64 = arith.subf %60, %63 : vector<16x128xf32>
    %65 = math.exp %64 : vector<16x128xf32>
    %cst_39 = arith.constant dense<0.000000e+00> : vector<16x128xf32>
    %66 = tpu.matmul %65, %3, %cst_39 {dimension_numbers = #tpu.dot_dimension_numbers<[1], [0], [0], [1], [0, 0, 1, 1], [], []>} : vector<16x128xf32>, vector<128x128xf32>, vector<16x128xf32> -> vector<16x128xf32>
    %cst_40 = arith.constant 1.000000e-30 : f32
    %67 = vector.broadcast %cst_40 : f32 to vector<16x128xf32>
    %68 = arith.addf %66, %67 : vector<16x128xf32>
    %69 = tpu.reciprocal %68 {approx = true} : vector<16x128xf32> -> vector<16x128xf32>
    %70 = arith.mulf %65, %69 : vector<16x128xf32>
    %cst_41 = arith.constant dense<0.000000e+00> : vector<16x32xf32>
    %71 = tpu.matmul %70, %56, %cst_41 {dimension_numbers = #tpu.dot_dimension_numbers<[1], [0], [0], [1], [0, 0, 1, 1], [], []>} : vector<16x128xf32>, vector<128x32xf32>, vector<16x32xf32> -> vector<16x32xf32>
    %c0_42 = arith.constant 0 : index
    %c0_43 = arith.constant 0 : index
    %c0_44 = arith.constant 0 : index
    %72 = vector.load %arg8[%c0_42, %c0_43, %c0_44] : memref<4x32x32xf32, #tpu.memory_space<vmem>>, vector<1x32x32xf32>
    %73 = vector.shape_cast %72 : vector<1x32x32xf32> to vector<32x32xf32>
    %cst_45 = arith.constant dense<0.000000e+00> : vector<16x32xf32>
    %74 = tpu.matmul %71, %73, %cst_45 {dimension_numbers = #tpu.dot_dimension_numbers<[1], [0], [0], [1], [0, 0, 1, 1], [], []>} : vector<16x32xf32>, vector<32x32xf32>, vector<16x32xf32> -> vector<16x32xf32>
    %75 = arith.addf %15, %74 : vector<16x32xf32>
    %76 = vector.broadcast %22 : vector<1x32xf32> to vector<16x32xf32>
    %77 = arith.addf %75, %76 : vector<16x32xf32>
    %cst_46 = arith.constant dense<0.000000e+00> : vector<16xf32>
    %78 = vector.multi_reduction <add>, %77, %cst_46 [1] : vector<16x32xf32> to vector<16xf32>
    %79 = vector.shape_cast %78 : vector<16xf32> to vector<16x1xf32>
    %cst_47 = arith.constant 3.200000e+01 : f32
    %80 = vector.broadcast %cst_47 : f32 to vector<16x1xf32>
    %81 = arith.divf %79, %80 : vector<16x1xf32>
    %82 = vector.broadcast %81 : vector<16x1xf32> to vector<16x32xf32>
    %83 = arith.subf %77, %82 : vector<16x32xf32>
    %84 = arith.mulf %83, %83 : vector<16x32xf32>
    %cst_48 = arith.constant dense<0.000000e+00> : vector<16xf32>
    %85 = vector.multi_reduction <add>, %84, %cst_48 [1] : vector<16x32xf32> to vector<16xf32>
    %86 = vector.shape_cast %85 : vector<16xf32> to vector<16x1xf32>
    %cst_49 = arith.constant 3.200000e+01 : f32
    %87 = vector.broadcast %cst_49 : f32 to vector<16x1xf32>
    %88 = arith.divf %86, %87 : vector<16x1xf32>
    %cst_50 = arith.constant 9.99999974E-6 : f32
    %89 = vector.broadcast %cst_50 : f32 to vector<16x1xf32>
    %90 = arith.addf %88, %89 : vector<16x1xf32>
    %91 = math.rsqrt %90 : vector<16x1xf32>
    %92 = vector.broadcast %91 : vector<16x1xf32> to vector<16x32xf32>
    %93 = arith.mulf %83, %92 : vector<16x32xf32>
    %94 = vector.broadcast %20 : vector<1x32xf32> to vector<16x32xf32>
    %95 = arith.mulf %93, %94 : vector<16x32xf32>
    %96 = vector.broadcast %21 : vector<1x32xf32> to vector<16x32xf32>
    %97 = arith.addf %95, %96 : vector<16x32xf32>
    %c0_51 = arith.constant 0 : index
    %c0_52 = arith.constant 0 : index
    %c0_53 = arith.constant 0 : index
    %98 = vector.load %arg9[%c0_51, %c0_52, %c0_53] : memref<4x32x128xf32, #tpu.memory_space<vmem>>, vector<1x32x128xf32>
    %99 = vector.shape_cast %98 : vector<1x32x128xf32> to vector<32x128xf32>
    %cst_54 = arith.constant dense<0.000000e+00> : vector<16x128xf32>
    %100 = tpu.matmul %97, %99, %cst_54 {dimension_numbers = #tpu.dot_dimension_numbers<[1], [0], [0], [1], [0, 0, 1, 1], [], []>} : vector<16x32xf32>, vector<32x128xf32>, vector<16x128xf32> -> vector<16x128xf32>
    %c0_55 = arith.constant 0 : index
    %c0_56 = arith.constant 0 : index
    %c0_57 = arith.constant 0 : index
    %101 = vector.load %arg10[%c0_55, %c0_56, %c0_57] : memref<4x1x128xf32, #tpu.memory_space<vmem>>, vector<1x1x128xf32>
    %102 = vector.shape_cast %101 : vector<1x1x128xf32> to vector<1x128xf32>
    %103 = vector.broadcast %102 : vector<1x128xf32> to vector<16x128xf32>
    %104 = arith.addf %100, %103 : vector<16x128xf32>
    %cst_58 = arith.constant 0.000000e+00 : f32
    %105 = vector.broadcast %cst_58 : f32 to vector<16x128xf32>
    %106 = arith.maximumf %104, %105 : vector<16x128xf32>
    %c0_59 = arith.constant 0 : index
    %c0_60 = arith.constant 0 : index
    %c0_61 = arith.constant 0 : index
    %107 = vector.load %arg11[%c0_59, %c0_60, %c0_61] : memref<4x128x32xf32, #tpu.memory_space<vmem>>, vector<1x128x32xf32>
    %108 = vector.shape_cast %107 : vector<1x128x32xf32> to vector<128x32xf32>
    %cst_62 = arith.constant dense<0.000000e+00> : vector<16x32xf32>
    %109 = tpu.matmul %106, %108, %cst_62 {dimension_numbers = #tpu.dot_dimension_numbers<[1], [0], [0], [1], [0, 0, 1, 1], [], []>} : vector<16x128xf32>, vector<128x32xf32>, vector<16x32xf32> -> vector<16x32xf32>
    %110 = arith.addf %77, %109 : vector<16x32xf32>
    %111 = vector.broadcast %23 : vector<1x32xf32> to vector<16x32xf32>
    %112 = arith.addf %110, %111 : vector<16x32xf32>
    %c1 = arith.constant 1 : index
    %c0_63 = arith.constant 0 : index
    %c0_64 = arith.constant 0 : index
    %113 = vector.load %arg12[%c1, %c0_63, %c0_64] : memref<4x6x32xf32, #tpu.memory_space<vmem>>, vector<1x6x32xf32>
    %114 = vector.shape_cast %113 : vector<1x6x32xf32> to vector<6x32xf32>
    %115 = vector.extract_strided_slice %114 {offsets = [0, 0], sizes = [1, 32], strides = [1, 1]} : vector<6x32xf32> to vector<1x32xf32>
    %116 = vector.extract_strided_slice %114 {offsets = [1, 0], sizes = [1, 32], strides = [1, 1]} : vector<6x32xf32> to vector<1x32xf32>
    %117 = vector.extract_strided_slice %114 {offsets = [2, 0], sizes = [1, 32], strides = [1, 1]} : vector<6x32xf32> to vector<1x32xf32>
    %118 = vector.extract_strided_slice %114 {offsets = [3, 0], sizes = [1, 32], strides = [1, 1]} : vector<6x32xf32> to vector<1x32xf32>
    %119 = vector.extract_strided_slice %114 {offsets = [4, 0], sizes = [1, 32], strides = [1, 1]} : vector<6x32xf32> to vector<1x32xf32>
    %120 = vector.extract_strided_slice %114 {offsets = [5, 0], sizes = [1, 32], strides = [1, 1]} : vector<6x32xf32> to vector<1x32xf32>
    %cst_65 = arith.constant dense<0.000000e+00> : vector<16xf32>
    %121 = vector.multi_reduction <add>, %112, %cst_65 [1] : vector<16x32xf32> to vector<16xf32>
    %122 = vector.shape_cast %121 : vector<16xf32> to vector<16x1xf32>
    %cst_66 = arith.constant 3.200000e+01 : f32
    %123 = vector.broadcast %cst_66 : f32 to vector<16x1xf32>
    %124 = arith.divf %122, %123 : vector<16x1xf32>
    %125 = vector.broadcast %124 : vector<16x1xf32> to vector<16x32xf32>
    %126 = arith.subf %112, %125 : vector<16x32xf32>
    %127 = arith.mulf %126, %126 : vector<16x32xf32>
    %cst_67 = arith.constant dense<0.000000e+00> : vector<16xf32>
    %128 = vector.multi_reduction <add>, %127, %cst_67 [1] : vector<16x32xf32> to vector<16xf32>
    %129 = vector.shape_cast %128 : vector<16xf32> to vector<16x1xf32>
    %cst_68 = arith.constant 3.200000e+01 : f32
    %130 = vector.broadcast %cst_68 : f32 to vector<16x1xf32>
    %131 = arith.divf %129, %130 : vector<16x1xf32>
    %cst_69 = arith.constant 9.99999974E-6 : f32
    %132 = vector.broadcast %cst_69 : f32 to vector<16x1xf32>
    %133 = arith.addf %131, %132 : vector<16x1xf32>
    %134 = math.rsqrt %133 : vector<16x1xf32>
    %135 = vector.broadcast %134 : vector<16x1xf32> to vector<16x32xf32>
    %136 = arith.mulf %126, %135 : vector<16x32xf32>
    %137 = vector.broadcast %115 : vector<1x32xf32> to vector<16x32xf32>
    %138 = arith.mulf %136, %137 : vector<16x32xf32>
    %139 = vector.broadcast %116 : vector<1x32xf32> to vector<16x32xf32>
    %140 = arith.addf %138, %139 : vector<16x32xf32>
    %c1_70 = arith.constant 1 : index
    %c0_71 = arith.constant 0 : index
    %c0_72 = arith.constant 0 : index
    %141 = vector.load %arg6[%c1_70, %c0_71, %c0_72] : memref<4x32x96xf32, #tpu.memory_space<vmem>>, vector<1x32x96xf32>
    %142 = vector.shape_cast %141 : vector<1x32x96xf32> to vector<32x96xf32>
    %cst_73 = arith.constant dense<0.000000e+00> : vector<16x96xf32>
    %143 = tpu.matmul %140, %142, %cst_73 {dimension_numbers = #tpu.dot_dimension_numbers<[1], [0], [0], [1], [0, 0, 1, 1], [], []>} : vector<16x32xf32>, vector<32x96xf32>, vector<16x96xf32> -> vector<16x96xf32>
    %c1_74 = arith.constant 1 : index
    %c0_75 = arith.constant 0 : index
    %c0_76 = arith.constant 0 : index
    %144 = vector.load %arg7[%c1_74, %c0_75, %c0_76] : memref<4x1x96xf32, #tpu.memory_space<vmem>>, vector<1x1x96xf32>
    %145 = vector.shape_cast %144 : vector<1x1x96xf32> to vector<1x96xf32>
    %146 = vector.broadcast %145 : vector<1x96xf32> to vector<16x96xf32>
    %147 = arith.addf %143, %146 : vector<16x96xf32>
    %148 = vector.extract_strided_slice %147 {offsets = [0, 0], sizes = [16, 32], strides = [1, 1]} : vector<16x96xf32> to vector<16x32xf32>
    %149 = vector.extract_strided_slice %147 {offsets = [0, 32], sizes = [16, 64], strides = [1, 1]} : vector<16x96xf32> to vector<16x64xf32>
    %cst_77 = arith.constant dense<0.000000e+00> : vector<128x64xf32>
    %150 = tpu.matmul %1, %149, %cst_77 {dimension_numbers = #tpu.dot_dimension_numbers<[1], [0], [0], [1], [0, 0, 1, 1], [], []>} : vector<128x16xf32>, vector<16x64xf32>, vector<128x64xf32> -> vector<128x64xf32>
    %151 = arith.mulf %150, %2 : vector<128x64xf32>
    %152 = vector.extract_strided_slice %151 {offsets = [0, 0], sizes = [128, 32], strides = [1, 1]} : vector<128x64xf32> to vector<128x32xf32>
    %153 = vector.extract_strided_slice %151 {offsets = [0, 32], sizes = [128, 32], strides = [1, 1]} : vector<128x64xf32> to vector<128x32xf32>
    %cst_78 = arith.constant dense<0.000000e+00> : vector<16x128xf32>
    %154 = tpu.matmul %148, %152, %cst_78 {dimension_numbers = #tpu.dot_dimension_numbers<[1], [1], [0], [0], [0, 0, 1, 0], [], []>} : vector<16x32xf32>, vector<128x32xf32>, vector<16x128xf32> -> vector<16x128xf32>
    %cst_79 = arith.constant 5.000000e-01 : f32
    %155 = vector.broadcast %cst_79 : f32 to vector<16x128xf32>
    %156 = arith.mulf %154, %155 : vector<16x128xf32>
    %157 = arith.addf %156, %0 : vector<16x128xf32>
    %cst_80 = arith.constant dense<0xFF800000> : vector<16xf32>
    %158 = vector.multi_reduction <maximumf>, %157, %cst_80 [1] : vector<16x128xf32> to vector<16xf32>
    %159 = vector.shape_cast %158 : vector<16xf32> to vector<16x1xf32>
    %160 = vector.broadcast %159 : vector<16x1xf32> to vector<16x128xf32>
    %161 = arith.subf %157, %160 : vector<16x128xf32>
    %162 = math.exp %161 : vector<16x128xf32>
    %cst_81 = arith.constant dense<0.000000e+00> : vector<16x128xf32>
    %163 = tpu.matmul %162, %3, %cst_81 {dimension_numbers = #tpu.dot_dimension_numbers<[1], [0], [0], [1], [0, 0, 1, 1], [], []>} : vector<16x128xf32>, vector<128x128xf32>, vector<16x128xf32> -> vector<16x128xf32>
    %cst_82 = arith.constant 1.000000e-30 : f32
    %164 = vector.broadcast %cst_82 : f32 to vector<16x128xf32>
    %165 = arith.addf %163, %164 : vector<16x128xf32>
    %166 = tpu.reciprocal %165 {approx = true} : vector<16x128xf32> -> vector<16x128xf32>
    %167 = arith.mulf %162, %166 : vector<16x128xf32>
    %cst_83 = arith.constant dense<0.000000e+00> : vector<16x32xf32>
    %168 = tpu.matmul %167, %153, %cst_83 {dimension_numbers = #tpu.dot_dimension_numbers<[1], [0], [0], [1], [0, 0, 1, 1], [], []>} : vector<16x128xf32>, vector<128x32xf32>, vector<16x32xf32> -> vector<16x32xf32>
    %c1_84 = arith.constant 1 : index
    %c0_85 = arith.constant 0 : index
    %c0_86 = arith.constant 0 : index
    %169 = vector.load %arg8[%c1_84, %c0_85, %c0_86] : memref<4x32x32xf32, #tpu.memory_space<vmem>>, vector<1x32x32xf32>
    %170 = vector.shape_cast %169 : vector<1x32x32xf32> to vector<32x32xf32>
    %cst_87 = arith.constant dense<0.000000e+00> : vector<16x32xf32>
    %171 = tpu.matmul %168, %170, %cst_87 {dimension_numbers = #tpu.dot_dimension_numbers<[1], [0], [0], [1], [0, 0, 1, 1], [], []>} : vector<16x32xf32>, vector<32x32xf32>, vector<16x32xf32> -> vector<16x32xf32>
    %172 = arith.addf %112, %171 : vector<16x32xf32>
    %173 = vector.broadcast %119 : vector<1x32xf32> to vector<16x32xf32>
    %174 = arith.addf %172, %173 : vector<16x32xf32>
    %cst_88 = arith.constant dense<0.000000e+00> : vector<16xf32>
    %175 = vector.multi_reduction <add>, %174, %cst_88 [1] : vector<16x32xf32> to vector<16xf32>
    %176 = vector.shape_cast %175 : vector<16xf32> to vector<16x1xf32>
    %cst_89 = arith.constant 3.200000e+01 : f32
    %177 = vector.broadcast %cst_89 : f32 to vector<16x1xf32>
    %178 = arith.divf %176, %177 : vector<16x1xf32>
    %179 = vector.broadcast %178 : vector<16x1xf32> to vector<16x32xf32>
    %180 = arith.subf %174, %179 : vector<16x32xf32>
    %181 = arith.mulf %180, %180 : vector<16x32xf32>
    %cst_90 = arith.constant dense<0.000000e+00> : vector<16xf32>
    %182 = vector.multi_reduction <add>, %181, %cst_90 [1] : vector<16x32xf32> to vector<16xf32>
    %183 = vector.shape_cast %182 : vector<16xf32> to vector<16x1xf32>
    %cst_91 = arith.constant 3.200000e+01 : f32
    %184 = vector.broadcast %cst_91 : f32 to vector<16x1xf32>
    %185 = arith.divf %183, %184 : vector<16x1xf32>
    %cst_92 = arith.constant 9.99999974E-6 : f32
    %186 = vector.broadcast %cst_92 : f32 to vector<16x1xf32>
    %187 = arith.addf %185, %186 : vector<16x1xf32>
    %188 = math.rsqrt %187 : vector<16x1xf32>
    %189 = vector.broadcast %188 : vector<16x1xf32> to vector<16x32xf32>
    %190 = arith.mulf %180, %189 : vector<16x32xf32>
    %191 = vector.broadcast %117 : vector<1x32xf32> to vector<16x32xf32>
    %192 = arith.mulf %190, %191 : vector<16x32xf32>
    %193 = vector.broadcast %118 : vector<1x32xf32> to vector<16x32xf32>
    %194 = arith.addf %192, %193 : vector<16x32xf32>
    %c1_93 = arith.constant 1 : index
    %c0_94 = arith.constant 0 : index
    %c0_95 = arith.constant 0 : index
    %195 = vector.load %arg9[%c1_93, %c0_94, %c0_95] : memref<4x32x128xf32, #tpu.memory_space<vmem>>, vector<1x32x128xf32>
    %196 = vector.shape_cast %195 : vector<1x32x128xf32> to vector<32x128xf32>
    %cst_96 = arith.constant dense<0.000000e+00> : vector<16x128xf32>
    %197 = tpu.matmul %194, %196, %cst_96 {dimension_numbers = #tpu.dot_dimension_numbers<[1], [0], [0], [1], [0, 0, 1, 1], [], []>} : vector<16x32xf32>, vector<32x128xf32>, vector<16x128xf32> -> vector<16x128xf32>
    %c1_97 = arith.constant 1 : index
    %c0_98 = arith.constant 0 : index
    %c0_99 = arith.constant 0 : index
    %198 = vector.load %arg10[%c1_97, %c0_98, %c0_99] : memref<4x1x128xf32, #tpu.memory_space<vmem>>, vector<1x1x128xf32>
    %199 = vector.shape_cast %198 : vector<1x1x128xf32> to vector<1x128xf32>
    %200 = vector.broadcast %199 : vector<1x128xf32> to vector<16x128xf32>
    %201 = arith.addf %197, %200 : vector<16x128xf32>
    %cst_100 = arith.constant 0.000000e+00 : f32
    %202 = vector.broadcast %cst_100 : f32 to vector<16x128xf32>
    %203 = arith.maximumf %201, %202 : vector<16x128xf32>
    %c1_101 = arith.constant 1 : index
    %c0_102 = arith.constant 0 : index
    %c0_103 = arith.constant 0 : index
    %204 = vector.load %arg11[%c1_101, %c0_102, %c0_103] : memref<4x128x32xf32, #tpu.memory_space<vmem>>, vector<1x128x32xf32>
    %205 = vector.shape_cast %204 : vector<1x128x32xf32> to vector<128x32xf32>
    %cst_104 = arith.constant dense<0.000000e+00> : vector<16x32xf32>
    %206 = tpu.matmul %203, %205, %cst_104 {dimension_numbers = #tpu.dot_dimension_numbers<[1], [0], [0], [1], [0, 0, 1, 1], [], []>} : vector<16x128xf32>, vector<128x32xf32>, vector<16x32xf32> -> vector<16x32xf32>
    %207 = arith.addf %174, %206 : vector<16x32xf32>
    %208 = vector.broadcast %120 : vector<1x32xf32> to vector<16x32xf32>
    %209 = arith.addf %207, %208 : vector<16x32xf32>
    %c2 = arith.constant 2 : index
    %c0_105 = arith.constant 0 : index
    %c0_106 = arith.constant 0 : index
    %210 = vector.load %arg12[%c2, %c0_105, %c0_106] : memref<4x6x32xf32, #tpu.memory_space<vmem>>, vector<1x6x32xf32>
    %211 = vector.shape_cast %210 : vector<1x6x32xf32> to vector<6x32xf32>
    %212 = vector.extract_strided_slice %211 {offsets = [0, 0], sizes = [1, 32], strides = [1, 1]} : vector<6x32xf32> to vector<1x32xf32>
    %213 = vector.extract_strided_slice %211 {offsets = [1, 0], sizes = [1, 32], strides = [1, 1]} : vector<6x32xf32> to vector<1x32xf32>
    %214 = vector.extract_strided_slice %211 {offsets = [2, 0], sizes = [1, 32], strides = [1, 1]} : vector<6x32xf32> to vector<1x32xf32>
    %215 = vector.extract_strided_slice %211 {offsets = [3, 0], sizes = [1, 32], strides = [1, 1]} : vector<6x32xf32> to vector<1x32xf32>
    %216 = vector.extract_strided_slice %211 {offsets = [4, 0], sizes = [1, 32], strides = [1, 1]} : vector<6x32xf32> to vector<1x32xf32>
    %217 = vector.extract_strided_slice %211 {offsets = [5, 0], sizes = [1, 32], strides = [1, 1]} : vector<6x32xf32> to vector<1x32xf32>
    %cst_107 = arith.constant dense<0.000000e+00> : vector<16xf32>
    %218 = vector.multi_reduction <add>, %209, %cst_107 [1] : vector<16x32xf32> to vector<16xf32>
    %219 = vector.shape_cast %218 : vector<16xf32> to vector<16x1xf32>
    %cst_108 = arith.constant 3.200000e+01 : f32
    %220 = vector.broadcast %cst_108 : f32 to vector<16x1xf32>
    %221 = arith.divf %219, %220 : vector<16x1xf32>
    %222 = vector.broadcast %221 : vector<16x1xf32> to vector<16x32xf32>
    %223 = arith.subf %209, %222 : vector<16x32xf32>
    %224 = arith.mulf %223, %223 : vector<16x32xf32>
    %cst_109 = arith.constant dense<0.000000e+00> : vector<16xf32>
    %225 = vector.multi_reduction <add>, %224, %cst_109 [1] : vector<16x32xf32> to vector<16xf32>
    %226 = vector.shape_cast %225 : vector<16xf32> to vector<16x1xf32>
    %cst_110 = arith.constant 3.200000e+01 : f32
    %227 = vector.broadcast %cst_110 : f32 to vector<16x1xf32>
    %228 = arith.divf %226, %227 : vector<16x1xf32>
    %cst_111 = arith.constant 9.99999974E-6 : f32
    %229 = vector.broadcast %cst_111 : f32 to vector<16x1xf32>
    %230 = arith.addf %228, %229 : vector<16x1xf32>
    %231 = math.rsqrt %230 : vector<16x1xf32>
    %232 = vector.broadcast %231 : vector<16x1xf32> to vector<16x32xf32>
    %233 = arith.mulf %223, %232 : vector<16x32xf32>
    %234 = vector.broadcast %212 : vector<1x32xf32> to vector<16x32xf32>
    %235 = arith.mulf %233, %234 : vector<16x32xf32>
    %236 = vector.broadcast %213 : vector<1x32xf32> to vector<16x32xf32>
    %237 = arith.addf %235, %236 : vector<16x32xf32>
    %c2_112 = arith.constant 2 : index
    %c0_113 = arith.constant 0 : index
    %c0_114 = arith.constant 0 : index
    %238 = vector.load %arg6[%c2_112, %c0_113, %c0_114] : memref<4x32x96xf32, #tpu.memory_space<vmem>>, vector<1x32x96xf32>
    %239 = vector.shape_cast %238 : vector<1x32x96xf32> to vector<32x96xf32>
    %cst_115 = arith.constant dense<0.000000e+00> : vector<16x96xf32>
    %240 = tpu.matmul %237, %239, %cst_115 {dimension_numbers = #tpu.dot_dimension_numbers<[1], [0], [0], [1], [0, 0, 1, 1], [], []>} : vector<16x32xf32>, vector<32x96xf32>, vector<16x96xf32> -> vector<16x96xf32>
    %c2_116 = arith.constant 2 : index
    %c0_117 = arith.constant 0 : index
    %c0_118 = arith.constant 0 : index
    %241 = vector.load %arg7[%c2_116, %c0_117, %c0_118] : memref<4x1x96xf32, #tpu.memory_space<vmem>>, vector<1x1x96xf32>
    %242 = vector.shape_cast %241 : vector<1x1x96xf32> to vector<1x96xf32>
    %243 = vector.broadcast %242 : vector<1x96xf32> to vector<16x96xf32>
    %244 = arith.addf %240, %243 : vector<16x96xf32>
    %245 = vector.extract_strided_slice %244 {offsets = [0, 0], sizes = [16, 32], strides = [1, 1]} : vector<16x96xf32> to vector<16x32xf32>
    %246 = vector.extract_strided_slice %244 {offsets = [0, 32], sizes = [16, 64], strides = [1, 1]} : vector<16x96xf32> to vector<16x64xf32>
    %cst_119 = arith.constant dense<0.000000e+00> : vector<128x64xf32>
    %247 = tpu.matmul %1, %246, %cst_119 {dimension_numbers = #tpu.dot_dimension_numbers<[1], [0], [0], [1], [0, 0, 1, 1], [], []>} : vector<128x16xf32>, vector<16x64xf32>, vector<128x64xf32> -> vector<128x64xf32>
    %248 = arith.mulf %247, %2 : vector<128x64xf32>
    %249 = vector.extract_strided_slice %248 {offsets = [0, 0], sizes = [128, 32], strides = [1, 1]} : vector<128x64xf32> to vector<128x32xf32>
    %250 = vector.extract_strided_slice %248 {offsets = [0, 32], sizes = [128, 32], strides = [1, 1]} : vector<128x64xf32> to vector<128x32xf32>
    %cst_120 = arith.constant dense<0.000000e+00> : vector<16x128xf32>
    %251 = tpu.matmul %245, %249, %cst_120 {dimension_numbers = #tpu.dot_dimension_numbers<[1], [1], [0], [0], [0, 0, 1, 0], [], []>} : vector<16x32xf32>, vector<128x32xf32>, vector<16x128xf32> -> vector<16x128xf32>
    %cst_121 = arith.constant 5.000000e-01 : f32
    %252 = vector.broadcast %cst_121 : f32 to vector<16x128xf32>
    %253 = arith.mulf %251, %252 : vector<16x128xf32>
    %254 = arith.addf %253, %0 : vector<16x128xf32>
    %cst_122 = arith.constant dense<0xFF800000> : vector<16xf32>
    %255 = vector.multi_reduction <maximumf>, %254, %cst_122 [1] : vector<16x128xf32> to vector<16xf32>
    %256 = vector.shape_cast %255 : vector<16xf32> to vector<16x1xf32>
    %257 = vector.broadcast %256 : vector<16x1xf32> to vector<16x128xf32>
    %258 = arith.subf %254, %257 : vector<16x128xf32>
    %259 = math.exp %258 : vector<16x128xf32>
    %cst_123 = arith.constant dense<0.000000e+00> : vector<16x128xf32>
    %260 = tpu.matmul %259, %3, %cst_123 {dimension_numbers = #tpu.dot_dimension_numbers<[1], [0], [0], [1], [0, 0, 1, 1], [], []>} : vector<16x128xf32>, vector<128x128xf32>, vector<16x128xf32> -> vector<16x128xf32>
    %cst_124 = arith.constant 1.000000e-30 : f32
    %261 = vector.broadcast %cst_124 : f32 to vector<16x128xf32>
    %262 = arith.addf %260, %261 : vector<16x128xf32>
    %263 = tpu.reciprocal %262 {approx = true} : vector<16x128xf32> -> vector<16x128xf32>
    %264 = arith.mulf %259, %263 : vector<16x128xf32>
    %cst_125 = arith.constant dense<0.000000e+00> : vector<16x32xf32>
    %265 = tpu.matmul %264, %250, %cst_125 {dimension_numbers = #tpu.dot_dimension_numbers<[1], [0], [0], [1], [0, 0, 1, 1], [], []>} : vector<16x128xf32>, vector<128x32xf32>, vector<16x32xf32> -> vector<16x32xf32>
    %c2_126 = arith.constant 2 : index
    %c0_127 = arith.constant 0 : index
    %c0_128 = arith.constant 0 : index
    %266 = vector.load %arg8[%c2_126, %c0_127, %c0_128] : memref<4x32x32xf32, #tpu.memory_space<vmem>>, vector<1x32x32xf32>
    %267 = vector.shape_cast %266 : vector<1x32x32xf32> to vector<32x32xf32>
    %cst_129 = arith.constant dense<0.000000e+00> : vector<16x32xf32>
    %268 = tpu.matmul %265, %267, %cst_129 {dimension_numbers = #tpu.dot_dimension_numbers<[1], [0], [0], [1], [0, 0, 1, 1], [], []>} : vector<16x32xf32>, vector<32x32xf32>, vector<16x32xf32> -> vector<16x32xf32>
    %269 = arith.addf %209, %268 : vector<16x32xf32>
    %270 = vector.broadcast %216 : vector<1x32xf32> to vector<16x32xf32>
    %271 = arith.addf %269, %270 : vector<16x32xf32>
    %cst_130 = arith.constant dense<0.000000e+00> : vector<16xf32>
    %272 = vector.multi_reduction <add>, %271, %cst_130 [1] : vector<16x32xf32> to vector<16xf32>
    %273 = vector.shape_cast %272 : vector<16xf32> to vector<16x1xf32>
    %cst_131 = arith.constant 3.200000e+01 : f32
    %274 = vector.broadcast %cst_131 : f32 to vector<16x1xf32>
    %275 = arith.divf %273, %274 : vector<16x1xf32>
    %276 = vector.broadcast %275 : vector<16x1xf32> to vector<16x32xf32>
    %277 = arith.subf %271, %276 : vector<16x32xf32>
    %278 = arith.mulf %277, %277 : vector<16x32xf32>
    %cst_132 = arith.constant dense<0.000000e+00> : vector<16xf32>
    %279 = vector.multi_reduction <add>, %278, %cst_132 [1] : vector<16x32xf32> to vector<16xf32>
    %280 = vector.shape_cast %279 : vector<16xf32> to vector<16x1xf32>
    %cst_133 = arith.constant 3.200000e+01 : f32
    %281 = vector.broadcast %cst_133 : f32 to vector<16x1xf32>
    %282 = arith.divf %280, %281 : vector<16x1xf32>
    %cst_134 = arith.constant 9.99999974E-6 : f32
    %283 = vector.broadcast %cst_134 : f32 to vector<16x1xf32>
    %284 = arith.addf %282, %283 : vector<16x1xf32>
    %285 = math.rsqrt %284 : vector<16x1xf32>
    %286 = vector.broadcast %285 : vector<16x1xf32> to vector<16x32xf32>
    %287 = arith.mulf %277, %286 : vector<16x32xf32>
    %288 = vector.broadcast %214 : vector<1x32xf32> to vector<16x32xf32>
    %289 = arith.mulf %287, %288 : vector<16x32xf32>
    %290 = vector.broadcast %215 : vector<1x32xf32> to vector<16x32xf32>
    %291 = arith.addf %289, %290 : vector<16x32xf32>
    %c2_135 = arith.constant 2 : index
    %c0_136 = arith.constant 0 : index
    %c0_137 = arith.constant 0 : index
    %292 = vector.load %arg9[%c2_135, %c0_136, %c0_137] : memref<4x32x128xf32, #tpu.memory_space<vmem>>, vector<1x32x128xf32>
    %293 = vector.shape_cast %292 : vector<1x32x128xf32> to vector<32x128xf32>
    %cst_138 = arith.constant dense<0.000000e+00> : vector<16x128xf32>
    %294 = tpu.matmul %291, %293, %cst_138 {dimension_numbers = #tpu.dot_dimension_numbers<[1], [0], [0], [1], [0, 0, 1, 1], [], []>} : vector<16x32xf32>, vector<32x128xf32>, vector<16x128xf32> -> vector<16x128xf32>
    %c2_139 = arith.constant 2 : index
    %c0_140 = arith.constant 0 : index
    %c0_141 = arith.constant 0 : index
    %295 = vector.load %arg10[%c2_139, %c0_140, %c0_141] : memref<4x1x128xf32, #tpu.memory_space<vmem>>, vector<1x1x128xf32>
    %296 = vector.shape_cast %295 : vector<1x1x128xf32> to vector<1x128xf32>
    %297 = vector.broadcast %296 : vector<1x128xf32> to vector<16x128xf32>
    %298 = arith.addf %294, %297 : vector<16x128xf32>
    %cst_142 = arith.constant 0.000000e+00 : f32
    %299 = vector.broadcast %cst_142 : f32 to vector<16x128xf32>
    %300 = arith.maximumf %298, %299 : vector<16x128xf32>
    %c2_143 = arith.constant 2 : index
    %c0_144 = arith.constant 0 : index
    %c0_145 = arith.constant 0 : index
    %301 = vector.load %arg11[%c2_143, %c0_144, %c0_145] : memref<4x128x32xf32, #tpu.memory_space<vmem>>, vector<1x128x32xf32>
    %302 = vector.shape_cast %301 : vector<1x128x32xf32> to vector<128x32xf32>
    %cst_146 = arith.constant dense<0.000000e+00> : vector<16x32xf32>
    %303 = tpu.matmul %300, %302, %cst_146 {dimension_numbers = #tpu.dot_dimension_numbers<[1], [0], [0], [1], [0, 0, 1, 1], [], []>} : vector<16x128xf32>, vector<128x32xf32>, vector<16x32xf32> -> vector<16x32xf32>
    %304 = arith.addf %271, %303 : vector<16x32xf32>
    %305 = vector.broadcast %217 : vector<1x32xf32> to vector<16x32xf32>
    %306 = arith.addf %304, %305 : vector<16x32xf32>
    %c3 = arith.constant 3 : index
    %c0_147 = arith.constant 0 : index
    %c0_148 = arith.constant 0 : index
    %307 = vector.load %arg12[%c3, %c0_147, %c0_148] : memref<4x6x32xf32, #tpu.memory_space<vmem>>, vector<1x6x32xf32>
    %308 = vector.shape_cast %307 : vector<1x6x32xf32> to vector<6x32xf32>
    %309 = vector.extract_strided_slice %308 {offsets = [0, 0], sizes = [1, 32], strides = [1, 1]} : vector<6x32xf32> to vector<1x32xf32>
    %310 = vector.extract_strided_slice %308 {offsets = [1, 0], sizes = [1, 32], strides = [1, 1]} : vector<6x32xf32> to vector<1x32xf32>
    %311 = vector.extract_strided_slice %308 {offsets = [2, 0], sizes = [1, 32], strides = [1, 1]} : vector<6x32xf32> to vector<1x32xf32>
    %312 = vector.extract_strided_slice %308 {offsets = [3, 0], sizes = [1, 32], strides = [1, 1]} : vector<6x32xf32> to vector<1x32xf32>
    %313 = vector.extract_strided_slice %308 {offsets = [4, 0], sizes = [1, 32], strides = [1, 1]} : vector<6x32xf32> to vector<1x32xf32>
    %314 = vector.extract_strided_slice %308 {offsets = [5, 0], sizes = [1, 32], strides = [1, 1]} : vector<6x32xf32> to vector<1x32xf32>
    %cst_149 = arith.constant dense<0.000000e+00> : vector<16xf32>
    %315 = vector.multi_reduction <add>, %306, %cst_149 [1] : vector<16x32xf32> to vector<16xf32>
    %316 = vector.shape_cast %315 : vector<16xf32> to vector<16x1xf32>
    %cst_150 = arith.constant 3.200000e+01 : f32
    %317 = vector.broadcast %cst_150 : f32 to vector<16x1xf32>
    %318 = arith.divf %316, %317 : vector<16x1xf32>
    %319 = vector.broadcast %318 : vector<16x1xf32> to vector<16x32xf32>
    %320 = arith.subf %306, %319 : vector<16x32xf32>
    %321 = arith.mulf %320, %320 : vector<16x32xf32>
    %cst_151 = arith.constant dense<0.000000e+00> : vector<16xf32>
    %322 = vector.multi_reduction <add>, %321, %cst_151 [1] : vector<16x32xf32> to vector<16xf32>
    %323 = vector.shape_cast %322 : vector<16xf32> to vector<16x1xf32>
    %cst_152 = arith.constant 3.200000e+01 : f32
    %324 = vector.broadcast %cst_152 : f32 to vector<16x1xf32>
    %325 = arith.divf %323, %324 : vector<16x1xf32>
    %cst_153 = arith.constant 9.99999974E-6 : f32
    %326 = vector.broadcast %cst_153 : f32 to vector<16x1xf32>
    %327 = arith.addf %325, %326 : vector<16x1xf32>
    %328 = math.rsqrt %327 : vector<16x1xf32>
    %329 = vector.broadcast %328 : vector<16x1xf32> to vector<16x32xf32>
    %330 = arith.mulf %320, %329 : vector<16x32xf32>
    %331 = vector.broadcast %309 : vector<1x32xf32> to vector<16x32xf32>
    %332 = arith.mulf %330, %331 : vector<16x32xf32>
    %333 = vector.broadcast %310 : vector<1x32xf32> to vector<16x32xf32>
    %334 = arith.addf %332, %333 : vector<16x32xf32>
    %c3_154 = arith.constant 3 : index
    %c0_155 = arith.constant 0 : index
    %c0_156 = arith.constant 0 : index
    %335 = vector.load %arg6[%c3_154, %c0_155, %c0_156] : memref<4x32x96xf32, #tpu.memory_space<vmem>>, vector<1x32x96xf32>
    %336 = vector.shape_cast %335 : vector<1x32x96xf32> to vector<32x96xf32>
    %cst_157 = arith.constant dense<0.000000e+00> : vector<16x96xf32>
    %337 = tpu.matmul %334, %336, %cst_157 {dimension_numbers = #tpu.dot_dimension_numbers<[1], [0], [0], [1], [0, 0, 1, 1], [], []>} : vector<16x32xf32>, vector<32x96xf32>, vector<16x96xf32> -> vector<16x96xf32>
    %c3_158 = arith.constant 3 : index
    %c0_159 = arith.constant 0 : index
    %c0_160 = arith.constant 0 : index
    %338 = vector.load %arg7[%c3_158, %c0_159, %c0_160] : memref<4x1x96xf32, #tpu.memory_space<vmem>>, vector<1x1x96xf32>
    %339 = vector.shape_cast %338 : vector<1x1x96xf32> to vector<1x96xf32>
    %340 = vector.broadcast %339 : vector<1x96xf32> to vector<16x96xf32>
    %341 = arith.addf %337, %340 : vector<16x96xf32>
    %342 = vector.extract_strided_slice %341 {offsets = [0, 0], sizes = [16, 32], strides = [1, 1]} : vector<16x96xf32> to vector<16x32xf32>
    %343 = vector.extract_strided_slice %341 {offsets = [0, 32], sizes = [16, 64], strides = [1, 1]} : vector<16x96xf32> to vector<16x64xf32>
    %cst_161 = arith.constant dense<0.000000e+00> : vector<128x64xf32>
    %344 = tpu.matmul %1, %343, %cst_161 {dimension_numbers = #tpu.dot_dimension_numbers<[1], [0], [0], [1], [0, 0, 1, 1], [], []>} : vector<128x16xf32>, vector<16x64xf32>, vector<128x64xf32> -> vector<128x64xf32>
    %345 = arith.mulf %344, %2 : vector<128x64xf32>
    %346 = vector.extract_strided_slice %345 {offsets = [0, 0], sizes = [128, 32], strides = [1, 1]} : vector<128x64xf32> to vector<128x32xf32>
    %347 = vector.extract_strided_slice %345 {offsets = [0, 32], sizes = [128, 32], strides = [1, 1]} : vector<128x64xf32> to vector<128x32xf32>
    %cst_162 = arith.constant dense<0.000000e+00> : vector<16x128xf32>
    %348 = tpu.matmul %342, %346, %cst_162 {dimension_numbers = #tpu.dot_dimension_numbers<[1], [1], [0], [0], [0, 0, 1, 0], [], []>} : vector<16x32xf32>, vector<128x32xf32>, vector<16x128xf32> -> vector<16x128xf32>
    %cst_163 = arith.constant 5.000000e-01 : f32
    %349 = vector.broadcast %cst_163 : f32 to vector<16x128xf32>
    %350 = arith.mulf %348, %349 : vector<16x128xf32>
    %351 = arith.addf %350, %0 : vector<16x128xf32>
    %cst_164 = arith.constant dense<0xFF800000> : vector<16xf32>
    %352 = vector.multi_reduction <maximumf>, %351, %cst_164 [1] : vector<16x128xf32> to vector<16xf32>
    %353 = vector.shape_cast %352 : vector<16xf32> to vector<16x1xf32>
    %354 = vector.broadcast %353 : vector<16x1xf32> to vector<16x128xf32>
    %355 = arith.subf %351, %354 : vector<16x128xf32>
    %356 = math.exp %355 : vector<16x128xf32>
    %cst_165 = arith.constant dense<0.000000e+00> : vector<16x128xf32>
    %357 = tpu.matmul %356, %3, %cst_165 {dimension_numbers = #tpu.dot_dimension_numbers<[1], [0], [0], [1], [0, 0, 1, 1], [], []>} : vector<16x128xf32>, vector<128x128xf32>, vector<16x128xf32> -> vector<16x128xf32>
    %cst_166 = arith.constant 1.000000e-30 : f32
    %358 = vector.broadcast %cst_166 : f32 to vector<16x128xf32>
    %359 = arith.addf %357, %358 : vector<16x128xf32>
    %360 = tpu.reciprocal %359 {approx = true} : vector<16x128xf32> -> vector<16x128xf32>
    %361 = arith.mulf %356, %360 : vector<16x128xf32>
    %cst_167 = arith.constant dense<0.000000e+00> : vector<16x32xf32>
    %362 = tpu.matmul %361, %347, %cst_167 {dimension_numbers = #tpu.dot_dimension_numbers<[1], [0], [0], [1], [0, 0, 1, 1], [], []>} : vector<16x128xf32>, vector<128x32xf32>, vector<16x32xf32> -> vector<16x32xf32>
    %c3_168 = arith.constant 3 : index
    %c0_169 = arith.constant 0 : index
    %c0_170 = arith.constant 0 : index
    %363 = vector.load %arg8[%c3_168, %c0_169, %c0_170] : memref<4x32x32xf32, #tpu.memory_space<vmem>>, vector<1x32x32xf32>
    %364 = vector.shape_cast %363 : vector<1x32x32xf32> to vector<32x32xf32>
    %cst_171 = arith.constant dense<0.000000e+00> : vector<16x32xf32>
    %365 = tpu.matmul %362, %364, %cst_171 {dimension_numbers = #tpu.dot_dimension_numbers<[1], [0], [0], [1], [0, 0, 1, 1], [], []>} : vector<16x32xf32>, vector<32x32xf32>, vector<16x32xf32> -> vector<16x32xf32>
    %366 = arith.addf %306, %365 : vector<16x32xf32>
    %367 = vector.broadcast %313 : vector<1x32xf32> to vector<16x32xf32>
    %368 = arith.addf %366, %367 : vector<16x32xf32>
    %cst_172 = arith.constant dense<0.000000e+00> : vector<16xf32>
    %369 = vector.multi_reduction <add>, %368, %cst_172 [1] : vector<16x32xf32> to vector<16xf32>
    %370 = vector.shape_cast %369 : vector<16xf32> to vector<16x1xf32>
    %cst_173 = arith.constant 3.200000e+01 : f32
    %371 = vector.broadcast %cst_173 : f32 to vector<16x1xf32>
    %372 = arith.divf %370, %371 : vector<16x1xf32>
    %373 = vector.broadcast %372 : vector<16x1xf32> to vector<16x32xf32>
    %374 = arith.subf %368, %373 : vector<16x32xf32>
    %375 = arith.mulf %374, %374 : vector<16x32xf32>
    %cst_174 = arith.constant dense<0.000000e+00> : vector<16xf32>
    %376 = vector.multi_reduction <add>, %375, %cst_174 [1] : vector<16x32xf32> to vector<16xf32>
    %377 = vector.shape_cast %376 : vector<16xf32> to vector<16x1xf32>
    %cst_175 = arith.constant 3.200000e+01 : f32
    %378 = vector.broadcast %cst_175 : f32 to vector<16x1xf32>
    %379 = arith.divf %377, %378 : vector<16x1xf32>
    %cst_176 = arith.constant 9.99999974E-6 : f32
    %380 = vector.broadcast %cst_176 : f32 to vector<16x1xf32>
    %381 = arith.addf %379, %380 : vector<16x1xf32>
    %382 = math.rsqrt %381 : vector<16x1xf32>
    %383 = vector.broadcast %382 : vector<16x1xf32> to vector<16x32xf32>
    %384 = arith.mulf %374, %383 : vector<16x32xf32>
    %385 = vector.broadcast %311 : vector<1x32xf32> to vector<16x32xf32>
    %386 = arith.mulf %384, %385 : vector<16x32xf32>
    %387 = vector.broadcast %312 : vector<1x32xf32> to vector<16x32xf32>
    %388 = arith.addf %386, %387 : vector<16x32xf32>
    %c3_177 = arith.constant 3 : index
    %c0_178 = arith.constant 0 : index
    %c0_179 = arith.constant 0 : index
    %389 = vector.load %arg9[%c3_177, %c0_178, %c0_179] : memref<4x32x128xf32, #tpu.memory_space<vmem>>, vector<1x32x128xf32>
    %390 = vector.shape_cast %389 : vector<1x32x128xf32> to vector<32x128xf32>
    %cst_180 = arith.constant dense<0.000000e+00> : vector<16x128xf32>
    %391 = tpu.matmul %388, %390, %cst_180 {dimension_numbers = #tpu.dot_dimension_numbers<[1], [0], [0], [1], [0, 0, 1, 1], [], []>} : vector<16x32xf32>, vector<32x128xf32>, vector<16x128xf32> -> vector<16x128xf32>
    %c3_181 = arith.constant 3 : index
    %c0_182 = arith.constant 0 : index
    %c0_183 = arith.constant 0 : index
    %392 = vector.load %arg10[%c3_181, %c0_182, %c0_183] : memref<4x1x128xf32, #tpu.memory_space<vmem>>, vector<1x1x128xf32>
    %393 = vector.shape_cast %392 : vector<1x1x128xf32> to vector<1x128xf32>
    %394 = vector.broadcast %393 : vector<1x128xf32> to vector<16x128xf32>
    %395 = arith.addf %391, %394 : vector<16x128xf32>
    %cst_184 = arith.constant 0.000000e+00 : f32
    %396 = vector.broadcast %cst_184 : f32 to vector<16x128xf32>
    %397 = arith.maximumf %395, %396 : vector<16x128xf32>
    %c3_185 = arith.constant 3 : index
    %c0_186 = arith.constant 0 : index
    %c0_187 = arith.constant 0 : index
    %398 = vector.load %arg11[%c3_185, %c0_186, %c0_187] : memref<4x128x32xf32, #tpu.memory_space<vmem>>, vector<1x128x32xf32>
    %399 = vector.shape_cast %398 : vector<1x128x32xf32> to vector<128x32xf32>
    %cst_188 = arith.constant dense<0.000000e+00> : vector<16x32xf32>
    %400 = tpu.matmul %397, %399, %cst_188 {dimension_numbers = #tpu.dot_dimension_numbers<[1], [0], [0], [1], [0, 0, 1, 1], [], []>} : vector<16x128xf32>, vector<128x32xf32>, vector<16x32xf32> -> vector<16x32xf32>
    %401 = arith.addf %368, %400 : vector<16x32xf32>
    %402 = vector.broadcast %314 : vector<1x32xf32> to vector<16x32xf32>
    %403 = arith.addf %401, %402 : vector<16x32xf32>
    %c0_189 = arith.constant 0 : index
    %c0_190 = arith.constant 0 : index
    %404 = vector.load %arg13[%c0_189, %c0_190] : memref<32x128xf32, #tpu.memory_space<vmem>>, vector<32x128xf32>
    %cst_191 = arith.constant dense<0.000000e+00> : vector<16x128xf32>
    %405 = tpu.matmul %403, %404, %cst_191 {dimension_numbers = #tpu.dot_dimension_numbers<[1], [0], [0], [1], [0, 0, 1, 1], [], []>} : vector<16x32xf32>, vector<32x128xf32>, vector<16x128xf32> -> vector<16x128xf32>
    %c0_192 = arith.constant 0 : index
    %c0_193 = arith.constant 0 : index
    %406 = vector.load %arg14[%c0_192, %c0_193] : memref<1x128xf32, #tpu.memory_space<vmem>>, vector<1x128xf32>
    %407 = vector.broadcast %406 : vector<1x128xf32> to vector<16x128xf32>
    %408 = arith.addf %405, %407 : vector<16x128xf32>
    %c0_194 = arith.constant 0 : index
    %c0_195 = arith.constant 0 : index
    %409 = vector.load %arg19[%c0_194, %c0_195] : memref<16x128xf32, #tpu.memory_space<vmem>>, vector<16x128xf32>
    tpu.vector_store %arg19[%c0_194, %c0_195], %408 {strides = array<i32>} : memref<16x128xf32, #tpu.memory_space<vmem>>, vector<16x128xf32>,
    return
  }
}

</mosaic_0001>

<bundles_post_ra>
// kernel: transformer_forward.1
= control target key start
LH: loop header
LB: loop body
LE: loop exit
PB: predicated region body
PF: predicated region fallthrough
CT: control target
= control target key end

     0   :  { %vm212_vm0 = vcmask 1043456   ;;  %vm126_vm1 = vcmask 1041408   ;;  %vm119_vm2 = vcmask 15360   ;;  %vm6869_vm3 = vmmov 1   ;;  %s8578_s3 = inlined_call_operand.vmem [shape: f32[12,32], index: 3, kind: input, shape index: {}]   ;;  %s8579_s4 = inlined_call_operand.vmem [shape: f32[2,32], index: 4, kind: input, shape index: {}]   ;;  %s8580_s1 = inlined_call_operand.vmem [shape: f32[16,2], index: 1, kind: input, shape index: {}]   ;;  %s8581_s0 = inlined_call_operand.vmem [shape: f32[16,12], index: 0, kind: input, shape index: {}]   ;;  %s8582_s5 = inlined_call_operand.vmem [shape: f32[1,32], index: 5, kind: input, shape index: {}]   ;;  %s8583_s2 = inlined_call_operand.vmem [shape: f32[16,32], index: 2, kind: input, shape index: {}]   ;;  %s8584_s6 = inlined_call_operand.vmem [shape: f32[4,32,96], index: 6, kind: input, shape index: {}]   ;;  %s8585_s12 = inlined_call_operand.vmem [shape: f32[4,6,32], index: 12, kind: input, shape index: {}]   ;;  %s8586_s7 = inlined_call_operand.vmem [shape: f32[4,1,96], index: 7, kind: input, shape index: {}]   ;;  %s8587_s16 = inlined_call_operand.vmem [shape: f32[128,16], index: 16, kind: input, shape index: {}]   ;;  %s8588_s17 = inlined_call_operand.vmem [shape: f32[128,64], index: 17, kind: input, shape index: {}]   ;;  %s8589_s18 = inlined_call_operand.vmem [shape: f32[128,128], index: 18, kind: input, shape index: {}]   ;;  %s8590_s15 = inlined_call_operand.vmem [shape: f32[16,128], index: 15, kind: input, shape index: {}]   ;;  %s8591_s8 = inlined_call_operand.vmem [shape: f32[4,32,32], index: 8, kind: input, shape index: {}]   ;;  %s8592_s9 = inlined_call_operand.vmem [shape: f32[4,32,128], index: 9, kind: input, shape index: {}]   ;;  %s8593_s11 = inlined_call_operand.vmem [shape: f32[4,128,32], index: 11, kind: input, shape index: {}]   ;;  %s8594_s10 = inlined_call_operand.vmem [shape: f32[4,1,128], index: 10, kind: input, shape index: {}]   ;;  %s8595_s13 = inlined_call_operand.vmem [shape: f32[32,128], index: 13, kind: input, shape index: {}]   ;;  %s8596_s14 = inlined_call_operand.vmem [shape: f32[1,128], index: 14, kind: input, shape index: {}]   ;;  %s8597_s19 = inlined_call_operand.vmem [shape: f32[16,128], index: 19, kind: output, shape index: {}]  }
   0x1   :  { %8616 = sst [smem:[#allocation11_spill]] %s8578_s3  ;;  %vm5886_vm4 = vmpackc.low %vm212_vm0, %vm6869_vm3  ;;  %vm205_vm5 = vcmask 97280   ;;  %v4348_v12 = vld [vmem:[%s8582_s5] ss:$0 sm:$0xff]  ;;  %v301_v18 = vld [vmem:[%s8583_s2 + $0x8] sm:$0xff]  ;;  %vm305_vm6 = vcmask 261120   ;;  %v333_v41 = vlaneseq }
   0x2   :  { %8617 = sst [smem:[#allocation12_spill]] %s8579_s4  ;;  %s8620_s20 = sld [smem:[#allocation11_spill]]  ;;  %v300_v15 = vld [vmem:[%s8583_s2] sm:$0xff]  ;;  %v346_v34 = vld [vmem:[%s8584_s6 + $0x8] sm:$0xff]  ;;  %v347_v36 = vld [vmem:[%s8584_s6 + $0x10] sm:$0xff]  ;;  %vm445_vm7 = vcmask 130048  }
   0x3   :  { %8618 = sst [smem:[#allocation13_spill]] %s8580_s1  ;;  %s8621_s23 = sld [smem:[#allocation12_spill]]  ;;  %v345_v33 = vld [vmem:[%s8584_s6] sm:$0xff]  ;;  %v348_v37 = vld [vmem:[%s8584_s6 + $0x18] sm:$0xff]  ;;  %v7029_v45 = vshrl.u32 %v333_v41, 7  ;;  %vm7191_vm8 = vmpackc.low %vm305_vm6, %vm305_vm6 }
   0x4   :  { %8619 = sst [smem:[#allocation14_spill]] %s8581_s0  ;;  %s8622_s0 = sld [smem:[#allocation13_spill]]  ;;  %v5891_v35 = vpack.c.bf16 %v346_v34, %v345_v33  ;;  %v5895_v38 = vpack.c.bf16 %v348_v37, %v347_v36  ;;  %v7037_v48 = vld [vmem:[%s8585_s12] sm:$0x3f] }
   0x5   :  { %s8623_s3 = sld [smem:[#allocation14_spill]]  ;;  %v7032_v47 = vsub.s32 0, %v7029_v45  ;;  %v7040_v49 = vsub.s32 1, %v7029_v45  ;;  %v4349_v60 = vld [vmem:[%s8586_s7] ss:$0 sm:$0xff]  ;;  %s6870_s1 = smov 96  }
   0x6   :  { %v7054_v61 = vld [vmem:[%s8587_s16] sm:$0xff] }
   0x7   :  { %v336_v50 = vrot.slane %v7037_v48, %v7032_v47  ;;  %v342_v53 = vrot.slane %v7037_v48, %v7040_v49 }
   0x8   :  { %v114_v0 = vld [vmem:[%s8620_s20] sm:$0xff]  ;;  %v115_v1 = vld [vmem:[%s8620_s20 + $0x8] sm:$0xf] }
   0x9   :  { %v5885_v2 = vpack.c.bf16 %v115_v1, %v114_v0  ;;  %v118_v3 = vld [vmem:[%s8621_s23] sm:$0x3] }
   0xa   :  { %v116_v4 = vld [vmem:[%s8622_s0] sm:$0xff]  ;;  %v117_v5 = vld [vmem:[%s8622_s0 + $0x8] sm:$0xff]  ;;  %5058 = vmatprep.subr.msk.mxu1 %vm126_vm1, %v118_v3 }
   0xb   :  { %5060 = vmatprep.mubr.msk.f32.mxu1 %vm119_vm2, %v116_v4  ;;  %v112_v6 = vld [vmem:[%s8623_s3] sm:$0xff]  ;;  %5887 = vmatprep.subr.msk.bf16.mxu0 %vm5886_vm4, %v5885_v2  ;;  %v113_v7 = vld [vmem:[%s8623_s3 + $0x8] sm:$0xff] }
   0xc   :  { %5059 = vmatpush3.msk.msra.mxu1 %vm126_vm1, %v118_v3  ;;  %5890 = vmatpush3.bf16.msk.msra.mxu0 %vm5886_vm4, %v5885_v2 }
   0xd   :  { %5061 = vmatmul.mubr.msk.f32.vlgmr.msra.gmra.mrb[0].mxu1 %vm119_vm2, %v117_v5  ;;  %5067 = vmatprep.mubr.msk.f32.mxu0 %vm205_vm5, %v112_v6 }
   0xe   :  { %5892 = vmatprep.subr.bf16.mxu1 %v5891_v35 }
   0xf   :  { %5068 = vmatmul.mubr.msk.f32.vlgmr.msra.gmra.mrb[0].mxu0 %vm205_vm5, %v113_v7  ;;  %5894 = vmatpush3.bf16.msra.mxu1 %v5891_v35  ;;  %v7066_v7 = vld [vmem:[%s8587_s16 + $0x8] sm:$0xff] }
  0x10   :  { %5896 = vmatprep.subr.bf16.mxu1 %v5895_v38  ;;  %5085 = vmatprep.mubr.msk.f32.mxu0 %vm445_vm7, %v7054_v61 }
  0x13   :  { %5898 = vmatpush3.bf16.msra.mxu1 %v5895_v38 }
  0xe0   :  { %v5062_v8 = vpop.f32.mrb[0].mxu1 }
  0xe1   :  { %v196_v9 = vpop.f32.mrb[1].mxu1 }
  0xe2   :  { %v5069_v10 = vpop.f32.mrb[0].mxu0 }
  0xe3   :  { %v288_v11 = vadd.f32 %v5069_v10, %v5062_v8  ;;  %v282_v13 = vpop.f32.mrb[1].mxu0  ;;  %v7071_v8 = vld [vmem:[%s8587_s16 + $0x10] sm:$0xff]  ;;  %v7085_v10 = vld [vmem:[%s8587_s16 + $0x20] sm:$0xff] }
  0xe4   :  { %v283_v14 = vadd.f32 %v282_v13, %v196_v9  ;;  %v7080_v9 = vld [vmem:[%s8587_s16 + $0x18] sm:$0xff] }
  0xe5   :  { %v299_v16 = vadd.f32 %v4348_v12, %v288_v11  ;;  %v7094_v11 = vld [vmem:[%s8587_s16 + $0x28] sm:$0xff]  ;;  %v7108_v13 = vld [vmem:[%s8587_s16 + $0x38] sm:$0xff] }
  0xe6   :  { %v298_v17 = vadd.f32 %v4348_v12, %v283_v14  ;;  %v7099_v12 = vld [vmem:[%s8587_s16 + $0x30] sm:$0xff]  ;;  %v7113_v14 = vld [vmem:[%s8587_s16 + $0x40] sm:$0xff] }
  0xe7   :  { %v7007_v20 = vadd.f32 %v301_v18, %v299_v16  ;;  %v7127_v16 = vld [vmem:[%s8587_s16 + $0x50] sm:$0xff]  ;;  %v7141_v18 = vld [vmem:[%s8587_s16 + $0x60] sm:$0xff] }
  0xe8   :  { %v7005_v19 = vadd.f32 %v300_v15, %v298_v17  ;;  %v7122_v15 = vld [vmem:[%s8587_s16 + $0x48] sm:$0xff]  ;;  %v7136_v17 = vld [vmem:[%s8587_s16 + $0x58] sm:$0xff] }
  0xe9   :  { %v309_v22 = vsel %vm305_vm6, %v7007_v20, 0.0 }
  0xea   :  { %v306_v21 = vsel %vm305_vm6, %v7005_v19, 0.0 }
  0xeb   :  { %307 = vadd.xlane.f32.xlu0 %v306_v21  ;;  %v7150_v21 = vld [vmem:[%s8587_s16 + $0x68] sm:$0xff] }
  0xef   :  { %310 = vadd.xlane.f32.xlu0 %v309_v22  ;;  %v7155_v22 = vld [vmem:[%s8587_s16 + $0x70] sm:$0xff] }
 0x178   :  { %v308_v23 = vpop.xlane.xlu0 %307 }
 0x179   :  { %v313_v24 = vmul.f32 0.03125, %v308_v23  ;;  %v7164_v23 = vld [vmem:[%s8587_s16 + $0x78] sm:$0xff] }
 0x17b   :  { %v315_v25 = vsub.f32 %v7005_v19, %v313_v24  ;;  %v7171_v24 = vld [vmem:[%s8588_s17 + $0x8] sm:$0xff] }
 0x17c   :  { %v311_v26 = vpop.xlane.xlu0 %310 }
 0x17d   :  { %v314_v27 = vmul.f32 0.03125, %v311_v26  ;;  %v317_v28 = vmul.f32 %v315_v25, %v315_v25 }
 0x17f   :  { %v316_v29 = vsub.f32 %v7007_v20, %v314_v27  ;;  %v319_v30 = vsel %vm305_vm6, %v317_v28, 0.0 }
 0x180   :  { %320 = vadd.xlane.f32.xlu1 %v319_v30  ;;  %v7187_v30 = vld [vmem:[%s8588_s17 + $0x18] sm:$0xff] }
 0x181   :  { %v318_v31 = vmul.f32 %v316_v29, %v316_v29 }
 0x183   :  { %v322_v32 = vsel %vm305_vm6, %v318_v31, 0.0 }
 0x184   :  { %323 = vadd.xlane.f32.xlu1 %v322_v32  ;;  %v7198_v32 = vld [vmem:[%s8588_s17 + $0x10] sm:$0xff] }
 0x20d   :  { %v321_v39 = vpop.xlane.xlu1 %320 }
 0x20e   :  { %v325_v40 = vmul.f32 0.03125, %v321_v39  ;;  %v7211_v39 = vld [vmem:[%s8588_s17 + $0x28] sm:$0xff] }
 0x210   :  { %v327_v42 = vadd.f32 1e-05, %v325_v40  ;;  %v7218_v40 = vld [vmem:[%s8588_s17 + $0x20] sm:$0xff] }
 0x211   :  { %v324_v43 = vpop.xlane.xlu1 %323 }
 0x212   :  { %6771 = vrsqrt.f32 %v327_v42  ;;  %v326_v44 = vmul.f32 0.03125, %v324_v43 }
 0x214   :  { %v328_v46 = vadd.f32 1e-05, %v326_v44 }
 0x216   :  { %6773 = vrsqrt.f32 %v328_v46 }
 0x21c   :  { %v6772_v51 = vpop.eup %6771 }
 0x21d   :  { %v331_v52 = vmul.f32 %v6772_v51, %v315_v25  ;;  %v7176_v25 = vld [vmem:[%s8588_s17] sm:$0xff]  ;;  %v7232_v51 = vld [vmem:[%s8588_s17 + $0x38] sm:$0xff] }
 0x21f   :  { %v337_v54 = vmul.f32 %v336_v50, %v331_v52  ;;  %v7237_v52 = vld [vmem:[%s8588_s17 + $0x30] sm:$0xff] }
 0x220   :  { %v6774_v55 = vpop.eup %6773 }
 0x221   :  { %v332_v56 = vmul.f32 %v6774_v55, %v316_v29  ;;  %v343_v57 = vadd.f32 %v342_v53, %v337_v54 }
 0x223   :  { %v338_v58 = vmul.f32 %v336_v50, %v332_v56  ;;  %5078 = vmatprep.mubr.msk.f32.mxu1 %vm305_vm6, %v343_v57 }
 0x225   :  { %v344_v59 = vadd.f32 %v342_v53, %v338_v58 }
 0x227   :  { %5079 = vmatmul.mubr.msk.f32.vlgmr.msra.gmra.mrb[2].mxu1 %vm305_vm6, %v344_v59  ;;  %v7248_v59 = vld [vmem:[%s8588_s17 + $0x48] sm:$0xff] }
 0x2fa   :  { %v5080_v62 = vpop.f32.mrb[2].mxu1 }
 0x2fb   :  { %v7058_v63 = vadd.f32 %v5080_v62, %v4349_v60  ;;  %v428_v0 = vpop.f32.mrb[3].mxu1 }
 0x2fc   :  { %v429_v1 = vadd.f32 %v4349_v60, %v428_v0  ;;  %v7255_v60 = vld [vmem:[%s8588_s17 + $0x40] sm:$0xff] }
 0x2fe   :  { %v6591_v2 = vpack.i.bf16 %v7058_v63, %v429_v1  ;;  %5141 = vmatprep.mubr.msk.f32.mxu1 %vm305_vm6, %v429_v1 }
 0x300   :  { %6592 = vrot.lane.b32.xlu0 %v6591_v2, %s6870_s1 }
 0x372   :  { %v6593_v3 = vpop.permute.xlu0 %6592 }
 0x373   :  { %v6595_v4 = vunpack.i.h.bf16 %v6593_v3  ;;  %v6594_v5 = vunpack.i.l.bf16 %v6593_v3 }
 0x375   :  { %v5899_v6 = vpack.c.bf16 %v6595_v4, %v6594_v5  ;;  %v7269_v5 = vld [vmem:[%s8588_s17 + $0x58] sm:$0xff] }
 0x377   :  { %5900 = vmatprep.subr.bf16.mxu0 %v5899_v6 }
 0x378   :  { %5902 = vmatpush3.bf16.msra.mxu0 %v5899_v6  ;;  %v7274_v6 = vld [vmem:[%s8588_s17 + $0x50] sm:$0xff] }
 0x37b   :  { %5086 = vmatmul.mubr.msk.f32.vlgmr.msra.gmra.mrb[2].mxu0 %vm445_vm7, %v7066_v7 }
 0x37c   :  { %5088 = vmatprep.mubr.msk.f32.mxu0 %vm445_vm7, %v7071_v8 }
 0x37f   :  { %5089 = vmatmul.mubr.msk.f32.gmra.mrb[4].mxu0 %vm445_vm7, %v7080_v9 }
 0x380   :  { %5091 = vmatprep.mubr.msk.f32.mxu0 %vm445_vm7, %v7085_v10 }
 0x383   :  { %5092 = vmatmul.mubr.msk.f32.gmra.mrb[6].mxu0 %vm445_vm7, %v7094_v11 }
 0x384   :  { %5094 = vmatprep.mubr.msk.f32.mxu0 %vm445_vm7, %v7099_v12 }
 0x387   :  { %5095 = vmatmul.mubr.msk.f32.gmra.mrb[8].mxu0 %vm445_vm7, %v7108_v13 }
 0x388   :  { %5097 = vmatprep.mubr.msk.f32.mxu0 %vm445_vm7, %v7113_v14 }
 0x38b   :  { %5098 = vmatmul.mubr.msk.f32.gmra.mrb[10].mxu0 %vm445_vm7, %v7122_v15 }
 0x38c   :  { %5100 = vmatprep.mubr.msk.f32.mxu0 %vm445_vm7, %v7127_v16 }
 0x38f   :  { %5101 = vmatmul.mubr.msk.f32.gmra.mrb[12].mxu0 %vm445_vm7, %v7136_v17 }
 0x390   :  { %5103 = vmatprep.mubr.msk.f32.mxu0 %vm445_vm7, %v7141_v18 }
 0x393   :  { %5104 = vmatmul.mubr.msk.f32.gmra.mrb[14].mxu0 %vm445_vm7, %v7150_v21 }
 0x394   :  { %5106 = vmatprep.mubr.msk.f32.mxu0 %vm445_vm7, %v7155_v22 }
 0x397   :  { %5107 = vmatmul.mubr.msk.f32.gmra.mrb[16].mxu0 %vm445_vm7, %v7164_v23 }
 0x44e   :  { %v5087_v26 = vpop.f32.mrb[2].mxu0 }
 0x44f   :  { %v7179_v27 = vmul.f32 %v5087_v26, %v7171_v24  ;;  %v560_v28 = vpop.f32.mrb[3].mxu0 }
 0x450   :  { %v7182_v29 = vmul.f32 %v560_v28, %v7176_v25 }
 0x452   :  { %v6596_v33 = vpack.i.bf16 %v7179_v27, %v7182_v29  ;;  %v5903_v34 = vpack.c.bf16 %v7179_v27, %v7182_v29  ;;  %v5090_v35 = vpop.f32.mrb[4].mxu0 }
 0x453   :  { %v642_v36 = vmul.f32 %v5090_v35, %v7187_v30  ;;  %v570_v37 = vpop.f32.mrb[5].mxu0 }
 0x454   :  { %5905 = vmatprep.subr.msk.bf16.mxu1 %vm7191_vm8, %v5903_v34  ;;  %v641_v38 = vmul.f32 %v570_v37, %v7198_v32 }
 0x455   :  { %5908 = vmatpush3.bf16.xpose.msk.msra.mxu1 %vm7191_vm8, %v5903_v34 }
 0x456   :  { %v6601_v41 = vpack.i.bf16 %v642_v36, %v641_v38  ;;  %v5909_v42 = vpack.c.bf16 %v642_v36, %v641_v38  ;;  %v5093_v43 = vpop.f32.mrb[6].mxu0  ;;  %v7285_v38 = vld [vmem:[%s8588_s17 + $0x68] sm:$0xff] }
 0x457   :  { %v7221_v44 = vmul.f32 %v5093_v43, %v7211_v39  ;;  %v580_v46 = vpop.f32.mrb[7].mxu0  ;;  %8626 = vst [vmem:[#allocation2_spill] sm:$0xff] %v7285_v38 }
 0x458   :  { %6602 = vrot.lane.b32.xlu0 %v6601_v41, %s6870_s1  ;;  %5911 = vmatprep.subr.msk.bf16.mxu1 %vm7191_vm8, %v5909_v42  ;;  %v7227_v50 = vmul.f32 %v580_v46, %v7218_v40  ;;  %v7292_v41 = vld [vmem:[%s8588_s17 + $0x60] sm:$0xff] }
 0x459   :  { %8627 = vst [vmem:[#allocation3_spill] sm:$0xff] %v7292_v41 }
 0x45a   :  { %v5915_v54 = vpack.c.bf16 %v7221_v44, %v7227_v50  ;;  %v5096_v55 = vpop.f32.mrb[8].mxu0 }
 0x45b   :  { %v646_v56 = vmul.f32 %v5096_v55, %v7232_v51  ;;  %v590_v57 = vpop.f32.mrb[9].mxu0 }
 0x45c   :  { %v645_v58 = vmul.f32 %v590_v57, %v7237_v52 }
 0x45d   :  { %5914 = vmatpush3.bf16.xpose.msk.msra.mxu1 %vm7191_vm8, %v5909_v42 }
 0x45e   :  { %5917 = vmatprep.subr.msk.bf16.mxu1 %vm7191_vm8, %v5915_v54  ;;  %v6611_v62 = vpack.i.bf16 %v646_v56, %v645_v58  ;;  %v5921_v0 = vpack.c.bf16 %v646_v56, %v645_v58  ;;  %v5099_v1 = vpop.f32.mrb[10].mxu0  ;;  %v7311_v58 = vld [vmem:[%s8588_s17 + $0x70] sm:$0xff] }
 0x45f   :  { %v7260_v2 = vmul.f32 %v5099_v1, %v7248_v59  ;;  %v600_v3 = vpop.f32.mrb[11].mxu0  ;;  %8629 = vst [vmem:[#allocation5_spill] sm:$0xff] %v7311_v58 }
 0x460   :  { %6612 = vrot.lane.b32.xlu0 %v6611_v62, %s6870_s1  ;;  %v7264_v4 = vmul.f32 %v600_v3, %v7255_v60  ;;  %v106_v62 = vld [vmem:[%s8589_s18 + $0x50] sm:$0xff] }
 0x462   :  { %v5927_v28 = vpack.c.bf16 %v7260_v2, %v7264_v4  ;;  %v5102_v34 = vpop.f32.mrb[12].mxu0  ;;  %v8633_v27 = vpack.i.bf16 %v7260_v2, %v7264_v4 }
 0x463   :  { %v650_v35 = vmul.f32 %v5102_v34, %v7269_v5  ;;  %v610_v36 = vpop.f32.mrb[13].mxu0 }
 0x464   :  { %v649_v37 = vmul.f32 %v610_v36, %v7274_v6 }
 0x465   :  { %5920 = vmatpush3.bf16.xpose.msk.msra.mxu1 %vm7191_vm8, %v5915_v54  ;;  %v7306_v54 = vld [vmem:[%s8588_s17 + $0x78] sm:$0xff] }
 0x466   :  { %5923 = vmatprep.subr.msk.bf16.mxu1 %vm7191_vm8, %v5921_v0  ;;  %v6621_v42 = vpack.i.bf16 %v650_v35, %v649_v37  ;;  %v5933_v43 = vpack.c.bf16 %v650_v35, %v649_v37  ;;  %v5105_v46 = vpop.f32.mrb[14].mxu0  ;;  %8628 = vst [vmem:[#allocation4_spill] sm:$0xff] %v7306_v54 }
 0x467   :  { %v7297_v55 = vmul.f32 %v5105_v46, %v7285_v38  ;;  %v620_v56 = vpop.f32.mrb[15].mxu0 }
 0x468   :  { %6622 = vrot.lane.b32.xlu0 %v6621_v42, %s6870_s1  ;;  %v7301_v57 = vmul.f32 %v620_v56, %v7292_v41  ;;  %v99_v56 = vld [vmem:[%s8589_s18 + $0x18] sm:$0xff] }
 0x46a   :  { %v5939_v1 = vpack.c.bf16 %v7297_v55, %v7301_v57  ;;  %v5108_v3 = vpop.f32.mrb[16].mxu0  ;;  %v8634_v29 = vpack.i.bf16 %v7297_v55, %v7301_v57 }
 0x46b   :  { %v654_v34 = vmul.f32 %v5108_v3, %v7306_v54  ;;  %v630_v35 = vpop.f32.mrb[17].mxu0  ;;  %v101_v3 = vld [vmem:[%s8589_s18 + $0x28] sm:$0xff] }
 0x46c   :  { %v653_v36 = vmul.f32 %v630_v35, %v7311_v58  ;;  %v102_v35 = vld [vmem:[%s8589_s18 + $0x30] sm:$0xff] }
 0x46d   :  { %5926 = vmatpush3.bf16.xpose.msk.msra.mxu1 %vm7191_vm8, %v5921_v0  ;;  %v96_v0 = vld [vmem:[%s8589_s18] sm:$0xff] }
 0x46e   :  { %5929 = vmatprep.subr.msk.bf16.mxu1 %vm7191_vm8, %v5927_v28  ;;  %v6631_v37 = vpack.i.bf16 %v654_v34, %v653_v36  ;;  %v5945_v42 = vpack.c.bf16 %v654_v34, %v653_v36  ;;  %v103_v36 = vld [vmem:[%s8589_s18 + $0x38] sm:$0xff] }
 0x470   :  { %6632 = vrot.lane.b32.xlu0 %v6631_v37, %s6870_s1  ;;  %v7375_v37 = vpack.c.bf16 %v103_v36, %v102_v35 }
 0x475   :  { %5932 = vmatpush3.bf16.xpose.msk.msra.mxu1 %vm7191_vm8, %v5927_v28  ;;  %v97_v28 = vld [vmem:[%s8589_s18 + $0x8] sm:$0xff] }
 0x476   :  { %5935 = vmatprep.subr.msk.bf16.mxu1 %vm7191_vm8, %v5933_v43  ;;  %v7349_v46 = vpack.c.bf16 %v97_v28, %v96_v0  ;;  %v105_v0 = vld [vmem:[%s8589_s18 + $0x48] sm:$0xff] }
 0x478   :  { %5952 = vmatprep.subr.bf16.mxu0 %v7349_v46 }
 0x479   :  { %5954 = vmatpush3.bf16.msra.mxu0 %v7349_v46 }
 0x47d   :  { %5938 = vmatpush3.bf16.xpose.msk.msra.mxu1 %vm7191_vm8, %v5933_v43  ;;  %v98_v43 = vld [vmem:[%s8589_s18 + $0x10] sm:$0xff] }
 0x47e   :  { %5941 = vmatprep.subr.msk.bf16.mxu1 %vm7191_vm8, %v5939_v1 }
 0x485   :  { %5944 = vmatpush3.bf16.xpose.msk.msra.mxu1 %vm7191_vm8, %v5939_v1  ;;  %v7354_v1 = vpack.c.bf16 %v99_v56, %v98_v43 }
 0x486   :  { %5947 = vmatprep.subr.msk.bf16.mxu1 %vm7191_vm8, %v5945_v42 }
 0x487   :  { %5956 = vmatprep.subr.bf16.mxu0 %v7354_v1 }
 0x488   :  { %5958 = vmatpush3.bf16.msra.mxu0 %v7354_v1 }
 0x48d   :  { %5950 = vmatpush3.bf16.xpose.msk.msra.mxu1 %vm7191_vm8, %v5945_v42  ;;  %v104_v42 = vld [vmem:[%s8589_s18 + $0x40] sm:$0xff] }
 0x48e   :  { %v7385_v28 = vpack.c.bf16 %v105_v0, %v104_v42  ;;  %v7399_v42 = vld [vmem:[%s8590_s15 + $0x8] sm:$0xff] }
 0x48f   :  { %8631 = vst [vmem:[#allocation7_spill] sm:$0xff] %v7399_v42 }
 0x494   :  { %5142 = vmatmul.mubr.msk.f32.vlgmr.msra.gmra.mrb[4].mxu1 %vm305_vm6, %v7058_v63  ;;  %v100_v63 = vld [vmem:[%s8589_s18 + $0x20] sm:$0xff] }
 0x495   :  { %v7365_v34 = vpack.c.bf16 %v101_v3, %v100_v63  ;;  %v7393_v63 = vld [vmem:[%s8590_s15] sm:$0xff] }
 0x496   :  { %8630 = vst [vmem:[#allocation6_spill] sm:$0xff] %v7393_v63 }
 0x497   :  { %5960 = vmatprep.subr.bf16.mxu0 %v7365_v34 }
 0x498   :  { %5962 = vmatpush3.bf16.msra.mxu0 %v7365_v34 }
 0x499   :  { %5964 = vmatprep.subr.bf16.mxu0 %v7375_v37 }
 0x49c   :  { %5966 = vmatpush3.bf16.msra.mxu0 %v7375_v37 }
 0x49d   :  { %5968 = vmatprep.subr.bf16.mxu0 %v7385_v28 }
 0x4a0   :  { %5970 = vmatpush3.bf16.msra.mxu0 %v7385_v28 }
 0x4ca   :  { %v6603_v54 = vpop.permute.xlu0 %6602 }
 0x4cb   :  { %v6605_v4 = vunpack.i.h.bf16 %v6603_v54 }
 0x567   :  { %v5143_v43 = vpop.f32.mrb[4].mxu1 }
 0x568   :  { %v773_v56 = vpop.f32.mrb[5].mxu1  ;;  %v783_v35 = vmul.f32 0.5, %v5143_v43 }
 0x569   :  { %v782_v3 = vmul.f32 0.5, %v773_v56  ;;  %v107_v56 = vld [vmem:[%s8589_s18 + $0x58] sm:$0xff] }
 0x56a   :  { %v785_v0 = vadd.f32 %v783_v35, %v7399_v42  ;;  %v7408_v43 = vpack.c.bf16 %v107_v56, %v106_v62  ;;  %v109_v35 = vld [vmem:[%s8589_s18 + $0x68] sm:$0xff]  ;;  %v110_v62 = vld [vmem:[%s8589_s18 + $0x70] sm:$0xff]  ;;  %v111_v56 = vld [vmem:[%s8589_s18 + $0x78] sm:$0xff] }
 0x56b   :  { %v784_v36 = vadd.f32 %v782_v3, %v7393_v63  ;;  %v108_v3 = vld [vmem:[%s8589_s18 + $0x60] sm:$0xff]  ;;  %v7432_v53 = vpack.c.bf16 %v111_v56, %v110_v62 }
 0x56c   :  { %5972 = vmatprep.subr.bf16.mxu0 %v7408_v43  ;;  %v7418_v26 = vpack.c.bf16 %v109_v35, %v108_v3  ;;  %v8632_v3 = vpack.i.bf16 %v7221_v44, %v7227_v50 }
 0x56d   :  { %786 = vmax.xlane.f32.xlu1 %v784_v36  ;;  %5974 = vmatpush3.bf16.msra.mxu0 %v7408_v43 }
 0x56e   :  { %5976 = vmatprep.subr.bf16.mxu0 %v7418_v26 }
 0x571   :  { %788 = vmax.xlane.f32.xlu1 %v785_v0  ;;  %5978 = vmatpush3.bf16.msra.mxu0 %v7418_v26 }
 0x572   :  { %5980 = vmatprep.subr.bf16.mxu0 %v7432_v53 }
 0x575   :  { %5982 = vmatpush3.bf16.msra.mxu0 %v7432_v53 }
 0x582   :  { %6597 = vrot.lane.b32.xlu1 %v6596_v33, %s6870_s1 }
 0x586   :  { %6607 = vrot.lane.b32.xlu1 %v8632_v3, %s6870_s1 }
 0x58a   :  { %6617 = vrot.lane.b32.xlu1 %v8633_v27, %s6870_s1  ;;  %v6604_v27 = vunpack.i.l.bf16 %v6603_v54 }
 0x58e   :  { %6627 = vrot.lane.b32.xlu1 %v8634_v29, %s6870_s1 }
 0x5fa   :  { %v787_v33 = vpop.xlane.xlu1 %786 }
 0x5fb   :  { %v790_v35 = vsub.f32 %v784_v36, %v787_v33  ;;  %v5987_v36 = vpack.c.bf16 %v6605_v4, %v6604_v27 }
 0x5fd   :  { %v792_v62 = vmul.f32 1.442695, %v790_v35 }
 0x5fe   :  { %v789_v56 = vpop.xlane.xlu1 %788 }
 0x5ff   :  { %6775 = vpow2.f32 %v792_v62  ;;  %v791_v42 = vsub.f32 %v785_v0, %v789_v56 }
 0x601   :  { %v794_v44 = vmul.f32 1.442695, %v791_v42  ;;  %v6613_v42 = vpop.permute.xlu0 %6612 }
 0x602   :  { %v6598_v50 = vpop.permute.xlu1 %6597  ;;  %v6615_v0 = vunpack.i.h.bf16 %v6613_v42  ;;  %v6614_v35 = vunpack.i.l.bf16 %v6613_v42 }
 0x603   :  { %6777 = vpow2.f32 %v794_v44  ;;  %v6600_v3 = vunpack.i.h.bf16 %v6598_v50  ;;  %v6599_v63 = vunpack.i.l.bf16 %v6598_v50 }
 0x604   :  { %v5995_v56 = vpack.c.bf16 %v6615_v0, %v6614_v35  ;;  %v998_v35 = vld [vmem:[%s8591_s8] sm:$0xff] }
 0x605   :  { %v5983_v58 = vpack.c.bf16 %v6600_v3, %v6599_v63  ;;  %v6623_v50 = vpop.permute.xlu0 %6622 }
 0x606   :  { %v6608_v55 = vpop.permute.xlu1 %6607  ;;  %v6625_v3 = vunpack.i.h.bf16 %v6623_v50  ;;  %v6624_v4 = vunpack.i.l.bf16 %v6623_v50 }
 0x607   :  { %5984 = vmatprep.subr.bf16.mxu0 %v5983_v58  ;;  %v6610_v29 = vunpack.i.h.bf16 %v6608_v55  ;;  %v6609_v33 = vunpack.i.l.bf16 %v6608_v55 }
 0x609   :  { %v7448_v2 = vpop.eup %6775  ;;  %v5991_v63 = vpack.c.bf16 %v6610_v29, %v6609_v33  ;;  %v6633_v42 = vpop.permute.xlu0 %6632 }
 0x60a   :  { %5176 = vmatprep.mubr.f32.mxu0 %v7448_v2  ;;  %v6618_v62 = vpop.permute.xlu1 %6617  ;;  %v6634_v29 = vunpack.i.l.bf16 %v6633_v42 }
 0x60b   :  { %v6620_v44 = vunpack.i.h.bf16 %v6618_v62  ;;  %v6619_v54 = vunpack.i.l.bf16 %v6618_v62  ;;  %v1000_v62 = vld [vmem:[%s8591_s8 + $0x10] sm:$0xff] }
 0x60d   :  { %v6778_v57 = vpop.eup %6777  ;;  %v5999_v27 = vpack.c.bf16 %v6620_v44, %v6619_v54 }
 0x60e   :  { %5177 = vmatmul.mubr.f32.vlgmr.msra.gmra.mrb[18].mxu0 %v6778_v57  ;;  %v6628_v55 = vpop.permute.xlu1 %6627 }
 0x60f   :  { %5986 = vmatpush3.bf16.msra.mxu0 %v5983_v58  ;;  %v6003_v58 = vpack.c.bf16 %v6625_v3, %v6624_v4  ;;  %v6630_v41 = vunpack.i.h.bf16 %v6628_v55  ;;  %v6629_v38 = vunpack.i.l.bf16 %v6628_v55 }
 0x610   :  { %5988 = vmatprep.subr.bf16.mxu0 %v5987_v36 }
 0x611   :  { %v6007_v33 = vpack.c.bf16 %v6630_v41, %v6629_v38  ;;  %v1001_v38 = vld [vmem:[%s8591_s8 + $0x18] sm:$0xff] }
 0x612   :  { %v6019_v41 = vpack.c.bf16 %v1001_v38, %v1000_v62 }
 0x613   :  { %5990 = vmatpush3.bf16.msra.mxu0 %v5987_v36  ;;  %v6635_v36 = vunpack.i.h.bf16 %v6633_v42 }
 0x614   :  { %5992 = vmatprep.subr.bf16.mxu0 %v5991_v63 }
 0x615   :  { %v6011_v0 = vpack.c.bf16 %v6635_v36, %v6634_v29  ;;  %v7467_v29 = vsub.s32 4, %v7029_v45 }
 0x617   :  { %5994 = vmatpush3.bf16.msra.mxu0 %v5991_v63  ;;  %v999_v63 = vld [vmem:[%s8591_s8 + $0x8] sm:$0xff] }
 0x618   :  { %5996 = vmatprep.subr.bf16.mxu0 %v5995_v56 }
 0x61b   :  { %5998 = vmatpush3.bf16.msra.mxu0 %v5995_v56  ;;  %v6015_v56 = vpack.c.bf16 %v999_v63, %v998_v35 }
 0x61c   :  { %6000 = vmatprep.subr.bf16.mxu0 %v5999_v27 }
 0x61d   :  { %6016 = vmatprep.subr.bf16.mxu1 %v6015_v56 }
 0x61e   :  { %6018 = vmatpush3.bf16.msra.mxu1 %v6015_v56 }
 0x61f   :  { %6002 = vmatpush3.bf16.msra.mxu0 %v5999_v27  ;;  %6020 = vmatprep.subr.bf16.mxu1 %v6019_v41 }
 0x620   :  { %6004 = vmatprep.subr.bf16.mxu0 %v6003_v58 }
 0x622   :  { %6022 = vmatpush3.bf16.msra.mxu1 %v6019_v41 }
 0x623   :  { %6006 = vmatpush3.bf16.msra.mxu0 %v6003_v58 }
 0x624   :  { %6008 = vmatprep.subr.bf16.mxu0 %v6007_v33 }
 0x627   :  { %6010 = vmatpush3.bf16.msra.mxu0 %v6007_v33  ;;  %v1088_v33 = vrot.slane %v7037_v48, %v7467_v29 }
 0x628   :  { %6012 = vmatprep.subr.bf16.mxu0 %v6011_v0 }
 0x62b   :  { %6014 = vmatpush3.bf16.msra.mxu0 %v6011_v0 }
 0x6e1   :  { %v5178_v44 = vpop.f32.mrb[18].mxu0 }
 0x6e2   :  { %v868_v54 = vadd.f32 1e-30, %v5178_v44  ;;  %v862_v50 = vpop.f32.mrb[19].mxu0 }
 0x6e3   :  { %v863_v3 = vadd.f32 1e-30, %v862_v50 }
 0x6e4   :  { %6779 = vrcp.f32 %v868_v54 }
 0x6e5   :  { %6781 = vrcp.f32 %v863_v3 }
 0x6ee   :  { %v6780_v4 = vpop.eup %6779 }
 0x6ef   :  { %v6782_v27 = vpop.eup %6781  ;;  %v874_v58 = vmul.f32 %v6780_v4, %v6778_v57 }
 0x6f0   :  { %v873_v55 = vmul.f32 %v6782_v27, %v7448_v2 }
 0x6f2   :  { %5211 = vmatprep.mubr.f32.mxu0 %v873_v55 }
 0x6f3   :  { %5212 = vmatmul.mubr.f32.vlgmr.msra.gmra.mrb[20].mxu0 %v874_v58  ;;  %v1129_v58 = vld [vmem:[%s8592_s9] sm:$0xff] }
 0x7c6   :  { %v5213_v42 = vpop.f32.mrb[20].mxu0 }
 0x7c7   :  { %v989_v36 = vpop.f32.mrb[21].mxu0 }
 0x7c8   :  { %5222 = vmatprep.mubr.msk.f32.mxu1 %vm305_vm6, %v989_v36 }
 0x7c9   :  { %5223 = vmatmul.mubr.msk.f32.vlgmr.msra.gmra.mrb[6].mxu1 %vm305_vm6, %v5213_v42  ;;  %v1130_v42 = vld [vmem:[%s8592_s9 + $0x8] sm:$0xff] }
 0x7ca   :  { %v6023_v36 = vpack.c.bf16 %v1130_v42, %v1129_v58 }
 0x7cc   :  { %6024 = vmatprep.subr.bf16.mxu1 %v6023_v36 }
 0x7cd   :  { %6026 = vmatpush3.bf16.msra.mxu1 %v6023_v36 }
 0x89c   :  { %v5224_v0 = vpop.f32.mrb[6].mxu1 }
 0x89d   :  { %v1084_v35 = vadd.f32 %v5224_v0, %v7007_v20  ;;  %v1074_v63 = vpop.f32.mrb[7].mxu1  ;;  %v1132_v0 = vld [vmem:[%s8592_s9 + $0x18] sm:$0xff] }
 0x89e   :  { %v1083_v2 = vadd.f32 %v1074_v63, %v7005_v19  ;;  %v1223_v63 = vld [vmem:[%s8593_s11] sm:$0xff] }
 0x89f   :  { %v7473_v57 = vadd.f32 %v1088_v33, %v1084_v35 }
 0x8a0   :  { %v7475_v62 = vadd.f32 %v1088_v33, %v1083_v2  ;;  %v1131_v33 = vld [vmem:[%s8592_s9 + $0x10] sm:$0xff]  ;;  %v1224_v2 = vld [vmem:[%s8593_s11 + $0x8] sm:$0xff] }
 0x8a1   :  { %v1094_v56 = vsel %vm305_vm6, %v7473_v57, 0.0  ;;  %v6027_v35 = vpack.c.bf16 %v1132_v0, %v1131_v33 }
 0x8a2   :  { %1095 = vadd.xlane.f32.xlu0 %v1094_v56  ;;  %v1091_v38 = vsel %vm305_vm6, %v7475_v62, 0.0  ;;  %v6031_v56 = vpack.c.bf16 %v1224_v2, %v1223_v63  ;;  %v1225_v2 = vld [vmem:[%s8593_s11 + $0x10] sm:$0xff] }
 0x8a3   :  { %1092 = vadd.xlane.f32.xlu1 %v1091_v38  ;;  %6028 = vmatprep.subr.bf16.mxu1 %v6027_v35 }
 0x8a4   :  { %6030 = vmatpush3.bf16.msra.mxu1 %v6027_v35 }
 0x8a5   :  { %6032 = vmatprep.subr.bf16.mxu1 %v6031_v56 }
 0x92f   :  { %v1096_v41 = vpop.xlane.xlu0 %1095 }
 0x930   :  { %v1098_v44 = vmul.f32 0.03125, %v1096_v41  ;;  %v1093_v54 = vpop.xlane.xlu1 %1092 }
 0x931   :  { %v1097_v50 = vmul.f32 0.03125, %v1093_v54 }
 0x932   :  { %v1100_v20 = vsub.f32 %v7473_v57, %v1098_v44 }
 0x933   :  { %v1099_v19 = vsub.f32 %v7475_v62, %v1097_v50 }
 0x934   :  { %v1102_v27 = vmul.f32 %v1100_v20, %v1100_v20 }
 0x935   :  { %v1101_v3 = vmul.f32 %v1099_v19, %v1099_v19 }
 0x936   :  { %v1106_v55 = vsel %vm305_vm6, %v1102_v27, 0.0  ;;  %v7507_v27 = vsub.s32 3, %v7029_v45 }
 0x937   :  { %v1103_v4 = vsel %vm305_vm6, %v1101_v3, 0.0 }
 0x938   :  { %1104 = vadd.xlane.f32.xlu0 %v1103_v4  ;;  %v7504_v4 = vsub.s32 2, %v7029_v45  ;;  %v1126_v36 = vrot.slane %v7037_v48, %v7507_v27 }
 0x93c   :  { %1107 = vadd.xlane.f32.xlu0 %v1106_v55  ;;  %v1120_v55 = vrot.slane %v7037_v48, %v7504_v4 }
 0x9c5   :  { %v1105_v38 = vpop.xlane.xlu0 %1104 }
 0x9c6   :  { %v1109_v41 = vmul.f32 0.03125, %v1105_v38  ;;  %v1226_v38 = vld [vmem:[%s8593_s11 + $0x18] sm:$0xff] }
 0x9c8   :  { %v1111_v44 = vadd.f32 1e-05, %v1109_v41 }
 0x9c9   :  { %v1108_v54 = vpop.xlane.xlu0 %1107 }
 0x9ca   :  { %6783 = vrsqrt.f32 %v1111_v44  ;;  %v1110_v50 = vmul.f32 0.03125, %v1108_v54  ;;  %v1227_v54 = vld [vmem:[%s8593_s11 + $0x20] sm:$0xff] }
 0x9cc   :  { %v1112_v3 = vadd.f32 1e-05, %v1110_v50 }
 0x9ce   :  { %6785 = vrsqrt.f32 %v1112_v3  ;;  %v1229_v3 = vld [vmem:[%s8593_s11 + $0x30] sm:$0xff] }
 0x9d4   :  { %v6784_v58 = vpop.eup %6783 }
 0x9d5   :  { %v1115_v42 = vmul.f32 %v6784_v58, %v1099_v19  ;;  %v6035_v19 = vpack.c.bf16 %v1226_v38, %v1225_v2  ;;  %v1236_v2 = vld [vmem:[%s8593_s11 + $0x68] sm:$0xff] }
 0x9d7   :  { %v1121_v33 = vmul.f32 %v1120_v55, %v1115_v42  ;;  %v1231_v42 = vld [vmem:[%s8593_s11 + $0x40] sm:$0xff] }
 0x9d8   :  { %v6786_v0 = vpop.eup %6785 }
 0x9d9   :  { %v1116_v35 = vmul.f32 %v6786_v0, %v1100_v20  ;;  %v1127_v63 = vadd.f32 %v1126_v36, %v1121_v33  ;;  %v1228_v20 = vld [vmem:[%s8593_s11 + $0x28] sm:$0xff]  ;;  %v1233_v33 = vld [vmem:[%s8593_s11 + $0x50] sm:$0xff]  ;;  %v1234_v0 = vld [vmem:[%s8593_s11 + $0x58] sm:$0xff] }
 0x9da   :  { %v6039_v50 = vpack.c.bf16 %v1228_v20, %v1227_v54  ;;  %v4388_v54 = vld [vmem:[%s8594_s10] ss:$0 sm:$0xff] }
 0x9db   :  { %v1122_v41 = vmul.f32 %v1120_v55, %v1116_v35  ;;  %5233 = vmatprep.mubr.msk.f32.mxu1 %vm305_vm6, %v1127_v63  ;;  %v1230_v55 = vld [vmem:[%s8593_s11 + $0x38] sm:$0xff]  ;;  %v6051_v35 = vpack.c.bf16 %v1234_v0, %v1233_v33  ;;  %v1235_v63 = vld [vmem:[%s8593_s11 + $0x60] sm:$0xff] }
 0x9dc   :  { %v6043_v58 = vpack.c.bf16 %v1230_v55, %v1229_v3  ;;  %v6055_v38 = vpack.c.bf16 %v1236_v2, %v1235_v63 }
 0x9dd   :  { %v1128_v44 = vadd.f32 %v1126_v36, %v1122_v41  ;;  %v1237_v41 = vld [vmem:[%s8593_s11 + $0x70] sm:$0xff] }
 0x9df   :  { %5234 = vmatmul.mubr.msk.f32.vlgmr.msra.gmra.mrb[8].mxu1 %vm305_vm6, %v1128_v44  ;;  %v1238_v44 = vld [vmem:[%s8593_s11 + $0x78] sm:$0xff] }
 0x9e0   :  { %6034 = vmatpush3.bf16.msra.mxu1 %v6031_v56  ;;  %v1232_v56 = vld [vmem:[%s8593_s11 + $0x48] sm:$0xff] }
 0x9e1   :  { %6036 = vmatprep.subr.bf16.mxu1 %v6035_v19  ;;  %v6047_v36 = vpack.c.bf16 %v1232_v56, %v1231_v42  ;;  %v7577_v56 = vsub.s32 5, %v7029_v45 }
 0x9e4   :  { %6038 = vmatpush3.bf16.msra.mxu1 %v6035_v19  ;;  %v6059_v19 = vpack.c.bf16 %v1238_v44, %v1237_v41 }
 0x9e5   :  { %6040 = vmatprep.subr.bf16.mxu1 %v6039_v50 }
 0x9e8   :  { %6042 = vmatpush3.bf16.msra.mxu1 %v6039_v50 }
 0x9e9   :  { %6044 = vmatprep.subr.bf16.mxu1 %v6043_v58 }
 0x9ec   :  { %6046 = vmatpush3.bf16.msra.mxu1 %v6043_v58 }
 0x9ed   :  { %6048 = vmatprep.subr.bf16.mxu1 %v6047_v36 }
 0x9f0   :  { %6050 = vmatpush3.bf16.msra.mxu1 %v6047_v36  ;;  %v1319_v36 = vrot.slane %v7037_v48, %v7577_v56 }
 0x9f1   :  { %6052 = vmatprep.subr.bf16.mxu1 %v6051_v35 }
 0x9f4   :  { %6054 = vmatpush3.bf16.msra.mxu1 %v6051_v35 }
 0x9f5   :  { %6056 = vmatprep.subr.bf16.mxu1 %v6055_v38 }
 0x9f8   :  { %6058 = vmatpush3.bf16.msra.mxu1 %v6055_v38 }
 0x9f9   :  { %6060 = vmatprep.subr.bf16.mxu1 %v6059_v19 }
 0x9fc   :  { %6062 = vmatpush3.bf16.msra.mxu1 %v6059_v19 }
 0x9fd   :  { %6124 = vmatprep.subr.bf16.mxu1 %v7349_v46 }
 0xab2   :  { %v5235_v20 = vpop.f32.mrb[8].mxu1 }
 0xab3   :  { %v1218_v50 = vadd.f32 %v5235_v20, %v4388_v54  ;;  %v1212_v3 = vpop.f32.mrb[9].mxu1 }
 0xab4   :  { %v1213_v55 = vadd.f32 %v4388_v54, %v1212_v3 }
 0xab5   :  { %v1222_v42 = vmax.f32 %v1218_v50, 0.0 }
 0xab6   :  { %v1221_v58 = vmax.f32 %v1213_v55, 0.0 }
 0xab8   :  { %5268 = vmatprep.mubr.f32.mxu1 %v1221_v58  ;;  %v4392_v58 = vld [vmem:[%s8584_s6 + $0x20] sm:$0xff] }
 0xab9   :  { %5269 = vmatmul.mubr.f32.vlgmr.msra.gmra.mrb[10].mxu1 %v1222_v42  ;;  %v4393_v42 = vld [vmem:[%s8584_s6 + $0x28] sm:$0xff] }
 0xaba   :  { %6126 = vmatpush3.bf16.msra.mxu1 %v7349_v46 }
 0xabb   :  { %6128 = vmatprep.subr.bf16.mxu1 %v7354_v1 }
 0xabe   :  { %6130 = vmatpush3.bf16.msra.mxu1 %v7354_v1 }
 0xabf   :  { %6132 = vmatprep.subr.bf16.mxu1 %v7365_v34 }
 0xac2   :  { %6134 = vmatpush3.bf16.msra.mxu1 %v7365_v34 }
 0xac3   :  { %6136 = vmatprep.subr.bf16.mxu1 %v7375_v37 }
 0xac6   :  { %6138 = vmatpush3.bf16.msra.mxu1 %v7375_v37 }
 0xac7   :  { %6140 = vmatprep.subr.bf16.mxu1 %v7385_v28 }
 0xaca   :  { %6142 = vmatpush3.bf16.msra.mxu1 %v7385_v28 }
 0xacb   :  { %6144 = vmatprep.subr.bf16.mxu1 %v7408_v43 }
 0xace   :  { %6146 = vmatpush3.bf16.msra.mxu1 %v7408_v43 }
 0xacf   :  { %6148 = vmatprep.subr.bf16.mxu1 %v7418_v26 }
 0xad2   :  { %6150 = vmatpush3.bf16.msra.mxu1 %v7418_v26 }
 0xad3   :  { %6152 = vmatprep.subr.bf16.mxu1 %v7432_v53 }
 0xad6   :  { %6154 = vmatpush3.bf16.msra.mxu1 %v7432_v53 }
 0xb8c   :  { %v5270_v33 = vpop.f32.mrb[10].mxu1 }
 0xb8d   :  { %v1315_v0 = vadd.f32 %v5270_v33, %v7473_v57  ;;  %v1305_v35 = vpop.f32.mrb[11].mxu1  ;;  %v4394_v33 = vld [vmem:[%s8584_s6 + $0x30] sm:$0xff] }
 0xb8e   :  { %v1314_v63 = vadd.f32 %v1305_v35, %v7475_v62 }
 0xb8f   :  { %v7583_v2 = vadd.f32 %v1319_v36, %v1315_v0  ;;  %v4395_v0 = vld [vmem:[%s8584_s6 + $0x38] sm:$0xff] }
 0xb90   :  { %v7585_v38 = vadd.f32 %v1319_v36, %v1314_v63  ;;  %v6063_v36 = vpack.c.bf16 %v4393_v42, %v4392_v58  ;;  %v6067_v35 = vpack.c.bf16 %v4395_v0, %v4394_v33 }
 0xb91   :  { %v1327_v41 = vsel %vm305_vm6, %v7583_v2, 0.0 }
 0xb92   :  { %1328 = vadd.xlane.f32.xlu0 %v1327_v41  ;;  %v1324_v45 = vsel %vm305_vm6, %v7585_v38, 0.0  ;;  %6064 = vmatprep.subr.bf16.mxu0 %v6063_v36 }
 0xb93   :  { %1325 = vadd.xlane.f32.xlu1 %v1324_v45  ;;  %6066 = vmatpush3.bf16.msra.mxu0 %v6063_v36 }
 0xb94   :  { %6068 = vmatprep.subr.bf16.mxu0 %v6067_v35 }
 0xb97   :  { %6070 = vmatpush3.bf16.msra.mxu0 %v6067_v35 }
 0xc1f   :  { %v1329_v44 = vpop.xlane.xlu0 %1328 }
 0xc20   :  { %v1331_v48 = vmul.f32 0.03125, %v1329_v44  ;;  %v1326_v19 = vpop.xlane.xlu1 %1325 }
 0xc21   :  { %v1330_v54 = vmul.f32 0.03125, %v1326_v19 }
 0xc22   :  { %v1333_v57 = vsub.f32 %v7583_v2, %v1331_v48 }
 0xc23   :  { %v1332_v62 = vsub.f32 %v7585_v38, %v1330_v54  ;;  %v7610_v54 = vld [vmem:[%s8585_s12 + $0x8] sm:$0x3f] }
 0xc24   :  { %v1335_v20 = vmul.f32 %v1333_v57, %v1333_v57  ;;  %v1359_v42 = vrot.slane %v7610_v54, %v7040_v49 }
 0xc25   :  { %v1334_v50 = vmul.f32 %v1332_v62, %v1332_v62 }
 0xc26   :  { %v1339_v3 = vsel %vm305_vm6, %v1335_v20, 0.0  ;;  %v1353_v20 = vrot.slane %v7610_v54, %v7032_v47 }
 0xc27   :  { %1340 = vadd.xlane.f32.xlu0 %v1339_v3  ;;  %v1336_v55 = vsel %vm305_vm6, %v1334_v50, 0.0 }
 0xc28   :  { %1337 = vadd.xlane.f32.xlu1 %v1336_v55 }
 0xcb4   :  { %v1341_v63 = vpop.xlane.xlu0 %1340 }
 0xcb5   :  { %v1343_v41 = vmul.f32 0.03125, %v1341_v63  ;;  %v1338_v45 = vpop.xlane.xlu1 %1337  ;;  %v4397_v63 = vld [vmem:[%s8586_s7 + $0x1] ss:$0 sm:$0xff] }
 0xcb6   :  { %v1342_v44 = vmul.f32 0.03125, %v1338_v45 }
 0xcb7   :  { %v1345_v48 = vadd.f32 1e-05, %v1343_v41 }
 0xcb8   :  { %v1344_v19 = vadd.f32 1e-05, %v1342_v44 }
 0xcb9   :  { %6787 = vrsqrt.f32 %v1345_v48 }
 0xcba   :  { %6789 = vrsqrt.f32 %v1344_v19 }
 0xcc3   :  { %v6788_v50 = vpop.eup %6787 }
 0xcc4   :  { %v6790_v3 = vpop.eup %6789  ;;  %v1349_v55 = vmul.f32 %v6788_v50, %v1333_v57 }
 0xcc5   :  { %v1348_v58 = vmul.f32 %v6790_v3, %v1332_v62 }
 0xcc6   :  { %v1355_v36 = vmul.f32 %v1353_v20, %v1349_v55 }
 0xcc7   :  { %v1354_v33 = vmul.f32 %v1353_v20, %v1348_v58 }
 0xcc8   :  { %v1361_v35 = vadd.f32 %v1359_v42, %v1355_v36 }
 0xcc9   :  { %v1360_v0 = vadd.f32 %v1359_v42, %v1354_v33 }
 0xccb   :  { %5279 = vmatprep.mubr.msk.f32.mxu0 %vm305_vm6, %v1360_v0 }
 0xccc   :  { %5280 = vmatmul.mubr.msk.f32.vlgmr.msra.gmra.mrb[22].mxu0 %vm305_vm6, %v1361_v35 }
 0xccd   :  { %5286 = vmatprep.mubr.msk.f32.mxu0 %vm445_vm7, %v7054_v61 }
 0xd9f   :  { %v5281_v57 = vpop.f32.mrb[22].mxu0 }
 0xda0   :  { %v7623_v62 = vadd.f32 %v5281_v57, %v4397_v63  ;;  %v1447_v41 = vpop.f32.mrb[23].mxu0 }
 0xda1   :  { %v1448_v45 = vadd.f32 %v4397_v63, %v1447_v41 }
 0xda3   :  { %v6636_v44 = vpack.i.bf16 %v7623_v62, %v1448_v45 }
 0xda5   :  { %6637 = vrot.lane.b32.xlu1 %v6636_v44, %s6870_s1 }
 0xe17   :  { %v6638_v48 = vpop.permute.xlu1 %6637 }
 0xe18   :  { %v6640_v19 = vunpack.i.h.bf16 %v6638_v48  ;;  %v6639_v20 = vunpack.i.l.bf16 %v6638_v48 }
 0xe1a   :  { %v6071_v50 = vpack.c.bf16 %v6640_v19, %v6639_v20 }
 0xe1c   :  { %6072 = vmatprep.subr.bf16.mxu0 %v6071_v50 }
 0xe1d   :  { %6074 = vmatpush3.bf16.msra.mxu0 %v6071_v50 }
 0xe20   :  { %5287 = vmatmul.mubr.msk.f32.vlgmr.msra.gmra.mrb[24].mxu0 %vm445_vm7, %v7066_v7 }
 0xe21   :  { %5289 = vmatprep.mubr.msk.f32.mxu0 %vm445_vm7, %v7071_v8 }
 0xe24   :  { %5290 = vmatmul.mubr.msk.f32.gmra.mrb[26].mxu0 %vm445_vm7, %v7080_v9 }
 0xe25   :  { %5292 = vmatprep.mubr.msk.f32.mxu0 %vm445_vm7, %v7085_v10 }
 0xe28   :  { %5293 = vmatmul.mubr.msk.f32.gmra.mrb[28].mxu0 %vm445_vm7, %v7094_v11 }
 0xe29   :  { %5295 = vmatprep.mubr.msk.f32.mxu0 %vm445_vm7, %v7099_v12 }
 0xe2c   :  { %5296 = vmatmul.mubr.msk.f32.gmra.mrb[30].mxu0 %vm445_vm7, %v7108_v13 }
 0xe2d   :  { %5298 = vmatprep.mubr.msk.f32.mxu0 %vm445_vm7, %v7113_v14 }
 0xe30   :  { %5299 = vmatmul.mubr.msk.f32.gmra.mrb[32].mxu0 %vm445_vm7, %v7122_v15 }
 0xe31   :  { %5301 = vmatprep.mubr.msk.f32.mxu0 %vm445_vm7, %v7127_v16 }
 0xe34   :  { %5302 = vmatmul.mubr.msk.f32.gmra.mrb[34].mxu0 %vm445_vm7, %v7136_v17 }
 0xe35   :  { %5304 = vmatprep.mubr.msk.f32.mxu0 %vm445_vm7, %v7141_v18 }
 0xe38   :  { %5305 = vmatmul.mubr.msk.f32.gmra.mrb[36].mxu0 %vm445_vm7, %v7150_v21 }
 0xe39   :  { %5307 = vmatprep.mubr.msk.f32.mxu0 %vm445_vm7, %v7155_v22 }
 0xe3c   :  { %5308 = vmatmul.mubr.msk.f32.gmra.mrb[38].mxu0 %vm445_vm7, %v7164_v23 }
 0xe3d   :  { %5342 = vmatprep.mubr.msk.f32.mxu0 %vm305_vm6, %v1448_v45 }
 0xef3   :  { %v5288_v61 = vpop.f32.mrb[24].mxu0 }
 0xef4   :  { %v7659_v7 = vmul.f32 %v5288_v61, %v7171_v24  ;;  %v1530_v8 = vpop.f32.mrb[25].mxu0 }
 0xef5   :  { %v7662_v9 = vmul.f32 %v1530_v8, %v7176_v25 }
 0xef7   :  { %v6641_v10 = vpack.i.bf16 %v7659_v7, %v7662_v9  ;;  %v6075_v11 = vpack.c.bf16 %v7659_v7, %v7662_v9  ;;  %v5291_v12 = vpop.f32.mrb[26].mxu0 }
 0xef8   :  { %v1612_v13 = vmul.f32 %v5291_v12, %v7187_v30  ;;  %v1540_v14 = vpop.f32.mrb[27].mxu0  ;;  %v8638_v12 = vld [vmem:[#allocation5_spill] sm:$0xff] }
 0xef9   :  { %6077 = vmatprep.subr.msk.bf16.mxu0 %vm7191_vm8, %v6075_v11  ;;  %v1611_v15 = vmul.f32 %v1540_v14, %v7198_v32 }
 0xefa   :  { %6080 = vmatpush3.bf16.xpose.msk.msra.mxu0 %vm7191_vm8, %v6075_v11 }
 0xefb   :  { %v6646_v16 = vpack.i.bf16 %v1612_v13, %v1611_v15  ;;  %v6081_v17 = vpack.c.bf16 %v1612_v13, %v1611_v15  ;;  %v5294_v18 = vpop.f32.mrb[28].mxu0 }
 0xefc   :  { %v1614_v21 = vmul.f32 %v5294_v18, %v7211_v39  ;;  %v1550_v22 = vpop.f32.mrb[29].mxu0 }
 0xefd   :  { %6647 = vrot.lane.b32.xlu1 %v6646_v16, %s6870_s1  ;;  %6083 = vmatprep.subr.msk.bf16.mxu0 %vm7191_vm8, %v6081_v17  ;;  %v1613_v23 = vmul.f32 %v1550_v22, %v7218_v40  ;;  %v8639_v22 = vld [vmem:[#allocation6_spill] sm:$0xff] }
 0xeff   :  { %v6651_v24 = vpack.i.bf16 %v1614_v21, %v1613_v23  ;;  %v6087_v25 = vpack.c.bf16 %v1614_v21, %v1613_v23  ;;  %v5297_v30 = vpop.f32.mrb[30].mxu0 }
 0xf00   :  { %v1616_v32 = vmul.f32 %v5297_v30, %v7232_v51  ;;  %v1560_v3 = vpop.f32.mrb[31].mxu0 }
 0xf01   :  { %6652 = vrot.lane.b32.xlu1 %v6651_v24, %s6870_s1  ;;  %v1615_v55 = vmul.f32 %v1560_v3, %v7237_v52  ;;  %v8640_v24 = vld [vmem:[#allocation7_spill] sm:$0xff] }
 0xf02   :  { %6086 = vmatpush3.bf16.xpose.msk.msra.mxu0 %vm7191_vm8, %v6081_v17 }
 0xf03   :  { %6089 = vmatprep.subr.msk.bf16.mxu0 %vm7191_vm8, %v6087_v25  ;;  %v6656_v39 = vpack.i.bf16 %v1616_v32, %v1615_v55  ;;  %v6093_v58 = vpack.c.bf16 %v1616_v32, %v1615_v55  ;;  %v5300_v42 = vpop.f32.mrb[32].mxu0 }
 0xf04   :  { %v1618_v40 = vmul.f32 %v5300_v42, %v7248_v59  ;;  %v1570_v36 = vpop.f32.mrb[33].mxu0 }
 0xf05   :  { %6657 = vrot.lane.b32.xlu1 %v6656_v39, %s6870_s1  ;;  %v1617_v51 = vmul.f32 %v1570_v36, %v7255_v60  ;;  %v8635_v60 = vld [vmem:[#allocation2_spill] sm:$0xff] }
 0xf07   :  { %v6661_v33 = vpack.i.bf16 %v1618_v40, %v1617_v51  ;;  %v6099_v0 = vpack.c.bf16 %v1618_v40, %v1617_v51  ;;  %v5303_v35 = vpop.f32.mrb[34].mxu0 }
 0xf08   :  { %v1620_v52 = vmul.f32 %v5303_v35, %v7269_v5  ;;  %v1580_v63 = vpop.f32.mrb[35].mxu0  ;;  %v8636_v5 = vld [vmem:[#allocation3_spill] sm:$0xff] }
 0xf09   :  { %6662 = vrot.lane.b32.xlu1 %v6661_v33, %s6870_s1  ;;  %v1619_v57 = vmul.f32 %v1580_v63, %v7274_v6  ;;  %v8637_v6 = vld [vmem:[#allocation4_spill] sm:$0xff] }
 0xf0a   :  { %6092 = vmatpush3.bf16.xpose.msk.msra.mxu0 %vm7191_vm8, %v6087_v25 }
 0xf0b   :  { %6095 = vmatprep.subr.msk.bf16.mxu0 %vm7191_vm8, %v6093_v58  ;;  %v6666_v59 = vpack.i.bf16 %v1620_v52, %v1619_v57  ;;  %v6105_v41 = vpack.c.bf16 %v1620_v52, %v1619_v57  ;;  %v5306_v45 = vpop.f32.mrb[36].mxu0 }
 0xf0c   :  { %v1622_v44 = vmul.f32 %v5306_v45, %v8635_v60  ;;  %v1590_v48 = vpop.f32.mrb[37].mxu0 }
 0xf0d   :  { %6667 = vrot.lane.b32.xlu1 %v6666_v59, %s6870_s1  ;;  %v1621_v19 = vmul.f32 %v1590_v48, %v8636_v5 }
 0xf0f   :  { %v6671_v20 = vpack.i.bf16 %v1622_v44, %v1621_v19  ;;  %v6111_v50 = vpack.c.bf16 %v1622_v44, %v1621_v19  ;;  %v5309_v61 = vpop.f32.mrb[38].mxu0 }
 0xf10   :  { %v1624_v8 = vmul.f32 %v5309_v61, %v8637_v6  ;;  %v1600_v11 = vpop.f32.mrb[39].mxu0 }
 0xf11   :  { %v1623_v13 = vmul.f32 %v1600_v11, %v8638_v12 }
 0xf12   :  { %6098 = vmatpush3.bf16.xpose.msk.msra.mxu0 %vm7191_vm8, %v6093_v58 }
 0xf13   :  { %6101 = vmatprep.subr.msk.bf16.mxu0 %vm7191_vm8, %v6099_v0  ;;  %v6676_v14 = vpack.i.bf16 %v1624_v8, %v1623_v13  ;;  %v6117_v15 = vpack.c.bf16 %v1624_v8, %v1623_v13 }
 0xf15   :  { %6677 = vrot.lane.b32.xlu1 %v6676_v14, %s6870_s1 }
 0xf1a   :  { %6104 = vmatpush3.bf16.xpose.msk.msra.mxu0 %vm7191_vm8, %v6099_v0 }
 0xf1b   :  { %6107 = vmatprep.subr.msk.bf16.mxu0 %vm7191_vm8, %v6105_v41 }
 0xf22   :  { %6110 = vmatpush3.bf16.xpose.msk.msra.mxu0 %vm7191_vm8, %v6105_v41 }
 0xf23   :  { %6113 = vmatprep.subr.msk.bf16.mxu0 %vm7191_vm8, %v6111_v50 }
 0xf2a   :  { %6116 = vmatpush3.bf16.xpose.msk.msra.mxu0 %vm7191_vm8, %v6111_v50 }
 0xf2b   :  { %6119 = vmatprep.subr.msk.bf16.mxu0 %vm7191_vm8, %v6117_v15 }
 0xf32   :  { %6122 = vmatpush3.bf16.xpose.msk.msra.mxu0 %vm7191_vm8, %v6117_v15 }
 0xf39   :  { %5343 = vmatmul.mubr.msk.f32.vlgmr.msra.gmra.mrb[40].mxu0 %vm305_vm6, %v7623_v62 }
 0xf6f   :  { %v6648_v51 = vpop.permute.xlu1 %6647 }
 0xf70   :  { %v6650_v7 = vunpack.i.h.bf16 %v6648_v51  ;;  %v6649_v9 = vunpack.i.l.bf16 %v6648_v51  ;;  %v2059_v51 = vrot.slane %v7610_v54, %v7467_v29 }
 0xf72   :  { %v6159_v35 = vpack.c.bf16 %v6650_v7, %v6649_v9 }
0x100c   :  { %v5344_v16 = vpop.f32.mrb[40].mxu0 }
0x100d   :  { %v1743_v17 = vpop.f32.mrb[41].mxu0  ;;  %v1753_v21 = vmul.f32 0.5, %v5344_v16 }
0x100e   :  { %v1752_v18 = vmul.f32 0.5, %v1743_v17 }
0x100f   :  { %v1755_v25 = vadd.f32 %v1753_v21, %v8640_v24  ;;  %v4435_v21 = vld [vmem:[%s8591_s8 + $0x28] sm:$0xff]  ;;  %v4437_v24 = vld [vmem:[%s8591_s8 + $0x38] sm:$0xff] }
0x1010   :  { %v1754_v23 = vadd.f32 %v1752_v18, %v8639_v22  ;;  %v4434_v18 = vld [vmem:[%s8591_s8 + $0x20] sm:$0xff]  ;;  %v4436_v22 = vld [vmem:[%s8591_s8 + $0x30] sm:$0xff] }
0x1012   :  { %1756 = vmax.xlane.f32.xlu0 %v1754_v23 }
0x1016   :  { %1758 = vmax.xlane.f32.xlu0 %v1755_v25 }
0x102c   :  { %6642 = vrot.lane.b32.xlu0 %v6641_v10, %s6870_s1  ;;  %v6653_v10 = vpop.permute.xlu1 %6652 }
0x102d   :  { %v6655_v52 = vunpack.i.h.bf16 %v6653_v10  ;;  %v6654_v63 = vunpack.i.l.bf16 %v6653_v10 }
0x102f   :  { %v6163_v59 = vpack.c.bf16 %v6655_v52, %v6654_v63 }
0x1030   :  { %6672 = vrot.lane.b32.xlu0 %v6671_v20, %s6870_s1  ;;  %v6658_v57 = vpop.permute.xlu1 %6657 }
0x1031   :  { %v6660_v41 = vunpack.i.h.bf16 %v6658_v57  ;;  %v6659_v45 = vunpack.i.l.bf16 %v6658_v57 }
0x1033   :  { %v6167_v44 = vpack.c.bf16 %v6660_v41, %v6659_v45 }
0x1034   :  { %v6663_v60 = vpop.permute.xlu1 %6662 }
0x1035   :  { %v6665_v48 = vunpack.i.h.bf16 %v6663_v60  ;;  %v6664_v5 = vunpack.i.l.bf16 %v6663_v60 }
0x1037   :  { %v6171_v20 = vpack.c.bf16 %v6665_v48, %v6664_v5 }
0x1038   :  { %v6668_v19 = vpop.permute.xlu1 %6667 }
0x1039   :  { %v6670_v50 = vunpack.i.h.bf16 %v6668_v19  ;;  %v6669_v61 = vunpack.i.l.bf16 %v6668_v19  ;;  %v4440_v19 = vld [vmem:[%s8592_s9 + $0x20] sm:$0xff] }
0x103b   :  { %v6175_v8 = vpack.c.bf16 %v6670_v50, %v6669_v61  ;;  %v4442_v61 = vld [vmem:[%s8592_s9 + $0x30] sm:$0xff] }
0x103c   :  { %v6678_v13 = vpop.permute.xlu1 %6677 }
0x103d   :  { %v6680_v14 = vunpack.i.h.bf16 %v6678_v13  ;;  %v6679_v15 = vunpack.i.l.bf16 %v6678_v13 }
0x103f   :  { %v6183_v17 = vpack.c.bf16 %v6680_v14, %v6679_v15 }
0x109f   :  { %v1757_v30 = vpop.xlane.xlu0 %1756 }
0x10a0   :  { %v1760_v32 = vsub.f32 %v1754_v23, %v1757_v30  ;;  %v6187_v23 = vpack.c.bf16 %v4435_v21, %v4434_v18 }
0x10a2   :  { %v1762_v62 = vmul.f32 1.442695, %v1760_v32  ;;  %6188 = vmatprep.subr.bf16.mxu0 %v6187_v23 }
0x10a3   :  { %v1759_v3 = vpop.xlane.xlu0 %1758  ;;  %6190 = vmatpush3.bf16.msra.mxu0 %v6187_v23 }
0x10a4   :  { %6791 = vpow2.f32 %v1762_v62  ;;  %v1761_v55 = vsub.f32 %v1755_v25, %v1759_v3  ;;  %v6191_v25 = vpack.c.bf16 %v4437_v24, %v4436_v22  ;;  %v2091_v22 = vrot.slane %v7610_v54, %v7504_v4 }
0x10a6   :  { %v1764_v39 = vmul.f32 1.442695, %v1761_v55  ;;  %6192 = vmatprep.subr.bf16.mxu0 %v6191_v25 }
0x10a7   :  { %v6643_v58 = vpop.permute.xlu0 %6642  ;;  %6194 = vmatpush3.bf16.msra.mxu0 %v6191_v25  ;;  %v2097_v25 = vrot.slane %v7610_v54, %v7507_v27 }
0x10a8   :  { %6793 = vpow2.f32 %v1764_v39  ;;  %v6645_v42 = vunpack.i.h.bf16 %v6643_v58  ;;  %v6644_v40 = vunpack.i.l.bf16 %v6643_v58 }
0x10aa   :  { %v6155_v36 = vpack.c.bf16 %v6645_v42, %v6644_v40 }
0x10ab   :  { %v6673_v6 = vpop.permute.xlu0 %6672 }
0x10ac   :  { %6156 = vmatprep.subr.bf16.mxu1 %v6155_v36  ;;  %v6675_v11 = vunpack.i.h.bf16 %v6673_v6  ;;  %v6674_v12 = vunpack.i.l.bf16 %v6673_v6  ;;  %v4443_v6 = vld [vmem:[%s8592_s9 + $0x38] sm:$0xff] }
0x10ae   :  { %v7729_v33 = vpop.eup %6791  ;;  %v6179_v16 = vpack.c.bf16 %v6675_v11, %v6674_v12  ;;  %v4448_v11 = vld [vmem:[%s8593_s11 + $0x80] sm:$0xff]  ;;  %v4449_v12 = vld [vmem:[%s8593_s11 + $0x88] sm:$0xff] }
0x10af   :  { %5377 = vmatprep.mubr.f32.mxu1 %v7729_v33  ;;  %v6203_v13 = vpack.c.bf16 %v4449_v12, %v4448_v11  ;;  %v2293_v12 = vrot.slane %v7610_v54, %v7577_v56 }
0x10b2   :  { %v6794_v0 = vpop.eup %6793 }
0x10b3   :  { %5378 = vmatmul.mubr.f32.vlgmr.msra.gmra.mrb[12].mxu1 %v6794_v0 }
0x10b4   :  { %6158 = vmatpush3.bf16.msra.mxu1 %v6155_v36 }
0x10b5   :  { %6160 = vmatprep.subr.bf16.mxu1 %v6159_v35 }
0x10b8   :  { %6162 = vmatpush3.bf16.msra.mxu1 %v6159_v35 }
0x10b9   :  { %6164 = vmatprep.subr.bf16.mxu1 %v6163_v59 }
0x10bc   :  { %6166 = vmatpush3.bf16.msra.mxu1 %v6163_v59 }
0x10bd   :  { %6168 = vmatprep.subr.bf16.mxu1 %v6167_v44 }
0x10c0   :  { %6170 = vmatpush3.bf16.msra.mxu1 %v6167_v44 }
0x10c1   :  { %6172 = vmatprep.subr.bf16.mxu1 %v6171_v20 }
0x10c4   :  { %6174 = vmatpush3.bf16.msra.mxu1 %v6171_v20  ;;  %v4441_v20 = vld [vmem:[%s8592_s9 + $0x28] sm:$0xff] }
0x10c5   :  { %6176 = vmatprep.subr.bf16.mxu1 %v6175_v8  ;;  %v6195_v50 = vpack.c.bf16 %v4441_v20, %v4440_v19  ;;  %v4445_v19 = vld [vmem:[%s8594_s10 + $0x1] ss:$0 sm:$0xff] }
0x10c7   :  { %6196 = vmatprep.subr.bf16.mxu0 %v6195_v50 }
0x10c8   :  { %6178 = vmatpush3.bf16.msra.mxu1 %v6175_v8  ;;  %v6199_v8 = vpack.c.bf16 %v4443_v6, %v4442_v61 }
0x10c9   :  { %6180 = vmatprep.subr.bf16.mxu1 %v6179_v16 }
0x10cc   :  { %6182 = vmatpush3.bf16.msra.mxu1 %v6179_v16 }
0x10cd   :  { %6184 = vmatprep.subr.bf16.mxu1 %v6183_v17 }
0x10d0   :  { %6186 = vmatpush3.bf16.msra.mxu1 %v6183_v17 }
0x1186   :  { %v5379_v30 = vpop.f32.mrb[12].mxu1 }
0x1187   :  { %v1838_v32 = vadd.f32 1e-30, %v5379_v30  ;;  %v1832_v62 = vpop.f32.mrb[13].mxu1 }
0x1188   :  { %v1833_v3 = vadd.f32 1e-30, %v1832_v62 }
0x1189   :  { %6795 = vrcp.f32 %v1838_v32 }
0x118a   :  { %6797 = vrcp.f32 %v1833_v3 }
0x1193   :  { %v6796_v55 = vpop.eup %6795 }
0x1194   :  { %v6798_v39 = vpop.eup %6797  ;;  %v1844_v42 = vmul.f32 %v6796_v55, %v6794_v0  ;;  %v4450_v55 = vld [vmem:[%s8593_s11 + $0x90] sm:$0xff] }
0x1195   :  { %v1843_v58 = vmul.f32 %v6798_v39, %v7729_v33  ;;  %v4451_v39 = vld [vmem:[%s8593_s11 + $0x98] sm:$0xff] }
0x1197   :  { %5412 = vmatprep.mubr.f32.mxu1 %v1843_v58 }
0x1198   :  { %5413 = vmatmul.mubr.f32.vlgmr.msra.gmra.mrb[14].mxu1 %v1844_v42 }
0x126b   :  { %v5414_v40 = vpop.f32.mrb[14].mxu1 }
0x126c   :  { %v1959_v36 = vpop.f32.mrb[15].mxu1 }
0x126d   :  { %5423 = vmatprep.mubr.msk.f32.mxu0 %vm305_vm6, %v1959_v36  ;;  %v4452_v36 = vld [vmem:[%s8593_s11 + $0xa0] sm:$0xff] }
0x126e   :  { %5424 = vmatmul.mubr.msk.f32.vlgmr.msra.gmra.mrb[42].mxu0 %vm305_vm6, %v5414_v40  ;;  %v6207_v40 = vpack.c.bf16 %v4451_v39, %v4450_v55  ;;  %v4465_v55 = vld [vmem:[%s8584_s6 + $0x40] sm:$0xff]  ;;  %v4466_v39 = vld [vmem:[%s8584_s6 + $0x48] sm:$0xff] }
0x126f   :  { %6198 = vmatpush3.bf16.msra.mxu0 %v6195_v50 }
0x1270   :  { %6200 = vmatprep.subr.bf16.mxu0 %v6199_v8 }
0x1273   :  { %6202 = vmatpush3.bf16.msra.mxu0 %v6199_v8 }
0x1274   :  { %6204 = vmatprep.subr.bf16.mxu0 %v6203_v13 }
0x1341   :  { %v5425_v7 = vpop.f32.mrb[42].mxu0 }
0x1342   :  { %v2055_v9 = vadd.f32 %v5425_v7, %v7583_v2  ;;  %v2045_v10 = vpop.f32.mrb[43].mxu0 }
0x1343   :  { %v2054_v35 = vadd.f32 %v2045_v10, %v7585_v38  ;;  %v4455_v10 = vld [vmem:[%s8593_s11 + $0xb8] sm:$0xff] }
0x1344   :  { %v7751_v52 = vadd.f32 %v2059_v51, %v2055_v9  ;;  %v4454_v9 = vld [vmem:[%s8593_s11 + $0xb0] sm:$0xff] }
0x1345   :  { %v7753_v33 = vadd.f32 %v2059_v51, %v2054_v35  ;;  %v4453_v51 = vld [vmem:[%s8593_s11 + $0xa8] sm:$0xff]  ;;  %v6215_v35 = vpack.c.bf16 %v4455_v10, %v4454_v9 }
0x1346   :  { %v2065_v0 = vsel %vm305_vm6, %v7751_v52, 0.0  ;;  %v6211_v7 = vpack.c.bf16 %v4453_v51, %v4452_v36 }
0x1347   :  { %2066 = vadd.xlane.f32.xlu1 %v2065_v0  ;;  %v2062_v63 = vsel %vm305_vm6, %v7753_v33, 0.0  ;;  %v4456_v0 = vld [vmem:[%s8593_s11 + $0xc0] sm:$0xff] }
0x1348   :  { %2063 = vadd.xlane.f32.xlu0 %v2062_v63  ;;  %v4457_v63 = vld [vmem:[%s8593_s11 + $0xc8] sm:$0xff] }
0x13d4   :  { %v2067_v57 = vpop.xlane.xlu1 %2066 }
0x13d5   :  { %v2069_v59 = vmul.f32 0.03125, %v2067_v57  ;;  %v2064_v41 = vpop.xlane.xlu0 %2063  ;;  %v6219_v57 = vpack.c.bf16 %v4457_v63, %v4456_v0  ;;  %v7879_v63 = vld [vmem:[%s8585_s12 + $0x10] sm:$0x3f] }
0x13d6   :  { %v2068_v45 = vmul.f32 0.03125, %v2064_v41  ;;  %v4459_v41 = vld [vmem:[%s8593_s11 + $0xd8] sm:$0xff] }
0x13d7   :  { %v2071_v2 = vsub.f32 %v7751_v52, %v2069_v59  ;;  %v4458_v59 = vld [vmem:[%s8593_s11 + $0xd0] sm:$0xff] }
0x13d8   :  { %v2070_v38 = vsub.f32 %v7753_v33, %v2068_v45  ;;  %v6223_v45 = vpack.c.bf16 %v4459_v41, %v4458_v59 }
0x13d9   :  { %v2073_v48 = vmul.f32 %v2071_v2, %v2071_v2 }
0x13da   :  { %v2072_v60 = vmul.f32 %v2070_v38, %v2070_v38 }
0x13db   :  { %v2077_v5 = vsel %vm305_vm6, %v2073_v48, 0.0  ;;  %v4463_v48 = vld [vmem:[%s8593_s11 + $0xf8] sm:$0xff] }
0x13dc   :  { %v2074_v44 = vsel %vm305_vm6, %v2072_v60, 0.0 }
0x13dd   :  { %2075 = vadd.xlane.f32.xlu0 %v2074_v44  ;;  %v4462_v44 = vld [vmem:[%s8593_s11 + $0xf0] sm:$0xff] }
0x13e1   :  { %2078 = vadd.xlane.f32.xlu0 %v2077_v5  ;;  %v6231_v5 = vpack.c.bf16 %v4463_v48, %v4462_v44 }
0x146a   :  { %v2076_v14 = vpop.xlane.xlu0 %2075 }
0x146b   :  { %v2080_v15 = vmul.f32 0.03125, %v2076_v14 }
0x146d   :  { %v2082_v16 = vadd.f32 1e-05, %v2080_v15 }
0x146e   :  { %v2079_v17 = vpop.xlane.xlu0 %2078 }
0x146f   :  { %6799 = vrsqrt.f32 %v2082_v16  ;;  %v2081_v18 = vmul.f32 0.03125, %v2079_v17 }
0x1471   :  { %v2083_v21 = vadd.f32 1e-05, %v2081_v18 }
0x1473   :  { %6801 = vrsqrt.f32 %v2083_v21 }
0x1479   :  { %v6800_v23 = vpop.eup %6799 }
0x147a   :  { %v2086_v24 = vmul.f32 %v6800_v23, %v2070_v38  ;;  %v4461_v38 = vld [vmem:[%s8593_s11 + $0xe8] sm:$0xff] }
0x147c   :  { %v2092_v30 = vmul.f32 %v2091_v22, %v2086_v24 }
0x147d   :  { %v6802_v32 = vpop.eup %6801 }
0x147e   :  { %v2087_v62 = vmul.f32 %v6802_v32, %v2071_v2  ;;  %v2098_v3 = vadd.f32 %v2097_v25, %v2092_v30  ;;  %v4460_v2 = vld [vmem:[%s8593_s11 + $0xe0] sm:$0xff] }
0x147f   :  { %v6227_v60 = vpack.c.bf16 %v4461_v38, %v4460_v2  ;;  %v2333_v38 = vrot.slane %v7879_v63, %v7040_v49 }
0x1480   :  { %v2093_v58 = vmul.f32 %v2091_v22, %v2087_v62  ;;  %5434 = vmatprep.mubr.msk.f32.mxu0 %vm305_vm6, %v2098_v3 }
0x1482   :  { %v2099_v42 = vadd.f32 %v2097_v25, %v2093_v58  ;;  %v6235_v58 = vpack.c.bf16 %v4466_v39, %v4465_v55  ;;  %v7995_v55 = vld [vmem:[%s8587_s16 + $0x70] sm:$0xff]  ;;  %v8002_v39 = vld [vmem:[%s8587_s16 + $0x78] sm:$0xff] }
0x1484   :  { %5435 = vmatmul.mubr.msk.f32.vlgmr.msra.gmra.mrb[44].mxu0 %vm305_vm6, %v2099_v42  ;;  %v4467_v42 = vld [vmem:[%s8584_s6 + $0x50] sm:$0xff]  ;;  %6236 = vmatprep.subr.bf16.mxu1 %v6235_v58 }
0x1485   :  { %6206 = vmatpush3.bf16.msra.mxu0 %v6203_v13  ;;  %6238 = vmatpush3.bf16.msra.mxu1 %v6235_v58 }
0x1486   :  { %6208 = vmatprep.subr.bf16.mxu0 %v6207_v40 }
0x1489   :  { %6210 = vmatpush3.bf16.msra.mxu0 %v6207_v40  ;;  %v4468_v40 = vld [vmem:[%s8584_s6 + $0x58] sm:$0xff] }
0x148a   :  { %6212 = vmatprep.subr.bf16.mxu0 %v6211_v7  ;;  %v6239_v36 = vpack.c.bf16 %v4468_v40, %v4467_v42  ;;  %v8010_v42 = vld [vmem:[%s8588_s17 + $0x8] sm:$0xff] }
0x148c   :  { %6240 = vmatprep.subr.bf16.mxu1 %v6239_v36 }
0x148d   :  { %6214 = vmatpush3.bf16.msra.mxu0 %v6211_v7  ;;  %6242 = vmatpush3.bf16.msra.mxu1 %v6239_v36 }
0x148e   :  { %6216 = vmatprep.subr.bf16.mxu0 %v6215_v35 }
0x1491   :  { %6218 = vmatpush3.bf16.msra.mxu0 %v6215_v35 }
0x1492   :  { %6220 = vmatprep.subr.bf16.mxu0 %v6219_v57 }
0x1495   :  { %6222 = vmatpush3.bf16.msra.mxu0 %v6219_v57  ;;  %v2327_v57 = vrot.slane %v7879_v63, %v7032_v47 }
0x1496   :  { %6224 = vmatprep.subr.bf16.mxu0 %v6223_v45 }
0x1499   :  { %6226 = vmatpush3.bf16.msra.mxu0 %v6223_v45 }
0x149a   :  { %6228 = vmatprep.subr.bf16.mxu0 %v6227_v60 }
0x149d   :  { %6230 = vmatpush3.bf16.msra.mxu0 %v6227_v60 }
0x149e   :  { %6232 = vmatprep.subr.bf16.mxu0 %v6231_v5 }
0x14a1   :  { %6234 = vmatpush3.bf16.msra.mxu0 %v6231_v5 }
0x14a2   :  { %6296 = vmatprep.subr.bf16.mxu0 %v7349_v46 }
0x1557   :  { %v5436_v20 = vpop.f32.mrb[44].mxu0 }
0x1558   :  { %v2191_v50 = vadd.f32 %v5436_v20, %v4445_v19  ;;  %v2185_v61 = vpop.f32.mrb[45].mxu0  ;;  %v4470_v20 = vld [vmem:[%s8586_s7 + $0x2] ss:$0 sm:$0xff] }
0x1559   :  { %v2186_v6 = vadd.f32 %v4445_v19, %v2185_v61  ;;  %v7890_v19 = vld [vmem:[%s8587_s16] sm:$0xff] }
0x155a   :  { %v2195_v11 = vmax.f32 %v2191_v50, 0.0 }
0x155b   :  { %v2194_v8 = vmax.f32 %v2186_v6, 0.0 }
0x155d   :  { %5469 = vmatprep.mubr.f32.mxu0 %v2194_v8 }
0x155e   :  { %5470 = vmatmul.mubr.f32.vlgmr.msra.gmra.mrb[46].mxu0 %v2195_v11 }
0x155f   :  { %6298 = vmatpush3.bf16.msra.mxu0 %v7349_v46 }
0x1560   :  { %6300 = vmatprep.subr.bf16.mxu0 %v7354_v1 }
0x1563   :  { %6302 = vmatpush3.bf16.msra.mxu0 %v7354_v1 }
0x1564   :  { %6304 = vmatprep.subr.bf16.mxu0 %v7365_v34 }
0x1567   :  { %6306 = vmatpush3.bf16.msra.mxu0 %v7365_v34 }
0x1568   :  { %6308 = vmatprep.subr.bf16.mxu0 %v7375_v37 }
0x156b   :  { %6310 = vmatpush3.bf16.msra.mxu0 %v7375_v37 }
0x156c   :  { %6312 = vmatprep.subr.bf16.mxu0 %v7385_v28 }
0x156f   :  { %6314 = vmatpush3.bf16.msra.mxu0 %v7385_v28 }
0x1570   :  { %6316 = vmatprep.subr.bf16.mxu0 %v7408_v43 }
0x1573   :  { %6318 = vmatpush3.bf16.msra.mxu0 %v7408_v43 }
0x1574   :  { %6320 = vmatprep.subr.bf16.mxu0 %v7418_v26 }
0x1577   :  { %6322 = vmatpush3.bf16.msra.mxu0 %v7418_v26 }
0x1578   :  { %6324 = vmatprep.subr.bf16.mxu0 %v7432_v53 }
0x157b   :  { %6326 = vmatpush3.bf16.msra.mxu0 %v7432_v53 }
0x1631   :  { %v5471_v13 = vpop.f32.mrb[46].mxu0 }
0x1632   :  { %v2289_v14 = vadd.f32 %v5471_v13, %v7751_v52  ;;  %v2279_v15 = vpop.f32.mrb[47].mxu0 }
0x1633   :  { %v2288_v16 = vadd.f32 %v2279_v15, %v7753_v33 }
0x1634   :  { %v7852_v17 = vadd.f32 %v2293_v12, %v2289_v14 }
0x1635   :  { %v7854_v18 = vadd.f32 %v2293_v12, %v2288_v16  ;;  %v7904_v16 = vld [vmem:[%s8587_s16 + $0x8] sm:$0xff] }
0x1636   :  { %v2301_v21 = vsel %vm305_vm6, %v7852_v17, 0.0 }
0x1637   :  { %2302 = vadd.xlane.f32.xlu1 %v2301_v21  ;;  %v2298_v22 = vsel %vm305_vm6, %v7854_v18, 0.0  ;;  %v7911_v21 = vld [vmem:[%s8587_s16 + $0x10] sm:$0xff] }
0x1638   :  { %2299 = vadd.xlane.f32.xlu0 %v2298_v22  ;;  %v7918_v22 = vld [vmem:[%s8587_s16 + $0x18] sm:$0xff] }
0x16c4   :  { %v2303_v23 = vpop.xlane.xlu1 %2302 }
0x16c5   :  { %v2305_v54 = vmul.f32 0.03125, %v2303_v23  ;;  %v2300_v24 = vpop.xlane.xlu0 %2299  ;;  %v7925_v23 = vld [vmem:[%s8587_s16 + $0x20] sm:$0xff] }
0x16c6   :  { %v2304_v25 = vmul.f32 0.03125, %v2300_v24  ;;  %v7939_v24 = vld [vmem:[%s8587_s16 + $0x30] sm:$0xff] }
0x16c7   :  { %v2307_v52 = vsub.f32 %v7852_v17, %v2305_v54  ;;  %v7932_v54 = vld [vmem:[%s8587_s16 + $0x28] sm:$0xff] }
0x16c8   :  { %v2306_v33 = vsub.f32 %v7854_v18, %v2304_v25  ;;  %v7946_v25 = vld [vmem:[%s8587_s16 + $0x38] sm:$0xff] }
0x16c9   :  { %v2309_v30 = vmul.f32 %v2307_v52, %v2307_v52 }
0x16ca   :  { %v2308_v32 = vmul.f32 %v2306_v33, %v2306_v33 }
0x16cb   :  { %v2313_v62 = vsel %vm305_vm6, %v2309_v30, 0.0  ;;  %v7967_v30 = vld [vmem:[%s8587_s16 + $0x50] sm:$0xff] }
0x16cc   :  { %2314 = vadd.xlane.f32.xlu1 %v2313_v62  ;;  %v2310_v3 = vsel %vm305_vm6, %v2308_v32, 0.0  ;;  %v7974_v32 = vld [vmem:[%s8587_s16 + $0x58] sm:$0xff]  ;;  %v7981_v62 = vld [vmem:[%s8587_s16 + $0x60] sm:$0xff] }
0x16cd   :  { %2311 = vadd.xlane.f32.xlu0 %v2310_v3  ;;  %v7988_v3 = vld [vmem:[%s8587_s16 + $0x68] sm:$0xff] }
0x1759   :  { %v2315_v51 = vpop.xlane.xlu1 %2314 }
0x175a   :  { %v2317_v7 = vmul.f32 0.03125, %v2315_v51  ;;  %v2312_v9 = vpop.xlane.xlu0 %2311  ;;  %v8018_v51 = vld [vmem:[%s8588_s17] sm:$0xff] }
0x175b   :  { %v2316_v10 = vmul.f32 0.03125, %v2312_v9 }
0x175c   :  { %v2319_v35 = vadd.f32 1e-05, %v2317_v7 }
0x175d   :  { %v2318_v0 = vadd.f32 1e-05, %v2316_v10 }
0x175e   :  { %6803 = vrsqrt.f32 %v2319_v35 }
0x175f   :  { %6805 = vrsqrt.f32 %v2318_v0  ;;  %v8030_v0 = vld [vmem:[%s8588_s17 + $0x18] sm:$0xff] }
0x1768   :  { %v6804_v59 = vpop.eup %6803 }
0x1769   :  { %v6806_v41 = vpop.eup %6805  ;;  %v2323_v45 = vmul.f32 %v6804_v59, %v2307_v52  ;;  %v7953_v52 = vld [vmem:[%s8587_s16 + $0x40] sm:$0xff] }
0x176a   :  { %v2322_v2 = vmul.f32 %v6806_v41, %v2306_v33  ;;  %v7960_v33 = vld [vmem:[%s8587_s16 + $0x48] sm:$0xff]  ;;  %v8038_v41 = vld [vmem:[%s8588_s17 + $0x10] sm:$0xff] }
0x176b   :  { %v2329_v60 = vmul.f32 %v2327_v57, %v2323_v45 }
0x176c   :  { %v2328_v44 = vmul.f32 %v2327_v57, %v2322_v2 }
0x176d   :  { %v2335_v5 = vadd.f32 %v2333_v38, %v2329_v60 }
0x176e   :  { %v2334_v48 = vadd.f32 %v2333_v38, %v2328_v44  ;;  %v8046_v44 = vld [vmem:[%s8588_s17 + $0x28] sm:$0xff] }
0x1770   :  { %5480 = vmatprep.mubr.msk.f32.mxu1 %vm305_vm6, %v2334_v48 }
0x1771   :  { %5481 = vmatmul.mubr.msk.f32.vlgmr.msra.gmra.mrb[16].mxu1 %vm305_vm6, %v2335_v5 }
0x1772   :  { %5487 = vmatprep.mubr.msk.f32.mxu1 %vm445_vm7, %v7890_v19 }
0x1844   :  { %v5482_v50 = vpop.f32.mrb[16].mxu1 }
0x1845   :  { %v7897_v61 = vadd.f32 %v5482_v50, %v4470_v20  ;;  %v2421_v6 = vpop.f32.mrb[17].mxu1 }
0x1846   :  { %v2422_v8 = vadd.f32 %v4470_v20, %v2421_v6  ;;  %v8057_v20 = vld [vmem:[%s8588_s17 + $0x20] sm:$0xff] }
0x1848   :  { %v6681_v11 = vpack.i.bf16 %v7897_v61, %v2422_v8 }
0x184a   :  { %6682 = vrot.lane.b32.xlu0 %v6681_v11, %s6870_s1 }
0x18bc   :  { %v6683_v12 = vpop.permute.xlu0 %6682 }
0x18bd   :  { %v6685_v13 = vunpack.i.h.bf16 %v6683_v12  ;;  %v6684_v14 = vunpack.i.l.bf16 %v6683_v12  ;;  %v8069_v12 = vld [vmem:[%s8588_s17 + $0x38] sm:$0xff] }
0x18bf   :  { %v6243_v15 = vpack.c.bf16 %v6685_v13, %v6684_v14 }
0x18c1   :  { %6244 = vmatprep.subr.bf16.mxu1 %v6243_v15 }
0x18c2   :  { %6246 = vmatpush3.bf16.msra.mxu1 %v6243_v15  ;;  %v8075_v15 = vld [vmem:[%s8588_s17 + $0x30] sm:$0xff] }
0x18c5   :  { %5488 = vmatmul.mubr.msk.f32.vlgmr.msra.gmra.mrb[18].mxu1 %vm445_vm7, %v7904_v16 }
0x18c6   :  { %5490 = vmatprep.mubr.msk.f32.mxu1 %vm445_vm7, %v7911_v21 }
0x18c9   :  { %5491 = vmatmul.mubr.msk.f32.gmra.mrb[20].mxu1 %vm445_vm7, %v7918_v22 }
0x18ca   :  { %5493 = vmatprep.mubr.msk.f32.mxu1 %vm445_vm7, %v7925_v23 }
0x18cd   :  { %5494 = vmatmul.mubr.msk.f32.gmra.mrb[22].mxu1 %vm445_vm7, %v7932_v54 }
0x18ce   :  { %5496 = vmatprep.mubr.msk.f32.mxu1 %vm445_vm7, %v7939_v24 }
0x18d1   :  { %5497 = vmatmul.mubr.msk.f32.gmra.mrb[24].mxu1 %vm445_vm7, %v7946_v25 }
0x18d2   :  { %5499 = vmatprep.mubr.msk.f32.mxu1 %vm445_vm7, %v7953_v52 }
0x18d5   :  { %5500 = vmatmul.mubr.msk.f32.gmra.mrb[26].mxu1 %vm445_vm7, %v7960_v33 }
0x18d6   :  { %5502 = vmatprep.mubr.msk.f32.mxu1 %vm445_vm7, %v7967_v30 }
0x18d9   :  { %5503 = vmatmul.mubr.msk.f32.gmra.mrb[28].mxu1 %vm445_vm7, %v7974_v32 }
0x18da   :  { %5505 = vmatprep.mubr.msk.f32.mxu1 %vm445_vm7, %v7981_v62 }
0x18dd   :  { %5506 = vmatmul.mubr.msk.f32.gmra.mrb[30].mxu1 %vm445_vm7, %v7988_v3 }
0x18de   :  { %5508 = vmatprep.mubr.msk.f32.mxu1 %vm445_vm7, %v7995_v55 }
0x18e1   :  { %5509 = vmatmul.mubr.msk.f32.gmra.mrb[32].mxu1 %vm445_vm7, %v8002_v39 }
0x18e2   :  { %5543 = vmatprep.mubr.msk.f32.mxu1 %vm305_vm6, %v2422_v8 }
0x1998   :  { %v5489_v58 = vpop.f32.mrb[18].mxu1 }
0x1999   :  { %v8013_v40 = vmul.f32 %v8010_v42, %v5489_v58  ;;  %v2504_v36 = vpop.f32.mrb[19].mxu1 }
0x199a   :  { %v8021_v7 = vmul.f32 %v8018_v51, %v2504_v36 }
0x199c   :  { %v6247_v10 = vpack.c.bf16 %v8013_v40, %v8021_v7  ;;  %v5492_v35 = vpop.f32.mrb[20].mxu1 }
0x199d   :  { %v2586_v57 = vmul.f32 %v8030_v0, %v5492_v35  ;;  %v2514_v59 = vpop.f32.mrb[21].mxu1 }
0x199e   :  { %6249 = vmatprep.subr.msk.bf16.mxu1 %vm7191_vm8, %v6247_v10  ;;  %v2585_v45 = vmul.f32 %v8038_v41, %v2514_v59 }
0x199f   :  { %6252 = vmatpush3.bf16.xpose.msk.msra.mxu1 %vm7191_vm8, %v6247_v10 }
0x19a0   :  { %v6691_v2 = vpack.i.bf16 %v2586_v57, %v2585_v45  ;;  %v6253_v38 = vpack.c.bf16 %v2586_v57, %v2585_v45  ;;  %v5495_v60 = vpop.f32.mrb[22].mxu1  ;;  %v8085_v57 = vld [vmem:[%s8588_s17 + $0x48] sm:$0xff] }
0x19a1   :  { %v8049_v48 = vmul.f32 %v8046_v44, %v5495_v60  ;;  %v2524_v5 = vpop.f32.mrb[23].mxu1 }
0x19a2   :  { %6692 = vrot.lane.b32.xlu0 %v6691_v2, %s6870_s1  ;;  %6255 = vmatprep.subr.msk.bf16.mxu1 %vm7191_vm8, %v6253_v38  ;;  %v8060_v50 = vmul.f32 %v8057_v20, %v2524_v5  ;;  %v8092_v2 = vld [vmem:[%s8588_s17 + $0x40] sm:$0xff] }
0x19a3   :  { %8641 = vst [vmem:[#allocation2_spill] sm:$0xff] %v8092_v2 }
0x19a4   :  { %v6259_v8 = vpack.c.bf16 %v8049_v48, %v8060_v50  ;;  %v5498_v11 = vpop.f32.mrb[24].mxu1 }
0x19a5   :  { %v2590_v13 = vmul.f32 %v8069_v12, %v5498_v11  ;;  %v2534_v14 = vpop.f32.mrb[25].mxu1 }
0x19a6   :  { %v2589_v58 = vmul.f32 %v8075_v15, %v2534_v14 }
0x19a7   :  { %6258 = vmatpush3.bf16.xpose.msk.msra.mxu1 %vm7191_vm8, %v6253_v38 }
0x19a8   :  { %6261 = vmatprep.subr.msk.bf16.mxu1 %vm7191_vm8, %v6259_v8  ;;  %v6701_v36 = vpack.i.bf16 %v2590_v13, %v2589_v58  ;;  %v6265_v10 = vpack.c.bf16 %v2590_v13, %v2589_v58  ;;  %v5501_v35 = vpop.f32.mrb[26].mxu1  ;;  %v8098_v13 = vld [vmem:[%s8588_s17 + $0x58] sm:$0xff] }
0x19a9   :  { %v2592_v59 = vmul.f32 %v8085_v57, %v5501_v35  ;;  %v2544_v45 = vpop.f32.mrb[27].mxu1  ;;  %8642 = vst [vmem:[#allocation3_spill] sm:$0xff] %v8098_v13 }
0x19aa   :  { %6702 = vrot.lane.b32.xlu0 %v6701_v36, %s6870_s1  ;;  %v2591_v38 = vmul.f32 %v8092_v2, %v2544_v45  ;;  %v8104_v36 = vld [vmem:[%s8588_s17 + $0x50] sm:$0xff] }
0x19ab   :  { %8643 = vst [vmem:[#allocation4_spill] sm:$0xff] %v8104_v36 }
0x19ac   :  { %v6706_v60 = vpack.i.bf16 %v2592_v59, %v2591_v38  ;;  %v6271_v5 = vpack.c.bf16 %v2592_v59, %v2591_v38  ;;  %v5504_v11 = vpop.f32.mrb[28].mxu1 }
0x19ad   :  { %v2594_v14 = vmul.f32 %v8098_v13, %v5504_v11  ;;  %v2554_v58 = vpop.f32.mrb[29].mxu1  ;;  %v8114_v11 = vld [vmem:[%s8588_s17 + $0x68] sm:$0xff]  ;;  %v8127_v13 = vld [vmem:[%s8588_s17 + $0x78] sm:$0xff] }
0x19ae   :  { %v2593_v35 = vmul.f32 %v8104_v36, %v2554_v58  ;;  %8644 = vst [vmem:[#allocation5_spill] sm:$0xff] %v8114_v11  ;;  %8646 = vst [vmem:[#allocation7_spill] sm:$0xff] %v8127_v13 }
0x19af   :  { %6264 = vmatpush3.bf16.xpose.msk.msra.mxu1 %vm7191_vm8, %v6259_v8  ;;  %v8121_v8 = vld [vmem:[%s8588_s17 + $0x60] sm:$0xff] }
0x19b0   :  { %6267 = vmatprep.subr.msk.bf16.mxu1 %vm7191_vm8, %v6265_v10  ;;  %v6711_v59 = vpack.i.bf16 %v2594_v14, %v2593_v35  ;;  %v6277_v45 = vpack.c.bf16 %v2594_v14, %v2593_v35  ;;  %v5507_v38 = vpop.f32.mrb[30].mxu1  ;;  %8645 = vst [vmem:[#allocation6_spill] sm:$0xff] %v8121_v8 }
0x19b1   :  { %v2596_v6 = vmul.f32 %v8114_v11, %v5507_v38  ;;  %v2564_v9 = vpop.f32.mrb[31].mxu1 }
0x19b2   :  { %6712 = vrot.lane.b32.xlu0 %v6711_v59, %s6870_s1  ;;  %v2595_v58 = vmul.f32 %v8121_v8, %v2564_v9  ;;  %v8133_v59 = vld [vmem:[%s8588_s17 + $0x70] sm:$0xff] }
0x19b3   :  { %8647 = vst [vmem:[#allocation8_spill] sm:$0xff] %v8133_v59 }
0x19b4   :  { %v6716_v36 = vpack.i.bf16 %v2596_v6, %v2595_v58  ;;  %v6283_v14 = vpack.c.bf16 %v2596_v6, %v2595_v58  ;;  %v5510_v35 = vpop.f32.mrb[32].mxu1 }
0x19b5   :  { %v2598_v38 = vmul.f32 %v8127_v13, %v5510_v35  ;;  %v2574_v11 = vpop.f32.mrb[33].mxu1 }
0x19b6   :  { %v2597_v2 = vmul.f32 %v8133_v59, %v2574_v11 }
0x19b7   :  { %6270 = vmatpush3.bf16.xpose.msk.msra.mxu1 %vm7191_vm8, %v6265_v10 }
0x19b8   :  { %6273 = vmatprep.subr.msk.bf16.mxu1 %vm7191_vm8, %v6271_v5  ;;  %v6721_v9 = vpack.i.bf16 %v2598_v38, %v2597_v2  ;;  %v6289_v6 = vpack.c.bf16 %v2598_v38, %v2597_v2  ;;  %v8651_v38 = vpack.i.bf16 %v8049_v48, %v8060_v50 }
0x19ba   :  { %6722 = vrot.lane.b32.xlu0 %v6721_v9, %s6870_s1 }
0x19bf   :  { %6276 = vmatpush3.bf16.xpose.msk.msra.mxu1 %vm7191_vm8, %v6271_v5 }
0x19c0   :  { %6279 = vmatprep.subr.msk.bf16.mxu1 %vm7191_vm8, %v6277_v45 }
0x19c7   :  { %6282 = vmatpush3.bf16.xpose.msk.msra.mxu1 %vm7191_vm8, %v6277_v45  ;;  %v8160_v45 = vld [vmem:[%s8590_s15] sm:$0xff] }
0x19c8   :  { %6285 = vmatprep.subr.msk.bf16.mxu1 %vm7191_vm8, %v6283_v14  ;;  %8648 = vst [vmem:[#allocation9_spill] sm:$0xff] %v8160_v45 }
0x19cf   :  { %6288 = vmatpush3.bf16.xpose.msk.msra.mxu1 %vm7191_vm8, %v6283_v14  ;;  %v8166_v14 = vld [vmem:[%s8590_s15 + $0x8] sm:$0xff] }
0x19d0   :  { %6291 = vmatprep.subr.msk.bf16.mxu1 %vm7191_vm8, %v6289_v6  ;;  %8649 = vst [vmem:[#allocation10_spill] sm:$0xff] %v8166_v14 }
0x19d7   :  { %6294 = vmatpush3.bf16.xpose.msk.msra.mxu1 %vm7191_vm8, %v6289_v6 }
0x19de   :  { %5544 = vmatmul.mubr.msk.f32.vlgmr.msra.gmra.mrb[34].mxu1 %vm305_vm6, %v7897_v61  ;;  %v8650_v61 = vpack.i.bf16 %v8013_v40, %v8021_v7 }
0x1ab1   :  { %v5545_v10 = vpop.f32.mrb[34].mxu1 }
0x1ab2   :  { %v2717_v2 = vpop.f32.mrb[35].mxu1  ;;  %v2727_v11 = vmul.f32 0.5, %v5545_v10 }
0x1ab3   :  { %v2726_v5 = vmul.f32 0.5, %v2717_v2 }
0x1ab4   :  { %v2729_v35 = vadd.f32 %v8166_v14, %v2727_v11 }
0x1ab5   :  { %v2728_v58 = vadd.f32 %v8160_v45, %v2726_v5  ;;  %v6693_v45 = vpop.permute.xlu0 %6692 }
0x1ab6   :  { %v6695_v50 = vunpack.i.h.bf16 %v6693_v45 }
0x1ab7   :  { %2730 = vmax.xlane.f32.xlu1 %v2728_v58 }
0x1abb   :  { %2732 = vmax.xlane.f32.xlu1 %v2729_v35 }
0x1acc   :  { %6687 = vrot.lane.b32.xlu1 %v8650_v61, %s6870_s1 }
0x1ad0   :  { %6697 = vrot.lane.b32.xlu1 %v8651_v38, %s6870_s1 }
0x1ad4   :  { %6707 = vrot.lane.b32.xlu1 %v6706_v60, %s6870_s1  ;;  %v6694_v60 = vunpack.i.l.bf16 %v6693_v45 }
0x1ad6   :  { %v6331_v38 = vpack.c.bf16 %v6695_v50, %v6694_v60 }
0x1ad8   :  { %6717 = vrot.lane.b32.xlu1 %v6716_v36, %s6870_s1 }
0x1b44   :  { %v2731_v9 = vpop.xlane.xlu1 %2730 }
0x1b45   :  { %v2734_v6 = vsub.f32 %v2728_v58, %v2731_v9 }
0x1b47   :  { %v2736_v10 = vmul.f32 1.442695, %v2734_v6 }
0x1b48   :  { %v2733_v2 = vpop.xlane.xlu1 %2732 }
0x1b49   :  { %6807 = vpow2.f32 %v2736_v10  ;;  %v2735_v5 = vsub.f32 %v2729_v35, %v2733_v2  ;;  %v6703_v35 = vpop.permute.xlu0 %6702 }
0x1b4a   :  { %v6705_v10 = vunpack.i.h.bf16 %v6703_v35 }
0x1b4b   :  { %v2738_v11 = vmul.f32 1.442695, %v2735_v5 }
0x1b4c   :  { %v6688_v14 = vpop.permute.xlu1 %6687 }
0x1b4d   :  { %6809 = vpow2.f32 %v2738_v11  ;;  %v6690_v40 = vunpack.i.h.bf16 %v6688_v14  ;;  %v6689_v7 = vunpack.i.l.bf16 %v6688_v14  ;;  %v6704_v14 = vunpack.i.l.bf16 %v6703_v35 }
0x1b4f   :  { %v6327_v61 = vpack.c.bf16 %v6690_v40, %v6689_v7  ;;  %v6339_v11 = vpack.c.bf16 %v6705_v10, %v6704_v14  ;;  %v6713_v7 = vpop.permute.xlu0 %6712  ;;  %v4507_v14 = vld [vmem:[%s8591_s8 + $0x40] sm:$0xff] }
0x1b50   :  { %v6698_v36 = vpop.permute.xlu1 %6697  ;;  %v6715_v59 = vunpack.i.h.bf16 %v6713_v7  ;;  %v6714_v50 = vunpack.i.l.bf16 %v6713_v7 }
0x1b51   :  { %6328 = vmatprep.subr.bf16.mxu0 %v6327_v61  ;;  %v6700_v9 = vunpack.i.h.bf16 %v6698_v36  ;;  %v6699_v6 = vunpack.i.l.bf16 %v6698_v36 }
0x1b53   :  { %v8179_v48 = vpop.eup %6807  ;;  %v6335_v2 = vpack.c.bf16 %v6700_v9, %v6699_v6  ;;  %v6723_v35 = vpop.permute.xlu0 %6722 }
0x1b54   :  { %5578 = vmatprep.mubr.f32.mxu0 %v8179_v48  ;;  %v6708_v5 = vpop.permute.xlu1 %6707  ;;  %v6724_v9 = vunpack.i.l.bf16 %v6723_v35 }
0x1b55   :  { %v6710_v40 = vunpack.i.h.bf16 %v6708_v5  ;;  %v6709_v45 = vunpack.i.l.bf16 %v6708_v5 }
0x1b57   :  { %v6810_v58 = vpop.eup %6809  ;;  %v6343_v60 = vpack.c.bf16 %v6710_v40, %v6709_v45 }
0x1b58   :  { %5579 = vmatmul.mubr.f32.vlgmr.msra.gmra.mrb[48].mxu0 %v6810_v58  ;;  %v6718_v36 = vpop.permute.xlu1 %6717 }
0x1b59   :  { %6330 = vmatpush3.bf16.msra.mxu0 %v6327_v61  ;;  %v6347_v61 = vpack.c.bf16 %v6715_v59, %v6714_v50  ;;  %v6720_v13 = vunpack.i.h.bf16 %v6718_v36  ;;  %v6719_v8 = vunpack.i.l.bf16 %v6718_v36  ;;  %v4508_v59 = vld [vmem:[%s8591_s8 + $0x48] sm:$0xff] }
0x1b5a   :  { %6332 = vmatprep.subr.bf16.mxu0 %v6331_v38  ;;  %v6359_v5 = vpack.c.bf16 %v4508_v59, %v4507_v14 }
0x1b5b   :  { %v6351_v6 = vpack.c.bf16 %v6720_v13, %v6719_v8  ;;  %v4510_v13 = vld [vmem:[%s8591_s8 + $0x58] sm:$0xff] }
0x1b5c   :  { %6360 = vmatprep.subr.bf16.mxu1 %v6359_v5 }
0x1b5d   :  { %6334 = vmatpush3.bf16.msra.mxu0 %v6331_v38  ;;  %v6725_v38 = vunpack.i.h.bf16 %v6723_v35  ;;  %6362 = vmatpush3.bf16.msra.mxu1 %v6359_v5 }
0x1b5e   :  { %6336 = vmatprep.subr.bf16.mxu0 %v6335_v2 }
0x1b5f   :  { %v6355_v10 = vpack.c.bf16 %v6725_v38, %v6724_v9  ;;  %v3033_v9 = vrot.slane %v7879_v63, %v7467_v29 }
0x1b61   :  { %6338 = vmatpush3.bf16.msra.mxu0 %v6335_v2  ;;  %v4509_v2 = vld [vmem:[%s8591_s8 + $0x50] sm:$0xff] }
0x1b62   :  { %6340 = vmatprep.subr.bf16.mxu0 %v6339_v11  ;;  %v6363_v8 = vpack.c.bf16 %v4510_v13, %v4509_v2 }
0x1b64   :  { %6364 = vmatprep.subr.bf16.mxu1 %v6363_v8 }
0x1b65   :  { %6342 = vmatpush3.bf16.msra.mxu0 %v6339_v11  ;;  %6366 = vmatpush3.bf16.msra.mxu1 %v6363_v8 }
0x1b66   :  { %6344 = vmatprep.subr.bf16.mxu0 %v6343_v60 }
0x1b69   :  { %6346 = vmatpush3.bf16.msra.mxu0 %v6343_v60 }
0x1b6a   :  { %6348 = vmatprep.subr.bf16.mxu0 %v6347_v61 }
0x1b6d   :  { %6350 = vmatpush3.bf16.msra.mxu0 %v6347_v61 }
0x1b6e   :  { %6352 = vmatprep.subr.bf16.mxu0 %v6351_v6 }
0x1b71   :  { %6354 = vmatpush3.bf16.msra.mxu0 %v6351_v6 }
0x1b72   :  { %6356 = vmatprep.subr.bf16.mxu0 %v6355_v10 }
0x1b75   :  { %6358 = vmatpush3.bf16.msra.mxu0 %v6355_v10 }
0x1c2b   :  { %v5580_v11 = vpop.f32.mrb[48].mxu0 }
0x1c2c   :  { %v2812_v40 = vadd.f32 1e-30, %v5580_v11  ;;  %v2806_v45 = vpop.f32.mrb[49].mxu0 }
0x1c2d   :  { %v2807_v7 = vadd.f32 1e-30, %v2806_v45 }
0x1c2e   :  { %6811 = vrcp.f32 %v2812_v40 }
0x1c2f   :  { %6813 = vrcp.f32 %v2807_v7 }
0x1c38   :  { %v6812_v50 = vpop.eup %6811 }
0x1c39   :  { %v6814_v60 = vpop.eup %6813  ;;  %v2818_v61 = vmul.f32 %v6812_v50, %v6810_v58 }
0x1c3a   :  { %v2817_v36 = vmul.f32 %v6814_v60, %v8179_v48 }
0x1c3c   :  { %5613 = vmatprep.mubr.f32.mxu0 %v2817_v36  ;;  %v4513_v36 = vld [vmem:[%s8592_s9 + $0x40] sm:$0xff] }
0x1c3d   :  { %5614 = vmatmul.mubr.f32.vlgmr.msra.gmra.mrb[50].mxu0 %v2818_v61  ;;  %v4514_v61 = vld [vmem:[%s8592_s9 + $0x48] sm:$0xff] }
0x1d10   :  { %v5615_v35 = vpop.f32.mrb[50].mxu0 }
0x1d11   :  { %v2933_v38 = vpop.f32.mrb[51].mxu0 }
0x1d12   :  { %5624 = vmatprep.mubr.msk.f32.mxu1 %vm305_vm6, %v2933_v38  ;;  %v4515_v38 = vld [vmem:[%s8592_s9 + $0x50] sm:$0xff] }
0x1d13   :  { %5625 = vmatmul.mubr.msk.f32.vlgmr.msra.gmra.mrb[36].mxu1 %vm305_vm6, %v5615_v35  ;;  %v6367_v35 = vpack.c.bf16 %v4514_v61, %v4513_v36 }
0x1d15   :  { %6368 = vmatprep.subr.bf16.mxu1 %v6367_v35 }
0x1d16   :  { %6370 = vmatpush3.bf16.msra.mxu1 %v6367_v35 }
0x1de6   :  { %v5626_v6 = vpop.f32.mrb[36].mxu1 }
0x1de7   :  { %v3029_v10 = vadd.f32 %v5626_v6, %v7852_v17  ;;  %v3019_v14 = vpop.f32.mrb[37].mxu1 }
0x1de8   :  { %v3028_v59 = vadd.f32 %v3019_v14, %v7854_v18  ;;  %v4522_v14 = vld [vmem:[%s8593_s11 + $0x108] sm:$0xff] }
0x1de9   :  { %v8201_v2 = vadd.f32 %v3033_v9, %v3029_v10  ;;  %v4521_v10 = vld [vmem:[%s8593_s11 + $0x100] sm:$0xff] }
0x1dea   :  { %v8203_v48 = vadd.f32 %v3033_v9, %v3028_v59  ;;  %v4516_v9 = vld [vmem:[%s8592_s9 + $0x58] sm:$0xff]  ;;  %v6375_v59 = vpack.c.bf16 %v4522_v14, %v4521_v10 }
0x1deb   :  { %v3039_v58 = vsel %vm305_vm6, %v8201_v2, 0.0  ;;  %v6371_v6 = vpack.c.bf16 %v4516_v9, %v4515_v38  ;;  %v4523_v9 = vld [vmem:[%s8593_s11 + $0x110] sm:$0xff] }
0x1dec   :  { %3040 = vadd.xlane.f32.xlu0 %v3039_v58  ;;  %v3036_v5 = vsel %vm305_vm6, %v8203_v48, 0.0 }
0x1ded   :  { %3037 = vadd.xlane.f32.xlu1 %v3036_v5  ;;  %6372 = vmatprep.subr.bf16.mxu1 %v6371_v6 }
0x1dee   :  { %6374 = vmatpush3.bf16.msra.mxu1 %v6371_v6  ;;  %v4524_v6 = vld [vmem:[%s8593_s11 + $0x118] sm:$0xff] }
0x1def   :  { %6376 = vmatprep.subr.bf16.mxu1 %v6375_v59 }
0x1e79   :  { %v3041_v13 = vpop.xlane.xlu0 %3040 }
0x1e7a   :  { %v3043_v8 = vmul.f32 0.03125, %v3041_v13  ;;  %v3038_v11 = vpop.xlane.xlu1 %3037 }
0x1e7b   :  { %v3042_v40 = vmul.f32 0.03125, %v3038_v11 }
0x1e7c   :  { %v3045_v17 = vsub.f32 %v8201_v2, %v3043_v8 }
0x1e7d   :  { %v3044_v18 = vsub.f32 %v8203_v48, %v3042_v40 }
0x1e7e   :  { %v3047_v50 = vmul.f32 %v3045_v17, %v3045_v17 }
0x1e7f   :  { %v3046_v45 = vmul.f32 %v3044_v18, %v3044_v18 }
0x1e80   :  { %v3051_v60 = vsel %vm305_vm6, %v3047_v50, 0.0 }
0x1e81   :  { %v3048_v7 = vsel %vm305_vm6, %v3046_v45, 0.0  ;;  %v3065_v45 = vrot.slane %v7879_v63, %v7504_v4 }
0x1e82   :  { %3049 = vadd.xlane.f32.xlu0 %v3048_v7 }
0x1e86   :  { %3052 = vadd.xlane.f32.xlu0 %v3051_v60  ;;  %v3071_v60 = vrot.slane %v7879_v63, %v7507_v27 }
0x1f0f   :  { %v3050_v58 = vpop.xlane.xlu0 %3049 }
0x1f10   :  { %v3054_v5 = vmul.f32 0.03125, %v3050_v58  ;;  %v4525_v58 = vld [vmem:[%s8593_s11 + $0x120] sm:$0xff] }
0x1f12   :  { %v3056_v13 = vadd.f32 1e-05, %v3054_v5 }
0x1f13   :  { %v3053_v8 = vpop.xlane.xlu0 %3052 }
0x1f14   :  { %6815 = vrsqrt.f32 %v3056_v13  ;;  %v3055_v11 = vmul.f32 0.03125, %v3053_v8  ;;  %v4527_v13 = vld [vmem:[%s8593_s11 + $0x130] sm:$0xff]  ;;  %v4528_v8 = vld [vmem:[%s8593_s11 + $0x138] sm:$0xff] }
0x1f16   :  { %v3057_v40 = vadd.f32 1e-05, %v3055_v11  ;;  %v6387_v11 = vpack.c.bf16 %v4528_v8, %v4527_v13 }
0x1f18   :  { %6817 = vrsqrt.f32 %v3057_v40  ;;  %v4529_v40 = vld [vmem:[%s8593_s11 + $0x140] sm:$0xff] }
0x1f1e   :  { %v6816_v7 = vpop.eup %6815 }
0x1f1f   :  { %v3060_v50 = vmul.f32 %v6816_v7, %v3044_v18  ;;  %v6379_v18 = vpack.c.bf16 %v4524_v6, %v4523_v9  ;;  %v4531_v7 = vld [vmem:[%s8593_s11 + $0x150] sm:$0xff]  ;;  %v4536_v9 = vld [vmem:[%s8593_s11 + $0x178] sm:$0xff] }
0x1f21   :  { %v3066_v36 = vmul.f32 %v3065_v45, %v3060_v50  ;;  %v4532_v50 = vld [vmem:[%s8593_s11 + $0x158] sm:$0xff] }
0x1f22   :  { %v6818_v61 = vpop.eup %6817 }
0x1f23   :  { %v3061_v35 = vmul.f32 %v6818_v61, %v3045_v17  ;;  %v3072_v38 = vadd.f32 %v3071_v60, %v3066_v36  ;;  %v4526_v17 = vld [vmem:[%s8593_s11 + $0x128] sm:$0xff]  ;;  %v4533_v36 = vld [vmem:[%s8593_s11 + $0x160] sm:$0xff] }
0x1f24   :  { %v6383_v5 = vpack.c.bf16 %v4526_v17, %v4525_v58  ;;  %v4534_v61 = vld [vmem:[%s8593_s11 + $0x168] sm:$0xff] }
0x1f25   :  { %v3067_v10 = vmul.f32 %v3065_v45, %v3061_v35  ;;  %5635 = vmatprep.mubr.msk.f32.mxu1 %vm305_vm6, %v3072_v38  ;;  %v6399_v35 = vpack.c.bf16 %v4534_v61, %v4533_v36  ;;  %v4535_v38 = vld [vmem:[%s8593_s11 + $0x170] sm:$0xff]  ;;  %v4538_v36 = vld [vmem:[%s8584_s6 + $0x60] sm:$0xff]  ;;  %v4539_v61 = vld [vmem:[%s8584_s6 + $0x68] sm:$0xff] }
0x1f26   :  { %v6403_v6 = vpack.c.bf16 %v4536_v9, %v4535_v38  ;;  %v4540_v38 = vld [vmem:[%s8584_s6 + $0x70] sm:$0xff]  ;;  %v4541_v9 = vld [vmem:[%s8584_s6 + $0x78] sm:$0xff] }
0x1f27   :  { %v3073_v14 = vadd.f32 %v3071_v60, %v3067_v10  ;;  %v6395_v60 = vpack.c.bf16 %v4532_v50, %v4531_v7  ;;  %v4518_v10 = vld [vmem:[%s8594_s10 + $0x2] ss:$0 sm:$0xff] }
0x1f29   :  { %5636 = vmatmul.mubr.msk.f32.vlgmr.msra.gmra.mrb[38].mxu1 %vm305_vm6, %v3073_v14 }
0x1f2a   :  { %6378 = vmatpush3.bf16.msra.mxu1 %v6375_v59  ;;  %v4530_v59 = vld [vmem:[%s8593_s11 + $0x148] sm:$0xff] }
0x1f2b   :  { %6380 = vmatprep.subr.bf16.mxu1 %v6379_v18  ;;  %v6391_v45 = vpack.c.bf16 %v4530_v59, %v4529_v40 }
0x1f2e   :  { %6382 = vmatpush3.bf16.msra.mxu1 %v6379_v18 }
0x1f2f   :  { %6384 = vmatprep.subr.bf16.mxu1 %v6383_v5 }
0x1f32   :  { %6386 = vmatpush3.bf16.msra.mxu1 %v6383_v5 }
0x1f33   :  { %6388 = vmatprep.subr.bf16.mxu1 %v6387_v11 }
0x1f36   :  { %6390 = vmatpush3.bf16.msra.mxu1 %v6387_v11 }
0x1f37   :  { %6392 = vmatprep.subr.bf16.mxu1 %v6391_v45 }
0x1f3a   :  { %6394 = vmatpush3.bf16.msra.mxu1 %v6391_v45 }
0x1f3b   :  { %6396 = vmatprep.subr.bf16.mxu1 %v6395_v60 }
0x1f3e   :  { %6398 = vmatpush3.bf16.msra.mxu1 %v6395_v60 }
0x1f3f   :  { %6400 = vmatprep.subr.bf16.mxu1 %v6399_v35 }
0x1f42   :  { %6402 = vmatpush3.bf16.msra.mxu1 %v6399_v35  ;;  %v6407_v35 = vpack.c.bf16 %v4539_v61, %v4538_v36 }
0x1f43   :  { %6404 = vmatprep.subr.bf16.mxu1 %v6403_v6 }
0x1f44   :  { %6408 = vmatprep.subr.bf16.mxu0 %v6407_v35 }
0x1f45   :  { %6410 = vmatpush3.bf16.msra.mxu0 %v6407_v35 }
0x1f46   :  { %6406 = vmatpush3.bf16.msra.mxu1 %v6403_v6  ;;  %v6411_v6 = vpack.c.bf16 %v4541_v9, %v4540_v38 }
0x1f47   :  { %6468 = vmatprep.subr.bf16.mxu1 %v7349_v46 }
0x1f48   :  { %6412 = vmatprep.subr.bf16.mxu0 %v6411_v6 }
0x1f49   :  { %6414 = vmatpush3.bf16.msra.mxu0 %v6411_v6 }
0x1ffc   :  { %v5637_v14 = vpop.f32.mrb[38].mxu1 }
0x1ffd   :  { %v3165_v18 = vadd.f32 %v5637_v14, %v4518_v10  ;;  %v3159_v58 = vpop.f32.mrb[39].mxu1 }
0x1ffe   :  { %v3160_v17 = vadd.f32 %v4518_v10, %v3159_v58 }
0x1fff   :  { %v3169_v13 = vmax.f32 %v3165_v18, 0.0 }
0x2000   :  { %v3168_v5 = vmax.f32 %v3160_v17, 0.0 }
0x2002   :  { %5670 = vmatprep.mubr.f32.mxu1 %v3168_v5 }
0x2003   :  { %5671 = vmatmul.mubr.f32.vlgmr.msra.gmra.mrb[40].mxu1 %v3169_v13  ;;  %v8329_v13 = vld [vmem:[%s8585_s12 + $0x18] sm:$0x3f] }
0x2004   :  { %6470 = vmatpush3.bf16.msra.mxu1 %v7349_v46  ;;  %v3267_v46 = vrot.slane %v7879_v63, %v7577_v56 }
0x2005   :  { %6472 = vmatprep.subr.bf16.mxu1 %v7354_v1 }
0x2008   :  { %6474 = vmatpush3.bf16.msra.mxu1 %v7354_v1 }
0x2009   :  { %6476 = vmatprep.subr.bf16.mxu1 %v7365_v34 }
0x200c   :  { %6478 = vmatpush3.bf16.msra.mxu1 %v7365_v34 }
0x200d   :  { %6480 = vmatprep.subr.bf16.mxu1 %v7375_v37 }
0x2010   :  { %6482 = vmatpush3.bf16.msra.mxu1 %v7375_v37 }
0x2011   :  { %6484 = vmatprep.subr.bf16.mxu1 %v7385_v28 }
0x2014   :  { %6486 = vmatpush3.bf16.msra.mxu1 %v7385_v28 }
0x2015   :  { %6488 = vmatprep.subr.bf16.mxu1 %v7408_v43 }
0x2018   :  { %6490 = vmatpush3.bf16.msra.mxu1 %v7408_v43 }
0x2019   :  { %6492 = vmatprep.subr.bf16.mxu1 %v7418_v26 }
0x201c   :  { %6494 = vmatpush3.bf16.msra.mxu1 %v7418_v26 }
0x201d   :  { %6496 = vmatprep.subr.bf16.mxu1 %v7432_v53 }
0x2020   :  { %6498 = vmatpush3.bf16.msra.mxu1 %v7432_v53 }
0x20d6   :  { %v5672_v1 = vpop.f32.mrb[40].mxu1 }
0x20d7   :  { %v3263_v34 = vadd.f32 %v5672_v1, %v8201_v2  ;;  %v3253_v37 = vpop.f32.mrb[41].mxu1 }
0x20d8   :  { %v3262_v28 = vadd.f32 %v3253_v37, %v8203_v48 }
0x20d9   :  { %v8302_v8 = vadd.f32 %v3267_v46, %v3263_v34 }
0x20da   :  { %v8304_v43 = vadd.f32 %v3267_v46, %v3262_v28  ;;  %v3301_v46 = vrot.slane %v8329_v13, %v7032_v47  ;;  %v4543_v47 = vld [vmem:[%s8586_s7 + $0x3] ss:$0 sm:$0xff] }
0x20db   :  { %v3275_v26 = vsel %vm305_vm6, %v8302_v8, 0.0 }
0x20dc   :  { %3276 = vadd.xlane.f32.xlu0 %v3275_v26  ;;  %v3272_v53 = vsel %vm305_vm6, %v8304_v43, 0.0  ;;  %v3307_v26 = vrot.slane %v8329_v13, %v7040_v49 }
0x20dd   :  { %3273 = vadd.xlane.f32.xlu1 %v3272_v53 }
0x2169   :  { %v3277_v11 = vpop.xlane.xlu0 %3276 }
0x216a   :  { %v3279_v63 = vmul.f32 0.03125, %v3277_v11  ;;  %v3274_v40 = vpop.xlane.xlu1 %3273 }
0x216b   :  { %v3278_v59 = vmul.f32 0.03125, %v3274_v40 }
0x216c   :  { %v3281_v2 = vsub.f32 %v8302_v8, %v3279_v63 }
0x216d   :  { %v3280_v48 = vsub.f32 %v8304_v43, %v3278_v59 }
0x216e   :  { %v3283_v45 = vmul.f32 %v3281_v2, %v3281_v2 }
0x216f   :  { %v3282_v7 = vmul.f32 %v3280_v48, %v3280_v48 }
0x2170   :  { %v3287_v50 = vsel %vm305_vm6, %v3283_v45, 0.0 }
0x2171   :  { %3288 = vadd.xlane.f32.xlu0 %v3287_v50  ;;  %v3284_v60 = vsel %vm305_vm6, %v3282_v7, 0.0 }
0x2172   :  { %3285 = vadd.xlane.f32.xlu1 %v3284_v60 }
0x21fe   :  { %v3289_v10 = vpop.xlane.xlu0 %3288 }
0x21ff   :  { %v3291_v14 = vmul.f32 0.03125, %v3289_v10  ;;  %v3286_v18 = vpop.xlane.xlu1 %3285 }
0x2200   :  { %v3290_v58 = vmul.f32 0.03125, %v3286_v18 }
0x2201   :  { %v3293_v17 = vadd.f32 1e-05, %v3291_v14 }
0x2202   :  { %v3292_v5 = vadd.f32 1e-05, %v3290_v58 }
0x2203   :  { %6819 = vrsqrt.f32 %v3293_v17 }
0x2204   :  { %6821 = vrsqrt.f32 %v3292_v5 }
0x220d   :  { %v6820_v1 = vpop.eup %6819 }
0x220e   :  { %v6822_v34 = vpop.eup %6821  ;;  %v3297_v37 = vmul.f32 %v6820_v1, %v3281_v2 }
0x220f   :  { %v3296_v28 = vmul.f32 %v6822_v34, %v3280_v48 }
0x2210   :  { %v3303_v53 = vmul.f32 %v3301_v46, %v3297_v37 }
0x2211   :  { %v3302_v11 = vmul.f32 %v3301_v46, %v3296_v28  ;;  %v8654_v46 = vld [vmem:[#allocation4_spill] sm:$0xff]  ;;  %v8655_v28 = vld [vmem:[#allocation5_spill] sm:$0xff] }
0x2212   :  { %v3309_v40 = vadd.f32 %v3307_v26, %v3303_v53 }
0x2213   :  { %v3308_v63 = vadd.f32 %v3307_v26, %v3302_v11  ;;  %v8656_v11 = vld [vmem:[#allocation6_spill] sm:$0xff] }
0x2215   :  { %5681 = vmatprep.mubr.msk.f32.mxu0 %vm305_vm6, %v3308_v63 }
0x2216   :  { %5682 = vmatmul.mubr.msk.f32.vlgmr.msra.gmra.mrb[52].mxu0 %vm305_vm6, %v3309_v40 }
0x2217   :  { %5688 = vmatprep.mubr.msk.f32.mxu0 %vm445_vm7, %v7890_v19 }
0x22e9   :  { %v5683_v59 = vpop.f32.mrb[52].mxu0 }
0x22ea   :  { %v8342_v2 = vadd.f32 %v5683_v59, %v4543_v47  ;;  %v3395_v48 = vpop.f32.mrb[53].mxu0 }
0x22eb   :  { %v3396_v49 = vadd.f32 %v4543_v47, %v3395_v48  ;;  %v8657_v48 = vld [vmem:[#allocation7_spill] sm:$0xff] }
0x22ed   :  { %v6726_v45 = vpack.i.bf16 %v8342_v2, %v3396_v49 }
0x22ef   :  { %6727 = vrot.lane.b32.xlu1 %v6726_v45, %s6870_s1 }
0x2361   :  { %v6728_v7 = vpop.permute.xlu1 %6727 }
0x2362   :  { %v6730_v50 = vunpack.i.h.bf16 %v6728_v7  ;;  %v6729_v60 = vunpack.i.l.bf16 %v6728_v7  ;;  %v8658_v7 = vld [vmem:[#allocation8_spill] sm:$0xff] }
0x2364   :  { %v6415_v36 = vpack.c.bf16 %v6730_v50, %v6729_v60 }
0x2366   :  { %6416 = vmatprep.subr.bf16.mxu0 %v6415_v36 }
0x2367   :  { %6418 = vmatpush3.bf16.msra.mxu0 %v6415_v36 }
0x236a   :  { %5689 = vmatmul.mubr.msk.f32.vlgmr.msra.gmra.mrb[54].mxu0 %vm445_vm7, %v7904_v16 }
0x236b   :  { %5691 = vmatprep.mubr.msk.f32.mxu0 %vm445_vm7, %v7911_v21 }
0x236e   :  { %5692 = vmatmul.mubr.msk.f32.gmra.mrb[56].mxu0 %vm445_vm7, %v7918_v22 }
0x236f   :  { %5694 = vmatprep.mubr.msk.f32.mxu0 %vm445_vm7, %v7925_v23 }
0x2372   :  { %5695 = vmatmul.mubr.msk.f32.gmra.mrb[58].mxu0 %vm445_vm7, %v7932_v54 }
0x2373   :  { %5697 = vmatprep.mubr.msk.f32.mxu0 %vm445_vm7, %v7939_v24 }
0x2376   :  { %5698 = vmatmul.mubr.msk.f32.gmra.mrb[60].mxu0 %vm445_vm7, %v7946_v25 }
0x2377   :  { %5700 = vmatprep.mubr.msk.f32.mxu0 %vm445_vm7, %v7953_v52 }
0x237a   :  { %5701 = vmatmul.mubr.msk.f32.gmra.mrb[62].mxu0 %vm445_vm7, %v7960_v33 }
0x237b   :  { %5703 = vmatprep.mubr.msk.f32.mxu0 %vm445_vm7, %v7967_v30 }
0x237e   :  { %5704 = vmatmul.mubr.msk.f32.gmra.mrb[64].mxu0 %vm445_vm7, %v7974_v32 }
0x237f   :  { %5706 = vmatprep.mubr.msk.f32.mxu0 %vm445_vm7, %v7981_v62 }
0x2382   :  { %5707 = vmatmul.mubr.msk.f32.gmra.mrb[66].mxu0 %vm445_vm7, %v7988_v3 }
0x2383   :  { %5709 = vmatprep.mubr.msk.f32.mxu0 %vm445_vm7, %v7995_v55 }
0x2386   :  { %5710 = vmatmul.mubr.msk.f32.gmra.mrb[68].mxu0 %vm445_vm7, %v8002_v39 }
0x2387   :  { %5744 = vmatprep.mubr.msk.f32.mxu0 %vm305_vm6, %v3396_v49 }
0x243d   :  { %v5690_v19 = vpop.f32.mrb[54].mxu0 }
0x243e   :  { %v8378_v16 = vmul.f32 %v8010_v42, %v5690_v19  ;;  %v3478_v21 = vpop.f32.mrb[55].mxu0 }
0x243f   :  { %v8381_v22 = vmul.f32 %v8018_v51, %v3478_v21 }
0x2441   :  { %v6731_v23 = vpack.i.bf16 %v8378_v16, %v8381_v22  ;;  %v6419_v54 = vpack.c.bf16 %v8378_v16, %v8381_v22  ;;  %v5693_v24 = vpop.f32.mrb[56].mxu0 }
0x2442   :  { %v3560_v25 = vmul.f32 %v8030_v0, %v5693_v24  ;;  %v3488_v52 = vpop.f32.mrb[57].mxu0 }
0x2443   :  { %6421 = vmatprep.subr.msk.bf16.mxu0 %vm7191_vm8, %v6419_v54  ;;  %v3559_v33 = vmul.f32 %v8038_v41, %v3488_v52 }
0x2444   :  { %6424 = vmatpush3.bf16.xpose.msk.msra.mxu0 %vm7191_vm8, %v6419_v54 }
0x2445   :  { %v6736_v30 = vpack.i.bf16 %v3560_v25, %v3559_v33  ;;  %v6425_v32 = vpack.c.bf16 %v3560_v25, %v3559_v33  ;;  %v5696_v62 = vpop.f32.mrb[58].mxu0  ;;  %v8659_v25 = vld [vmem:[#allocation9_spill] sm:$0xff]  ;;  %v8660_v33 = vld [vmem:[#allocation10_spill] sm:$0xff] }
0x2446   :  { %v3562_v3 = vmul.f32 %v8046_v44, %v5696_v62  ;;  %v3498_v55 = vpop.f32.mrb[59].mxu0 }
0x2447   :  { %6737 = vrot.lane.b32.xlu1 %v6736_v30, %s6870_s1  ;;  %6427 = vmatprep.subr.msk.bf16.mxu0 %vm7191_vm8, %v6425_v32  ;;  %v3561_v39 = vmul.f32 %v8057_v20, %v3498_v55 }
0x2449   :  { %v6741_v42 = vpack.i.bf16 %v3562_v3, %v3561_v39  ;;  %v6431_v51 = vpack.c.bf16 %v3562_v3, %v3561_v39  ;;  %v5699_v0 = vpop.f32.mrb[60].mxu0 }
0x244a   :  { %v3564_v41 = vmul.f32 %v8069_v12, %v5699_v0  ;;  %v3508_v61 = vpop.f32.mrb[61].mxu0  ;;  %v8652_v12 = vld [vmem:[#allocation2_spill] sm:$0xff] }
0x244b   :  { %6742 = vrot.lane.b32.xlu1 %v6741_v42, %s6870_s1  ;;  %v3563_v35 = vmul.f32 %v8075_v15, %v3508_v61  ;;  %v8653_v15 = vld [vmem:[#allocation3_spill] sm:$0xff] }
0x244c   :  { %6430 = vmatpush3.bf16.xpose.msk.msra.mxu0 %vm7191_vm8, %v6425_v32 }
0x244d   :  { %6433 = vmatprep.subr.msk.bf16.mxu0 %vm7191_vm8, %v6431_v51  ;;  %v6746_v44 = vpack.i.bf16 %v3564_v41, %v3563_v35  ;;  %v6437_v38 = vpack.c.bf16 %v3564_v41, %v3563_v35  ;;  %v5702_v9 = vpop.f32.mrb[62].mxu0 }
0x244e   :  { %v3566_v20 = vmul.f32 %v8085_v57, %v5702_v9  ;;  %v3518_v6 = vpop.f32.mrb[63].mxu0 }
0x244f   :  { %6747 = vrot.lane.b32.xlu1 %v6746_v44, %s6870_s1  ;;  %v3565_v10 = vmul.f32 %v8652_v12, %v3518_v6 }
0x2451   :  { %v6751_v14 = vpack.i.bf16 %v3566_v20, %v3565_v10  ;;  %v6443_v18 = vpack.c.bf16 %v3566_v20, %v3565_v10  ;;  %v5705_v58 = vpop.f32.mrb[64].mxu0 }
0x2452   :  { %v3568_v17 = vmul.f32 %v8653_v15, %v5705_v58  ;;  %v3528_v5 = vpop.f32.mrb[65].mxu0 }
0x2453   :  { %6752 = vrot.lane.b32.xlu1 %v6751_v14, %s6870_s1  ;;  %v3567_v1 = vmul.f32 %v8654_v46, %v3528_v5 }
0x2454   :  { %6436 = vmatpush3.bf16.xpose.msk.msra.mxu0 %vm7191_vm8, %v6431_v51 }
0x2455   :  { %6439 = vmatprep.subr.msk.bf16.mxu0 %vm7191_vm8, %v6437_v38  ;;  %v6756_v57 = vpack.i.bf16 %v3568_v17, %v3567_v1  ;;  %v6449_v34 = vpack.c.bf16 %v3568_v17, %v3567_v1  ;;  %v5708_v37 = vpop.f32.mrb[66].mxu0 }
0x2456   :  { %v3570_v26 = vmul.f32 %v8655_v28, %v5708_v37  ;;  %v3538_v53 = vpop.f32.mrb[67].mxu0 }
0x2457   :  { %6757 = vrot.lane.b32.xlu1 %v6756_v57, %s6870_s1  ;;  %v3569_v63 = vmul.f32 %v8656_v11, %v3538_v53 }
0x2459   :  { %v6761_v40 = vpack.i.bf16 %v3570_v26, %v3569_v63  ;;  %v6455_v47 = vpack.c.bf16 %v3570_v26, %v3569_v63  ;;  %v5711_v59 = vpop.f32.mrb[68].mxu0 }
0x245a   :  { %v3572_v49 = vmul.f32 %v8657_v48, %v5711_v59  ;;  %v3548_v45 = vpop.f32.mrb[69].mxu0  ;;  %v4581_v59 = vld [vmem:[%s8591_s8 + $0x68] sm:$0xff]  ;;  %v4582_v48 = vld [vmem:[%s8591_s8 + $0x70] sm:$0xff] }
0x245b   :  { %v3571_v50 = vmul.f32 %v8658_v7, %v3548_v45  ;;  %v4583_v45 = vld [vmem:[%s8591_s8 + $0x78] sm:$0xff] }
0x245c   :  { %6442 = vmatpush3.bf16.xpose.msk.msra.mxu0 %vm7191_vm8, %v6437_v38  ;;  %v6535_v7 = vpack.c.bf16 %v4583_v45, %v4582_v48  ;;  %v4599_v48 = vld [vmem:[%s8593_s11 + $0x1a8] sm:$0xff]  ;;  %v4600_v45 = vld [vmem:[%s8593_s11 + $0x1b0] sm:$0xff] }
0x245d   :  { %6445 = vmatprep.subr.msk.bf16.mxu0 %vm7191_vm8, %v6443_v18  ;;  %v6766_v60 = vpack.i.bf16 %v3572_v49, %v3571_v50  ;;  %v6461_v36 = vpack.c.bf16 %v3572_v49, %v3571_v50 }
0x245f   :  { %6767 = vrot.lane.b32.xlu1 %v6766_v60, %s6870_s1 }
0x2464   :  { %6448 = vmatpush3.bf16.xpose.msk.msra.mxu0 %vm7191_vm8, %v6443_v18 }
0x2465   :  { %6451 = vmatprep.subr.msk.bf16.mxu0 %vm7191_vm8, %v6449_v34 }
0x246c   :  { %6454 = vmatpush3.bf16.xpose.msk.msra.mxu0 %vm7191_vm8, %v6449_v34 }
0x246d   :  { %6457 = vmatprep.subr.msk.bf16.mxu0 %vm7191_vm8, %v6455_v47 }
0x2474   :  { %6460 = vmatpush3.bf16.xpose.msk.msra.mxu0 %vm7191_vm8, %v6455_v47  ;;  %v4580_v47 = vld [vmem:[%s8591_s8 + $0x60] sm:$0xff] }
0x2475   :  { %6463 = vmatprep.subr.msk.bf16.mxu0 %vm7191_vm8, %v6461_v36  ;;  %v6531_v49 = vpack.c.bf16 %v4581_v59, %v4580_v47 }
0x247c   :  { %6466 = vmatpush3.bf16.xpose.msk.msra.mxu0 %vm7191_vm8, %v6461_v36 }
0x247d   :  { %6532 = vmatprep.subr.bf16.mxu0 %v6531_v49 }
0x2483   :  { %5745 = vmatmul.mubr.msk.f32.vlgmr.msra.gmra.mrb[70].mxu0 %vm305_vm6, %v8342_v2 }
0x2484   :  { %6534 = vmatpush3.bf16.msra.mxu0 %v6531_v49 }
0x2485   :  { %6536 = vmatprep.subr.bf16.mxu0 %v6535_v7 }
0x2488   :  { %6538 = vmatpush3.bf16.msra.mxu0 %v6535_v7  ;;  %v4601_v7 = vld [vmem:[%s8593_s11 + $0x1b8] sm:$0xff] }
0x24b9   :  { %v6738_v41 = vpop.permute.xlu1 %6737 }
0x24ba   :  { %v6740_v16 = vunpack.i.h.bf16 %v6738_v41  ;;  %v6739_v22 = vunpack.i.l.bf16 %v6738_v41 }
0x24bc   :  { %v6503_v44 = vpack.c.bf16 %v6740_v16, %v6739_v22 }
0x2556   :  { %v5746_v19 = vpop.f32.mrb[70].mxu0 }
0x2557   :  { %v3691_v21 = vpop.f32.mrb[71].mxu0  ;;  %v3701_v24 = vmul.f32 0.5, %v5746_v19 }
0x2558   :  { %v3700_v54 = vmul.f32 0.5, %v3691_v21 }
0x2559   :  { %v3703_v30 = vadd.f32 %v8660_v33, %v3701_v24 }
0x255a   :  { %v3702_v52 = vadd.f32 %v8659_v25, %v3700_v54 }
0x255c   :  { %3704 = vmax.xlane.f32.xlu0 %v3702_v52 }
0x2560   :  { %3706 = vmax.xlane.f32.xlu0 %v3703_v30 }
0x2576   :  { %6732 = vrot.lane.b32.xlu0 %v6731_v23, %s6870_s1  ;;  %v6743_v23 = vpop.permute.xlu1 %6742 }
0x2577   :  { %v6745_v38 = vunpack.i.h.bf16 %v6743_v23  ;;  %v6744_v9 = vunpack.i.l.bf16 %v6743_v23 }
0x2579   :  { %v6507_v6 = vpack.c.bf16 %v6745_v38, %v6744_v9  ;;  %v4588_v9 = vld [vmem:[%s8592_s9 + $0x70] sm:$0xff] }
0x257a   :  { %6762 = vrot.lane.b32.xlu0 %v6761_v40, %s6870_s1  ;;  %v6748_v20 = vpop.permute.xlu1 %6747 }
0x257b   :  { %v6750_v12 = vunpack.i.h.bf16 %v6748_v20  ;;  %v6749_v10 = vunpack.i.l.bf16 %v6748_v20  ;;  %v4589_v20 = vld [vmem:[%s8592_s9 + $0x78] sm:$0xff] }
0x257d   :  { %v6511_v18 = vpack.c.bf16 %v6750_v12, %v6749_v10  ;;  %v4594_v12 = vld [vmem:[%s8593_s11 + $0x180] sm:$0xff]  ;;  %v4595_v10 = vld [vmem:[%s8593_s11 + $0x188] sm:$0xff] }
0x257e   :  { %v6753_v14 = vpop.permute.xlu1 %6752 }
0x257f   :  { %v6755_v58 = vunpack.i.h.bf16 %v6753_v14  ;;  %v6754_v15 = vunpack.i.l.bf16 %v6753_v14  ;;  %v6547_v14 = vpack.c.bf16 %v4595_v10, %v4594_v12  ;;  %v4610_v12 = vld [vmem:[%s8596_s14] ss:$0 sm:$0xff] }
0x2581   :  { %v6515_v5 = vpack.c.bf16 %v6755_v58, %v6754_v15 }
0x2582   :  { %v6758_v17 = vpop.permute.xlu1 %6757 }
0x2583   :  { %v6760_v46 = vunpack.i.h.bf16 %v6758_v17  ;;  %v6759_v1 = vunpack.i.l.bf16 %v6758_v17 }
0x2585   :  { %v6519_v34 = vpack.c.bf16 %v6760_v46, %v6759_v1  ;;  %v4039_v1 = vrot.slane %v8329_v13, %v7504_v4 }
0x2586   :  { %v6768_v26 = vpop.permute.xlu1 %6767 }
0x2587   :  { %v6770_v53 = vunpack.i.h.bf16 %v6768_v26  ;;  %v6769_v11 = vunpack.i.l.bf16 %v6768_v26 }
0x2589   :  { %v6527_v40 = vpack.c.bf16 %v6770_v53, %v6769_v11 }
0x25e9   :  { %v3705_v31 = vpop.xlane.xlu0 %3704 }
0x25ea   :  { %v3708_v32 = vsub.f32 %v3702_v52, %v3705_v31 }
0x25ec   :  { %v3710_v2 = vmul.f32 1.442695, %v3708_v32 }
0x25ed   :  { %v3707_v62 = vpop.xlane.xlu0 %3706 }
0x25ee   :  { %6823 = vpow2.f32 %v3710_v2  ;;  %v3709_v3 = vsub.f32 %v3703_v30, %v3707_v62  ;;  %v4007_v30 = vrot.slane %v8329_v13, %v7467_v29 }
0x25f0   :  { %v3712_v55 = vmul.f32 1.442695, %v3709_v3 }
0x25f1   :  { %v6733_v39 = vpop.permute.xlu0 %6732 }
0x25f2   :  { %6825 = vpow2.f32 %v3712_v55  ;;  %v6735_v42 = vunpack.i.h.bf16 %v6733_v39  ;;  %v6734_v51 = vunpack.i.l.bf16 %v6733_v39 }
0x25f4   :  { %v6499_v0 = vpack.c.bf16 %v6735_v42, %v6734_v51 }
0x25f5   :  { %v6763_v57 = vpop.permute.xlu0 %6762 }
0x25f6   :  { %6500 = vmatprep.subr.bf16.mxu1 %v6499_v0  ;;  %v6765_v37 = vunpack.i.h.bf16 %v6763_v57  ;;  %v6764_v28 = vunpack.i.l.bf16 %v6763_v57 }
0x25f8   :  { %v8448_v61 = vpop.eup %6823  ;;  %v6523_v63 = vpack.c.bf16 %v6765_v37, %v6764_v28  ;;  %v4045_v37 = vrot.slane %v8329_v13, %v7507_v27  ;;  %v4598_v27 = vld [vmem:[%s8593_s11 + $0x1a0] sm:$0xff] }
0x25f9   :  { %5779 = vmatprep.mubr.f32.mxu1 %v8448_v61  ;;  %v6555_v49 = vpack.c.bf16 %v4599_v48, %v4598_v27 }
0x25fc   :  { %v6826_v35 = vpop.eup %6825 }
0x25fd   :  { %5780 = vmatmul.mubr.f32.vlgmr.msra.gmra.mrb[42].mxu1 %v6826_v35 }
0x25fe   :  { %6502 = vmatpush3.bf16.msra.mxu1 %v6499_v0 }
0x25ff   :  { %6504 = vmatprep.subr.bf16.mxu1 %v6503_v44 }
0x2602   :  { %6506 = vmatpush3.bf16.msra.mxu1 %v6503_v44  ;;  %v4587_v44 = vld [vmem:[%s8592_s9 + $0x68] sm:$0xff] }
0x2603   :  { %6508 = vmatprep.subr.bf16.mxu1 %v6507_v6 }
0x2606   :  { %6510 = vmatpush3.bf16.msra.mxu1 %v6507_v6  ;;  %v6543_v6 = vpack.c.bf16 %v4589_v20, %v4588_v9 }
0x2607   :  { %6512 = vmatprep.subr.bf16.mxu1 %v6511_v18 }
0x260a   :  { %6514 = vmatpush3.bf16.msra.mxu1 %v6511_v18 }
0x260b   :  { %6516 = vmatprep.subr.bf16.mxu1 %v6515_v5 }
0x260e   :  { %6518 = vmatpush3.bf16.msra.mxu1 %v6515_v5 }
0x260f   :  { %6520 = vmatprep.subr.bf16.mxu1 %v6519_v34 }
0x2612   :  { %6522 = vmatpush3.bf16.msra.mxu1 %v6519_v34 }
0x2613   :  { %6524 = vmatprep.subr.bf16.mxu1 %v6523_v63 }
0x2616   :  { %6526 = vmatpush3.bf16.msra.mxu1 %v6523_v63  ;;  %v4596_v63 = vld [vmem:[%s8593_s11 + $0x190] sm:$0xff] }
0x2617   :  { %6528 = vmatprep.subr.bf16.mxu1 %v6527_v40 }
0x261a   :  { %6530 = vmatpush3.bf16.msra.mxu1 %v6527_v40  ;;  %v4597_v40 = vld [vmem:[%s8593_s11 + $0x198] sm:$0xff] }
0x261b   :  { %v6551_v59 = vpack.c.bf16 %v4597_v40, %v4596_v63 }
0x26d0   :  { %v5781_v50 = vpop.f32.mrb[42].mxu1 }
0x26d1   :  { %v3786_v60 = vadd.f32 1e-30, %v5781_v50  ;;  %v3780_v36 = vpop.f32.mrb[43].mxu1  ;;  %v6559_v50 = vpack.c.bf16 %v4601_v7, %v4600_v45 }
0x26d2   :  { %v3781_v19 = vadd.f32 1e-30, %v3780_v36  ;;  %v4603_v36 = vld [vmem:[%s8593_s11 + $0x1c8] sm:$0xff] }
0x26d3   :  { %6827 = vrcp.f32 %v3786_v60  ;;  %v4602_v60 = vld [vmem:[%s8593_s11 + $0x1c0] sm:$0xff] }
0x26d4   :  { %6829 = vrcp.f32 %v3781_v19  ;;  %v6563_v19 = vpack.c.bf16 %v4603_v36, %v4602_v60 }
0x26dd   :  { %v6828_v21 = vpop.eup %6827 }
0x26de   :  { %v6830_v54 = vpop.eup %6829  ;;  %v3792_v25 = vmul.f32 %v6828_v21, %v6826_v35  ;;  %v4586_v35 = vld [vmem:[%s8592_s9 + $0x60] sm:$0xff]  ;;  %v4604_v21 = vld [vmem:[%s8593_s11 + $0x1d0] sm:$0xff] }
0x26df   :  { %v3791_v24 = vmul.f32 %v6830_v54, %v8448_v61  ;;  %v6539_v38 = vpack.c.bf16 %v4587_v44, %v4586_v35  ;;  %v4605_v54 = vld [vmem:[%s8593_s11 + $0x1d8] sm:$0xff]  ;;  %v4241_v35 = vrot.slane %v8329_v13, %v7577_v56 }
0x26e1   :  { %5814 = vmatprep.mubr.f32.mxu1 %v3791_v24  ;;  %6540 = vmatprep.subr.bf16.mxu0 %v6539_v38  ;;  %v6567_v24 = vpack.c.bf16 %v4605_v54, %v4604_v21 }
0x26e2   :  { %5815 = vmatmul.mubr.f32.vlgmr.msra.gmra.mrb[44].mxu1 %v3792_v25  ;;  %v4606_v25 = vld [vmem:[%s8593_s11 + $0x1e0] sm:$0xff] }
0x27b5   :  { %v5816_v52 = vpop.f32.mrb[44].mxu1 }
0x27b6   :  { %v3907_v33 = vpop.f32.mrb[45].mxu1 }
0x27b7   :  { %5825 = vmatprep.mubr.msk.f32.mxu0 %vm305_vm6, %v3907_v33 }
0x27b8   :  { %5826 = vmatmul.mubr.msk.f32.vlgmr.msra.gmra.mrb[72].mxu0 %vm305_vm6, %v5816_v52  ;;  %v4607_v52 = vld [vmem:[%s8593_s11 + $0x1e8] sm:$0xff] }
0x27b9   :  { %6542 = vmatpush3.bf16.msra.mxu0 %v6539_v38  ;;  %v6571_v33 = vpack.c.bf16 %v4607_v52, %v4606_v25 }
0x27ba   :  { %6544 = vmatprep.subr.bf16.mxu0 %v6543_v6 }
0x27bd   :  { %6546 = vmatpush3.bf16.msra.mxu0 %v6543_v6 }
0x27be   :  { %6548 = vmatprep.subr.bf16.mxu0 %v6547_v14 }
0x288b   :  { %v5827_v31 = vpop.f32.mrb[72].mxu0 }
0x288c   :  { %v4003_v32 = vadd.f32 %v5827_v31, %v8302_v8  ;;  %v3993_v2 = vpop.f32.mrb[73].mxu0  ;;  %v4609_v31 = vld [vmem:[%s8593_s11 + $0x1f8] sm:$0xff] }
0x288d   :  { %v4002_v62 = vadd.f32 %v3993_v2, %v8304_v43  ;;  %v4244_v2 = vld [vmem:[%s8595_s13] sm:$0xff] }
0x288e   :  { %v8470_v3 = vadd.f32 %v4007_v30, %v4003_v32 }
0x288f   :  { %v8472_v55 = vadd.f32 %v4007_v30, %v4002_v62  ;;  %v4608_v30 = vld [vmem:[%s8593_s11 + $0x1f0] sm:$0xff]  ;;  %v4245_v62 = vld [vmem:[%s8595_s13 + $0x8] sm:$0xff] }
0x2890   :  { %v4013_v39 = vsel %vm305_vm6, %v8470_v3, 0.0  ;;  %v6575_v32 = vpack.c.bf16 %v4609_v31, %v4608_v30 }
0x2891   :  { %4014 = vadd.xlane.f32.xlu1 %v4013_v39  ;;  %v4010_v42 = vsel %vm305_vm6, %v8472_v55, 0.0  ;;  %v6579_v39 = vpack.c.bf16 %v4245_v62, %v4244_v2 }
0x2892   :  { %4011 = vadd.xlane.f32.xlu0 %v4010_v42  ;;  %v4591_v42 = vld [vmem:[%s8594_s10 + $0x3] ss:$0 sm:$0xff] }
0x2893   :  { %6580 = vmatprep.subr.bf16.mxu1 %v6579_v39 }
0x2894   :  { %6582 = vmatpush3.bf16.msra.mxu1 %v6579_v39 }
0x291e   :  { %v4015_v51 = vpop.xlane.xlu1 %4014 }
0x291f   :  { %v4017_v29 = vmul.f32 0.03125, %v4015_v51  ;;  %v4012_v0 = vpop.xlane.xlu0 %4011 }
0x2920   :  { %v4016_v41 = vmul.f32 0.03125, %v4012_v0 }
0x2921   :  { %v4019_v8 = vsub.f32 %v8470_v3, %v4017_v29 }
0x2922   :  { %v4018_v43 = vsub.f32 %v8472_v55, %v4016_v41 }
0x2923   :  { %v4021_v22 = vmul.f32 %v4019_v8, %v4019_v8 }
0x2924   :  { %v4020_v61 = vmul.f32 %v4018_v43, %v4018_v43 }
0x2925   :  { %v4025_v23 = vsel %vm305_vm6, %v4021_v22, 0.0 }
0x2926   :  { %v4022_v16 = vsel %vm305_vm6, %v4020_v61, 0.0  ;;  %v4246_v61 = vld [vmem:[%s8595_s13 + $0x10] sm:$0xff] }
0x2927   :  { %4023 = vadd.xlane.f32.xlu0 %v4022_v16  ;;  %v4247_v16 = vld [vmem:[%s8595_s13 + $0x18] sm:$0xff] }
0x2928   :  { %v6583_v22 = vpack.c.bf16 %v4247_v16, %v4246_v61 }
0x292a   :  { %6584 = vmatprep.subr.bf16.mxu1 %v6583_v22 }
0x292b   :  { %4026 = vadd.xlane.f32.xlu0 %v4025_v23  ;;  %6586 = vmatpush3.bf16.msra.mxu1 %v6583_v22 }
0x29b4   :  { %v4024_v18 = vpop.xlane.xlu0 %4023 }
0x29b5   :  { %v4028_v58 = vmul.f32 0.03125, %v4024_v18 }
0x29b7   :  { %v4030_v15 = vadd.f32 1e-05, %v4028_v58 }
0x29b8   :  { %v4027_v17 = vpop.xlane.xlu0 %4026 }
0x29b9   :  { %6831 = vrsqrt.f32 %v4030_v15  ;;  %v4029_v5 = vmul.f32 0.03125, %v4027_v17 }
0x29bb   :  { %v4031_v46 = vadd.f32 1e-05, %v4029_v5 }
0x29bd   :  { %6833 = vrsqrt.f32 %v4031_v46 }
0x29c3   :  { %v6832_v57 = vpop.eup %6831 }
0x29c4   :  { %v4034_v34 = vmul.f32 %v6832_v57, %v4018_v43 }
0x29c6   :  { %v4040_v28 = vmul.f32 %v4039_v1, %v4034_v34 }
0x29c7   :  { %v6834_v26 = vpop.eup %6833 }
0x29c8   :  { %v4035_v53 = vmul.f32 %v6834_v26, %v4019_v8  ;;  %v4046_v11 = vadd.f32 %v4045_v37, %v4040_v28 }
0x29ca   :  { %v4041_v47 = vmul.f32 %v4039_v1, %v4035_v53  ;;  %5836 = vmatprep.mubr.msk.f32.mxu0 %vm305_vm6, %v4046_v11 }
0x29cc   :  { %v4047_v4 = vadd.f32 %v4045_v37, %v4041_v47 }
0x29ce   :  { %5837 = vmatmul.mubr.msk.f32.vlgmr.msra.gmra.mrb[74].mxu0 %vm305_vm6, %v4047_v4 }
0x29cf   :  { %6550 = vmatpush3.bf16.msra.mxu0 %v6547_v14 }
0x29d0   :  { %6552 = vmatprep.subr.bf16.mxu0 %v6551_v59 }
0x29d3   :  { %6554 = vmatpush3.bf16.msra.mxu0 %v6551_v59 }
0x29d4   :  { %6556 = vmatprep.subr.bf16.mxu0 %v6555_v49 }
0x29d7   :  { %6558 = vmatpush3.bf16.msra.mxu0 %v6555_v49 }
0x29d8   :  { %6560 = vmatprep.subr.bf16.mxu0 %v6559_v50 }
0x29db   :  { %6562 = vmatpush3.bf16.msra.mxu0 %v6559_v50 }
0x29dc   :  { %6564 = vmatprep.subr.bf16.mxu0 %v6563_v19 }
0x29df   :  { %6566 = vmatpush3.bf16.msra.mxu0 %v6563_v19 }
0x29e0   :  { %6568 = vmatprep.subr.bf16.mxu0 %v6567_v24 }
0x29e3   :  { %6570 = vmatpush3.bf16.msra.mxu0 %v6567_v24 }
0x29e4   :  { %6572 = vmatprep.subr.bf16.mxu0 %v6571_v33 }
0x29e7   :  { %6574 = vmatpush3.bf16.msra.mxu0 %v6571_v33 }
0x29e8   :  { %6576 = vmatprep.subr.bf16.mxu0 %v6575_v32 }
0x29eb   :  { %6578 = vmatpush3.bf16.msra.mxu0 %v6575_v32 }
0x2aa1   :  { %v5838_v51 = vpop.f32.mrb[74].mxu0 }
0x2aa2   :  { %v4139_v29 = vadd.f32 %v5838_v51, %v4591_v42  ;;  %v4133_v0 = vpop.f32.mrb[75].mxu0 }
0x2aa3   :  { %v4134_v41 = vadd.f32 %v4591_v42, %v4133_v0 }
0x2aa4   :  { %v4143_v43 = vmax.f32 %v4139_v29, 0.0 }
0x2aa5   :  { %v4142_v8 = vmax.f32 %v4134_v41, 0.0 }
0x2aa7   :  { %5871 = vmatprep.mubr.f32.mxu0 %v4142_v8 }
0x2aa8   :  { %5872 = vmatmul.mubr.f32.vlgmr.msra.gmra.mrb[76].mxu0 %v4143_v43 }
0x2b7b   :  { %v5873_v23 = vpop.f32.mrb[76].mxu0 }
0x2b7c   :  { %v4237_v44 = vadd.f32 %v5873_v23, %v8470_v3  ;;  %v4227_v38 = vpop.f32.mrb[77].mxu0 }
0x2b7d   :  { %v4236_v9 = vadd.f32 %v4227_v38, %v8472_v55 }
0x2b7e   :  { %v4243_v6 = vadd.f32 %v4241_v35, %v4237_v44 }
0x2b7f   :  { %v4242_v20 = vadd.f32 %v4241_v35, %v4236_v9 }
0x2b81   :  { %5882 = vmatprep.mubr.msk.f32.mxu1 %vm305_vm6, %v4242_v20 }
0x2b82   :  { %5883 = vmatmul.mubr.msk.f32.vlgmr.msra.gmra.mrb[46].mxu1 %vm305_vm6, %v4243_v6 }
0x2c55   :  { %v5884_v10 = vpop.f32.mrb[46].mxu1 }
0x2c56   :  { %v4333_v14 = vadd.f32 %v5884_v10, %v4610_v12  ;;  %v4327_v18 = vpop.f32.mrb[47].mxu1 }
0x2c57   :  { %v4328_v58 = vadd.f32 %v4610_v12, %v4327_v18 }
0x2c58   :  { %4337 = vst [vmem:[%s8597_s19 + $0x8] sm:$0xff] %v4333_v14 }
0x2c59   :  { %4336 = vst [vmem:[%s8597_s19] sm:$0xff] %v4328_v58 }

</bundles_post_ra>
